<compile_context>
chip_gen: v7x
topology: tpu7x:2x2x1
jax: 0.10.0
libtpu: 0.0.40
codegen_flags: <defaults>
</compile_context>

<pallas_src>
import jax
import jax.numpy as jnp
from jax.experimental import pallas as pl
from jax.experimental.pallas import tpu as pltpu

D_IN, H1, H2, H3, D_OUT = 429, 1024, 512, 128, 39
D_IN_PAD = 512     # lane-dense K for layer 1 (zero-padded x cols / w1 rows)
D_OUT_PAD = 128    # lane-dense output (zero-padded w4/b4 cols, sliced in wrapper)


def _round_up(n, m):
    return ((n + m - 1) // m) * m


def mlp_kernel(x_ref, w1_ref, b1_ref, w2_ref, b2_ref, w3_ref, b3_ref,
               w4_ref, b4_ref, o_ref):
    # bf16 operands into the MXU, f32 accumulation; sigmoid in f32 (EUP).
    x = x_ref[...]                                                    # [tb, 512] bf16
    z1 = jnp.dot(x, w1_ref[...], preferred_element_type=jnp.float32) + b1_ref[...]
    h1 = jax.nn.sigmoid(z1).astype(jnp.bfloat16)
    z2 = jnp.dot(h1, w2_ref[...], preferred_element_type=jnp.float32) + b2_ref[...]
    h2 = jax.nn.sigmoid(z2).astype(jnp.bfloat16)
    z3 = jnp.dot(h2, w3_ref[...], preferred_element_type=jnp.float32) + b3_ref[...]
    h3 = jax.nn.sigmoid(z3).astype(jnp.bfloat16)
    o = jnp.dot(h3, w4_ref[...], preferred_element_type=jnp.float32) + b4_ref[...]
    o_ref[...] = o.astype(o_ref.dtype)                                # [tb, 128] f32


def _full(shape):
    # Whole-array block, same block every grid step (weights stay resident in VMEM).
    return pl.BlockSpec(shape, lambda i: (0, 0))


def classifier_forward(x, prepared, tile_b=256):
    """x: [B, 429] float32.  prepared: output of prepare_params (bf16 weights,
    f32 biases, already padded to D_IN_PAD / D_OUT_PAD).  Returns [B, 39] f32."""
    B = x.shape[0]
    w1, b1, w2, b2, w3, b3, w4, b4 = prepared

    # Effective batch tile: multiple of 8 (f32/bf16 sublane), no larger than needed.
    tb = _round_up(min(tile_b, _round_up(B, 8)), 8)
    B_pad = _round_up(B, tb)

    # Pad batch and K-dim; cast x to bf16 once in HBM (halves x DMA).
    xp = jnp.zeros((B_pad, D_IN_PAD), jnp.bfloat16)
    xp = xp.at[:B, :D_IN].set(x.astype(jnp.bfloat16))

    grid = (B_pad // tb,)

    flops = 2 * B_pad * (D_IN_PAD * H1 + H1 * H2 + H2 * H3 + H3 * D_OUT_PAD)
    transcendentals = B_pad * (H1 + H2 + H3)
    bytes_accessed = (
        2 * (D_IN_PAD * H1 + H1 * H2 + H2 * H3 + H3 * D_OUT_PAD)   # bf16 weights
        + 4 * (H1 + H2 + H3 + D_OUT_PAD)                           # f32 biases
        + 2 * B_pad * D_IN_PAD                                     # bf16 x
        + 4 * B_pad * D_OUT_PAD)                                   # f32 out

    out = pl.pallas_call(
        mlp_kernel,
        out_shape=jax.ShapeDtypeStruct((B_pad, D_OUT_PAD), jnp.float32),
        grid=grid,
        in_specs=[
            pl.BlockSpec((tb, D_IN_PAD), lambda i: (i, 0)),   # x tile (batch-tiled)
            _full((D_IN_PAD, H1)), _full((1, H1)),
            _full((H1, H2)), _full((1, H2)),
            _full((H2, H3)), _full((1, H3)),
            _full((H3, D_OUT_PAD)), _full((1, D_OUT_PAD)),
        ],
        out_specs=pl.BlockSpec((tb, D_OUT_PAD), lambda i: (i, 0)),
        compiler_params=pltpu.CompilerParams(
            dimension_semantics=("parallel",),
            vmem_limit_bytes=32 * 1024 * 1024),
        cost_estimate=pl.CostEstimate(
            flops=flops,
            transcendentals=transcendentals,
            bytes_accessed=bytes_accessed),
    )(xp, w1, b1, w2, b2, w3, b3, w4, b4)

    return out[:B, :D_OUT]


def init_params(key):
    """Deterministic f32 init mimicking PyTorch nn.Linear default
    (U[-1/sqrt(in), 1/sqrt(in)]).  Weights stored transposed as (in, out)."""
    dims = [(D_IN, H1), (H1, H2), (H2, H3), (H3, D_OUT)]
    params = []
    for (din, dout) in dims:
        key, kw, kb = jax.random.split(key, 3)
        bound = 1.0 / jnp.sqrt(jnp.float32(din))
        w_t = jax.random.uniform(kw, (din, dout), jnp.float32, -bound, bound)
        b = jax.random.uniform(kb, (1, dout), jnp.float32, -bound, bound)
        params += [w_t, b]
    return tuple(params)


def prepare_params(params):
    """Pad w1 rows (429->512) and w4/b4 cols (39->128) with zeros, cast weights to
    bf16 (MXU operands); biases stay f32 (added to the f32 accumulator)."""
    w1, b1, w2, b2, w3, b3, w4, b4 = params
    w1p = jnp.zeros((D_IN_PAD, H1), jnp.float32).at[:D_IN, :].set(w1)
    w4p = jnp.zeros((H3, D_OUT_PAD), jnp.float32).at[:, :D_OUT].set(w4)
    b4p = jnp.zeros((1, D_OUT_PAD), jnp.float32).at[:, :D_OUT].set(b4)
    return (w1p.astype(jnp.bfloat16), b1,
            w2.astype(jnp.bfloat16), b2,
            w3.astype(jnp.bfloat16), b3,
            w4p.astype(jnp.bfloat16), b4p)


def reference_forward(x, params):
    """Pure-f32 reference identical to the PyTorch module."""
    w1, b1, w2, b2, w3, b3, w4, b4 = params
    h = jax.nn.sigmoid(x @ w1 + b1)
    h = jax.nn.sigmoid(h @ w2 + b2)
    h = jax.nn.sigmoid(h @ w3 + b3)
    return h @ w4 + b4


if __name__ == "__main__":
    key = jax.random.PRNGKey(0)
    key, kx = jax.random.split(key)
    B = 100                                    # deliberately not a multiple of 8
    x = jax.random.normal(kx, (B, D_IN), jnp.float32)
    params = init_params(key)
    prepared = prepare_params(params)

    # Multi-step grid path (exercises batch tiling + padding) and default path.
    out_tiled = classifier_forward(x, prepared, tile_b=32)
    out_default = classifier_forward(x, prepared)
    out_tiled, out_default = jax.block_until_ready((out_tiled, out_default))

    ref = reference_forward(x, params)
    assert out_default.shape == (B, D_OUT)
    assert out_tiled.shape == (B, D_OUT)
    # bf16 MXU operands with f32 accumulation -> small error vs. pure-f32 reference.
    assert jnp.allclose(out_tiled, ref, atol=2e-2, rtol=2e-2)
    assert jnp.allclose(out_default, ref, atol=2e-2, rtol=2e-2)
    print("KERNEL_OK")
</pallas_src>

<mosaic_0001>
module attributes {stable_mosaic.version = 11 : i64} {
  func.func @mlp_kernel(%arg0: i32, %arg1: memref<32x512xbf16, #tpu.memory_space<vmem>>, %arg2: memref<512x1024xbf16, #tpu.memory_space<vmem>>, %arg3: memref<1x1024xf32, #tpu.memory_space<vmem>>, %arg4: memref<1024x512xbf16, #tpu.memory_space<vmem>>, %arg5: memref<1x512xf32, #tpu.memory_space<vmem>>, %arg6: memref<512x128xbf16, #tpu.memory_space<vmem>>, %arg7: memref<1x128xf32, #tpu.memory_space<vmem>>, %arg8: memref<128x128xbf16, #tpu.memory_space<vmem>>, %arg9: memref<1x128xf32, #tpu.memory_space<vmem>>, %arg10: memref<32x128xf32, #tpu.memory_space<vmem>>) attributes {dimension_semantics = [#tpu.dimension_semantics<parallel>], iteration_bounds = array<i64: 4>, scalar_prefetch = 0 : i64, scratch_operands = 0 : i64, tpu.core_type = #tpu.core_type<tc>, window_params = [{transform_indices = @transform_0, window_bounds = array<i64: 32, 512>}, {pipeline_mode = #tpu.pipeline_mode<synchronous>, transform_indices = @transform_1, window_bounds = array<i64: 512, 1024>}, {pipeline_mode = #tpu.pipeline_mode<synchronous>, transform_indices = @transform_2, window_bounds = array<i64: 1, 1024>}, {pipeline_mode = #tpu.pipeline_mode<synchronous>, transform_indices = @transform_3, window_bounds = array<i64: 1024, 512>}, {pipeline_mode = #tpu.pipeline_mode<synchronous>, transform_indices = @transform_4, window_bounds = array<i64: 1, 512>}, {pipeline_mode = #tpu.pipeline_mode<synchronous>, transform_indices = @transform_5, window_bounds = array<i64: 512, 128>}, {pipeline_mode = #tpu.pipeline_mode<synchronous>, transform_indices = @transform_6, window_bounds = array<i64: 1, 128>}, {pipeline_mode = #tpu.pipeline_mode<synchronous>, transform_indices = @transform_7, window_bounds = array<i64: 128, 128>}, {pipeline_mode = #tpu.pipeline_mode<synchronous>, transform_indices = @transform_8, window_bounds = array<i64: 1, 128>}, {transform_indices = @transform_9, window_bounds = array<i64: 32, 128>}]} {
    %c0 = arith.constant 0 : index
    %c0_0 = arith.constant 0 : index
    %0 = vector.load %arg1[%c0, %c0_0] : memref<32x512xbf16, #tpu.memory_space<vmem>>, vector<32x512xbf16>
    %c0_1 = arith.constant 0 : index
    %c0_2 = arith.constant 0 : index
    %1 = vector.load %arg2[%c0_1, %c0_2] : memref<512x1024xbf16, #tpu.memory_space<vmem>>, vector<512x1024xbf16>
    %cst = arith.constant dense<0.000000e+00> : vector<32x1024xf32>
    %2 = tpu.matmul %0, %1, %cst {dimension_numbers = #tpu.dot_dimension_numbers<[1], [0], [0], [1], [0, 0, 1, 1], [], []>} : vector<32x512xbf16>, vector<512x1024xbf16>, vector<32x1024xf32> -> vector<32x1024xf32>
    %c0_3 = arith.constant 0 : index
    %c0_4 = arith.constant 0 : index
    %3 = vector.load %arg3[%c0_3, %c0_4] : memref<1x1024xf32, #tpu.memory_space<vmem>>, vector<1x1024xf32>
    %4 = vector.broadcast %3 : vector<1x1024xf32> to vector<32x1024xf32>
    %5 = arith.addf %2, %4 : vector<32x1024xf32>
    %6 = arith.negf %5 : vector<32x1024xf32>
    %7 = math.exp %6 : vector<32x1024xf32>
    %cst_5 = arith.constant 1.000000e+00 : f32
    %8 = vector.broadcast %cst_5 : f32 to vector<32x1024xf32>
    %9 = arith.addf %8, %7 : vector<32x1024xf32>
    %10 = arith.divf %8, %9 : vector<32x1024xf32>
    %11 = arith.truncf %10 : vector<32x1024xf32> to vector<32x1024xbf16>
    %c0_6 = arith.constant 0 : index
    %c0_7 = arith.constant 0 : index
    %12 = vector.load %arg4[%c0_6, %c0_7] : memref<1024x512xbf16, #tpu.memory_space<vmem>>, vector<1024x512xbf16>
    %cst_8 = arith.constant dense<0.000000e+00> : vector<32x512xf32>
    %13 = tpu.matmul %11, %12, %cst_8 {dimension_numbers = #tpu.dot_dimension_numbers<[1], [0], [0], [1], [0, 0, 1, 1], [], []>} : vector<32x1024xbf16>, vector<1024x512xbf16>, vector<32x512xf32> -> vector<32x512xf32>
    %c0_9 = arith.constant 0 : index
    %c0_10 = arith.constant 0 : index
    %14 = vector.load %arg5[%c0_9, %c0_10] : memref<1x512xf32, #tpu.memory_space<vmem>>, vector<1x512xf32>
    %15 = vector.broadcast %14 : vector<1x512xf32> to vector<32x512xf32>
    %16 = arith.addf %13, %15 : vector<32x512xf32>
    %17 = arith.negf %16 : vector<32x512xf32>
    %18 = math.exp %17 : vector<32x512xf32>
    %cst_11 = arith.constant 1.000000e+00 : f32
    %19 = vector.broadcast %cst_11 : f32 to vector<32x512xf32>
    %20 = arith.addf %19, %18 : vector<32x512xf32>
    %21 = arith.divf %19, %20 : vector<32x512xf32>
    %22 = arith.truncf %21 : vector<32x512xf32> to vector<32x512xbf16>
    %c0_12 = arith.constant 0 : index
    %c0_13 = arith.constant 0 : index
    %23 = vector.load %arg6[%c0_12, %c0_13] : memref<512x128xbf16, #tpu.memory_space<vmem>>, vector<512x128xbf16>
    %cst_14 = arith.constant dense<0.000000e+00> : vector<32x128xf32>
    %24 = tpu.matmul %22, %23, %cst_14 {dimension_numbers = #tpu.dot_dimension_numbers<[1], [0], [0], [1], [0, 0, 1, 1], [], []>} : vector<32x512xbf16>, vector<512x128xbf16>, vector<32x128xf32> -> vector<32x128xf32>
    %c0_15 = arith.constant 0 : index
    %c0_16 = arith.constant 0 : index
    %25 = vector.load %arg7[%c0_15, %c0_16] : memref<1x128xf32, #tpu.memory_space<vmem>>, vector<1x128xf32>
    %26 = vector.broadcast %25 : vector<1x128xf32> to vector<32x128xf32>
    %27 = arith.addf %24, %26 : vector<32x128xf32>
    %28 = arith.negf %27 : vector<32x128xf32>
    %29 = math.exp %28 : vector<32x128xf32>
    %cst_17 = arith.constant 1.000000e+00 : f32
    %30 = vector.broadcast %cst_17 : f32 to vector<32x128xf32>
    %31 = arith.addf %30, %29 : vector<32x128xf32>
    %32 = arith.divf %30, %31 : vector<32x128xf32>
    %33 = arith.truncf %32 : vector<32x128xf32> to vector<32x128xbf16>
    %c0_18 = arith.constant 0 : index
    %c0_19 = arith.constant 0 : index
    %34 = vector.load %arg8[%c0_18, %c0_19] : memref<128x128xbf16, #tpu.memory_space<vmem>>, vector<128x128xbf16>
    %cst_20 = arith.constant dense<0.000000e+00> : vector<32x128xf32>
    %35 = tpu.matmul %33, %34, %cst_20 {dimension_numbers = #tpu.dot_dimension_numbers<[1], [0], [0], [1], [0, 0, 1, 1], [], []>} : vector<32x128xbf16>, vector<128x128xbf16>, vector<32x128xf32> -> vector<32x128xf32>
    %c0_21 = arith.constant 0 : index
    %c0_22 = arith.constant 0 : index
    %36 = vector.load %arg9[%c0_21, %c0_22] : memref<1x128xf32, #tpu.memory_space<vmem>>, vector<1x128xf32>
    %37 = vector.broadcast %36 : vector<1x128xf32> to vector<32x128xf32>
    %38 = arith.addf %35, %37 : vector<32x128xf32>
    %c0_23 = arith.constant 0 : index
    %c0_24 = arith.constant 0 : index
    %39 = vector.load %arg10[%c0_23, %c0_24] : memref<32x128xf32, #tpu.memory_space<vmem>>, vector<32x128xf32>
    tpu.vector_store %arg10[%c0_23, %c0_24], %38 {strides = array<i32>} : memref<32x128xf32, #tpu.memory_space<vmem>>, vector<32x128xf32>,
    return
  }
  func.func @transform_0(%arg0: i32) -> (i32, i32) {
    %c0_i32 = arith.constant 0 : i32
    %c0_i32_0 = arith.constant 0 : i32
    return %arg0, %c0_i32 : i32, i32
  }
  func.func @transform_1(%arg0: i32) -> (i32, i32) {
    %c0_i32 = arith.constant 0 : i32
    %c0_i32_0 = arith.constant 0 : i32
    %c0_i32_1 = arith.constant 0 : i32
    return %c0_i32, %c0_i32_0 : i32, i32
  }
  func.func @transform_2(%arg0: i32) -> (i32, i32) {
    %c0_i32 = arith.constant 0 : i32
    %c0_i32_0 = arith.constant 0 : i32
    %c0_i32_1 = arith.constant 0 : i32
    return %c0_i32, %c0_i32_0 : i32, i32
  }
  func.func @transform_3(%arg0: i32) -> (i32, i32) {
    %c0_i32 = arith.constant 0 : i32
    %c0_i32_0 = arith.constant 0 : i32
    %c0_i32_1 = arith.constant 0 : i32
    return %c0_i32, %c0_i32_0 : i32, i32
  }
  func.func @transform_4(%arg0: i32) -> (i32, i32) {
    %c0_i32 = arith.constant 0 : i32
    %c0_i32_0 = arith.constant 0 : i32
    %c0_i32_1 = arith.constant 0 : i32
    return %c0_i32, %c0_i32_0 : i32, i32
  }
  func.func @transform_5(%arg0: i32) -> (i32, i32) {
    %c0_i32 = arith.constant 0 : i32
    %c0_i32_0 = arith.constant 0 : i32
    %c0_i32_1 = arith.constant 0 : i32
    return %c0_i32, %c0_i32_0 : i32, i32
  }
  func.func @transform_6(%arg0: i32) -> (i32, i32) {
    %c0_i32 = arith.constant 0 : i32
    %c0_i32_0 = arith.constant 0 : i32
    %c0_i32_1 = arith.constant 0 : i32
    return %c0_i32, %c0_i32_0 : i32, i32
  }
  func.func @transform_7(%arg0: i32) -> (i32, i32) {
    %c0_i32 = arith.constant 0 : i32
    %c0_i32_0 = arith.constant 0 : i32
    %c0_i32_1 = arith.constant 0 : i32
    return %c0_i32, %c0_i32_0 : i32, i32
  }
  func.func @transform_8(%arg0: i32) -> (i32, i32) {
    %c0_i32 = arith.constant 0 : i32
    %c0_i32_0 = arith.constant 0 : i32
    %c0_i32_1 = arith.constant 0 : i32
    return %c0_i32, %c0_i32_0 : i32, i32
  }
  func.func @transform_9(%arg0: i32) -> (i32, i32) {
    %c0_i32 = arith.constant 0 : i32
    %c0_i32_0 = arith.constant 0 : i32
    return %arg0, %c0_i32 : i32, i32
  }
}

</mosaic_0001>

<bundles_post_ra>
// kernel: tpu_custom_call.1
= control target key start
LH: loop header
LB: loop body
LE: loop exit
PB: predicated region body
PF: predicated region fallthrough
CT: control target
= control target key end

     0   :  { %s7796_s0 = inlined_call_operand.hbm [shape: bf16[128,512], index: 0, kind: input, shape index: {}]   ;;  %s7797_s1 = inlined_call_operand.hbm [shape: bf16[512,1024], index: 1, kind: input, shape index: {}]   ;;  %s7798_s2 = inlined_call_operand.hbm [shape: f32[1,1024], index: 2, kind: input, shape index: {}]   ;;  %s7799_s3 = inlined_call_operand.hbm [shape: bf16[1024,512], index: 3, kind: input, shape index: {}]   ;;  %s7800_s4 = inlined_call_operand.vmem [shape: f32[1,512], index: 4, kind: input, shape index: {}]   ;;  %s7801_s5 = inlined_call_operand.hbm [shape: bf16[512,128], index: 5, kind: input, shape index: {}]   ;;  %s7802_s6 = inlined_call_operand.vmem [shape: f32[1,128], index: 6, kind: input, shape index: {}]   ;;  %s7803_s7 = inlined_call_operand.hbm [shape: bf16[128,128], index: 7, kind: input, shape index: {}]   ;;  %s7804_s8 = inlined_call_operand.vmem [shape: f32[1,128], index: 8, kind: input, shape index: {}]   ;;  %s7805_s9 = inlined_call_operand.hbm [shape: f32[128,128], index: 9, kind: output, shape index: {}]  }
   0x1   :  { %7812 = sst [smem:[#allocation19_spill]] %s7805_s9 }
   0x2   :  { %14 = vsyncpa [#allocation3], 0 }
   0x3   :  { %16 = vsyncpa [#allocation3 + $0x1], 0 }
   0x4   :  { %17 = vsyncpa [#allocation6], 0 }
   0x5   :  { %18 = vsyncpa [#allocation9], 0 }
   0x6   :  { %19 = vsyncpa [#allocation12], 0 }
   0x7   :  { %20 = vsyncpa [#allocation4], 0 }
   0x8   :  { %22 = vsyncpa [#allocation4 + $0x1], 0  ;;  %s7344_s30 = smov 0   ;;  %s7346_s10 = smov 0  }
   0x9   :  { %s7348_s11 = smov 0   ;;  %s7350_s12 = smov 0  }
   0xa LB: > { %s7279_s13 = smov [#allocation5]   ;;  %s7365_s15 = sadd.s32 4294967295, %s7277_s12   ;;  %s7277_s12 = sphi %s7350_s12, %s7836_s12   ;;  %s7273_s11 = sphi %s7348_s11, %s7835_s11   ;;  %s7269_s10 = sphi %s7346_s10, %s7834_s10   ;;  %s7265_s30 = sphi %s7344_s30, %s7833_s30  }
   0xb   : > { %s265_s14 = sshll.u32 %s7279_s13, 4  ;;  %p5417_p0 = scmp.ge.s32.totalorder %s7277_s12, 1  ;;  %s7370_s14 = int_to_ptr.vmem [resolvable:$true] %s265_s14 }
   0xc   : > { %p7807_p1 = scmp.eq.s32.totalorder %s7365_s15, 0  ;;  %p253_p2 = scmp.lt.s32.totalorder %s7277_s12, 5 }
   0xd   : > { %s7280_s17 = smov [#allocation8]   ;;  %s7281_s20 = smov [#allocation7]  }
   0xe   : > { %p7372_p3 = pnand %p5417_p0, %p253_p2  ;;  %s289_s18 = sshll.u32 %s7280_s17, 4  ;;  %s7384_s18 = int_to_ptr.vmem [resolvable:$true] %s289_s18 }
   0xf   : > { %s7386_s21 = sshll.u32 %s7281_s20, 4  ;;  %s7029_s24 = scalar_lea.hbm %s7797_s1, 32768  ;;  %s280_s21 = int_to_ptr.vmem [resolvable:$true] %s7386_s21 }
  0x10   : > { %s7813_s16 = scalar_select %p7372_p3, 1, 0 }
  0x11   : > { %p6296_p4 = pneg %p7372_p3  ;;  %p7030_p6 = scmp.ne.s32.totalorder %s7797_s1, %s7029_s24 }
  0x12   : > { %p7036_p10 = scmp.lt.u32.totalorder %s7029_s24, %s7797_s1 }
  0x13   : > { %p7380_p5 = pnand %p6296_p4, %p7807_p1 }
  0x15   : > { %p7396_p7 = pneg %p7380_p5 }
  0x17   : > { %p7032_p8 = pnand %p7396_p7, %p7030_p6 }
  0x19   : > { %p7033_p9 = pneg %p7032_p8 }
  0x1b   : > { %p7038_p11 = pnand %p7036_p10, %p7033_p9 }
  0x1d   : > { %7041 = shalt.err (!%p7038_p11)
}
  0x1e   : > { %s7042_s13 = scalar_lea.vmem %s7370_s14, 32768  ;;  %p7050_p2 = scmp.lt.s32.totalorder %s7370_s14, %s7370_s14 }
  0x1f   : > { %p7043_p12 = scmp.ne.s32.totalorder %s7370_s14, %s7042_s13  ;;  %p7051_p4 = scmp.lt.s32.totalorder %s7042_s13, %s7042_s13 }
  0x21   : > { %p7045_p13 = pnand %p7043_p12, %p7396_p7  ;;  %p7052_p6 = por %p7051_p4, %p7050_p2 }
  0x23   : > { %p7046_p0 = pneg %p7045_p13 }
  0x25   : > { %p7053_p8 = pnand %p7052_p6, %p7046_p0 }
  0x27   : > { %7056 = shalt.err (!%p7053_p8)
}
  0x28   : > { %s7282_s17 = smov 512   ;;  %s7283_s20 = smov 32  }
  0x29   : > { %6299 = dma.hbm_to_vmem [thread:$0]  (!%p7380_p5), %s7797_s1, 32768, %s7370_s14, [#allocation6], %s7282_s17, %s7282_s17, %s7283_s20  }
  0x2a   : > { %s7057_s26 = scalar_lea.hbm %s7799_s3, 32768 }
  0x2b   : > { %p7058_p9 = scmp.ne.s32.totalorder %s7799_s3, %s7057_s26  ;;  %p7064_p12 = scmp.lt.u32.totalorder %s7057_s26, %s7799_s3 }
  0x2d   : > { %p7060_p10 = pnand %p7058_p9, %p7396_p7 }
  0x2f   : > { %p7061_p11 = pneg %p7060_p10 }
  0x31   : > { %p7066_p13 = pnand %p7064_p12, %p7061_p11 }
  0x33   : > { %7069 = shalt.err (!%p7066_p13)
}
  0x34   : > { %s7070_s14 = scalar_lea.vmem %s7384_s18, 32768  ;;  %p7078_p6 = scmp.lt.s32.totalorder %s7384_s18, %s7384_s18 }
  0x35   : > { %p7071_p0 = scmp.ne.s32.totalorder %s7384_s18, %s7070_s14  ;;  %p7079_p8 = scmp.lt.s32.totalorder %s7070_s14, %s7070_s14 }
  0x37   : > { %p7073_p2 = pnand %p7071_p0, %p7396_p7  ;;  %p7080_p9 = por %p7079_p8, %p7078_p6 }
  0x39   : > { %p7074_p4 = pneg %p7073_p2 }
  0x3b   : > { %p7081_p10 = pnand %p7080_p9, %p7074_p4 }
  0x3d   : > { %7084 = shalt.err (!%p7081_p10)
}
  0x3e   : > { %s7809_s17 = smov 256   ;;  %s7810_s9 = smov 16  }
  0x3f   : > { %6305 = dma.hbm_to_vmem [thread:$0]  (!%p7380_p5), %s7799_s3, 32768, %s7384_s18, [#allocation9], %s7809_s17, %s7809_s17, %s7810_s9  }
  0x40   : > { %s7085_s25 = scalar_lea.hbm %s7798_s2, 128 }
  0x41   : > { %p7086_p11 = scmp.ne.s32.totalorder %s7798_s2, %s7085_s25  ;;  %p7092_p0 = scmp.lt.u32.totalorder %s7085_s25, %s7798_s2 }
  0x43   : > { %p7088_p12 = pnand %p7086_p11, %p7396_p7 }
  0x45   : > { %p7089_p13 = pneg %p7088_p12 }
  0x47   : > { %p7094_p2 = pnand %p7092_p0, %p7089_p13 }
  0x49   : > { %7097 = shalt.err (!%p7094_p2)
}
  0x4a   : > { %s7098_s14 = scalar_lea.vmem %s280_s21, 128  ;;  %p7106_p9 = scmp.lt.s32.totalorder %s280_s21, %s280_s21 }
  0x4b   : > { %p7099_p4 = scmp.ne.s32.totalorder %s280_s21, %s7098_s14  ;;  %p7107_p10 = scmp.lt.s32.totalorder %s7098_s14, %s7098_s14 }
  0x4d   : > { %p7101_p6 = pnand %p7099_p4, %p7396_p7  ;;  %p7108_p1 = por %p7107_p10, %p7106_p9 }
  0x4f   : > { %p7102_p8 = pneg %p7101_p6 }
  0x51   : > { %p7109_p3 = pnand %p7108_p1, %p7102_p8 }
  0x53   : > { %7112 = shalt.err (!%p7109_p3)
}
  0x54   : > { %6302 = dma.hbm_to_vmem [thread:$0]  (!%p7380_p5), %s7798_s2, 128, %s280_s21, [#allocation6]  }
  0x55   : > { %s7286_s22 = smov [#allocation10]   ;;  %s7113_s26 = scalar_lea.hbm %s7801_s5, 4096 }
  0x56   : > { %s305_s23 = sshll.u32 %s7286_s22, 4  ;;  %p7114_p11 = scmp.ne.s32.totalorder %s7801_s5, %s7113_s26  ;;  %s306_s23 = int_to_ptr.vmem [resolvable:$true] %s305_s23 }
  0x57   : > { %p7120_p12 = scmp.lt.u32.totalorder %s7113_s26, %s7801_s5 }
  0x58   : > { %p7116_p1 = pnand %p7114_p11, %p7396_p7 }
  0x5a   : > { %p7117_p3 = pneg %p7116_p1 }
  0x5c   : > { %p7122_p13 = pnand %p7120_p12, %p7117_p3 }
  0x5e   : > { %7125 = shalt.err (!%p7122_p13)
}
  0x5f   : > { %s7126_s21 = scalar_lea.vmem %s306_s23, 4096  ;;  %p7134_p6 = scmp.lt.s32.totalorder %s306_s23, %s306_s23 }
  0x60   : > { %p7127_p0 = scmp.ne.s32.totalorder %s306_s23, %s7126_s21  ;;  %p7135_p8 = scmp.lt.s32.totalorder %s7126_s21, %s7126_s21 }
  0x62   : > { %p7129_p2 = pnand %p7127_p0, %p7396_p7  ;;  %p7136_p9 = por %p7135_p8, %p7134_p6 }
  0x64   : > { %p7130_p4 = pneg %p7129_p2 }
  0x66   : > { %p7137_p10 = pnand %p7136_p9, %p7130_p4 }
  0x68   : > { %7140 = shalt.err (!%p7137_p10)
}
  0x69   : > { %s7287_s18 = smov 64   ;;  %s7288_s20 = smov 4  }
  0x6a   : > { %6308 = dma.hbm_to_vmem [thread:$0]  (!%p7380_p5), %s7801_s5, 4096, %s306_s23, [#allocation9], %s7287_s18, %s7287_s18, %s7288_s20  }
  0x6b   : > { %s7289_s25 = smov [#allocation11]   ;;  %s7141_s13 = scalar_lea.hbm %s7803_s7, 1024 }
  0x6c   : > { %s321_s26 = sshll.u32 %s7289_s25, 4  ;;  %p7142_p11 = scmp.ne.s32.totalorder %s7803_s7, %s7141_s13  ;;  %s322_s26 = int_to_ptr.vmem [resolvable:$true] %s321_s26 }
  0x6d   : > { %p7148_p12 = scmp.lt.u32.totalorder %s7141_s13, %s7803_s7 }
  0x6e   : > { %p7144_p1 = pnand %p7142_p11, %p7396_p7 }
  0x70   : > { %p7145_p3 = pneg %p7144_p1 }
  0x72   : > { %p7150_p13 = pnand %p7148_p12, %p7145_p3 }
  0x74   : > { %7153 = shalt.err (!%p7150_p13)
}
  0x75   : > { %s7154_s23 = scalar_lea.vmem %s322_s26, 1024  ;;  %p7162_p6 = scmp.lt.s32.totalorder %s322_s26, %s322_s26 }
  0x76   : > { %p7155_p0 = scmp.ne.s32.totalorder %s322_s26, %s7154_s23  ;;  %p7163_p8 = scmp.lt.s32.totalorder %s7154_s23, %s7154_s23 }
  0x78   : > { %p7157_p2 = pnand %p7155_p0, %p7396_p7  ;;  %p7164_p9 = por %p7163_p8, %p7162_p6 }
  0x7a   : > { %p7158_p4 = pneg %p7157_p2 }
  0x7c   : > { %p7165_p10 = pnand %p7164_p9, %p7158_p4 }
  0x7e   : > { %7168 = shalt.err (!%p7165_p10)
}
  0x7f   : > { %6311 = dma.hbm_to_vmem [thread:$0]  (!%p7380_p5), %s7803_s7, 1024, %s322_s26, [#allocation12], %s7287_s18, %s7287_s18, %s7288_s20  }
  0x80   : > { %s5416_s27 = sadd.s32 4294967294, %s7277_s12   ;;  %s7500_s19 = sadd.s32 1, %s7277_s12  }
  0x81   : > { %s35_s17 = sadd.s32 1, %s7273_s11  ;;  %s32_s9 = ssub.s32 %s7277_s12, %s7500_s19 }
  0x82   : > { %p42_p7 = scmp.ne.s32.totalorder %s7273_s11, %s7269_s10  ;;  %p33_p11 = scmp.eq.s32.totalorder %s32_s9, 0 }
  0x83   : > { %p43_p1 = scmp.eq.s32.totalorder %s7277_s12, 0  ;;  %p48_p3 = scmp.ne.s32.totalorder %s7269_s10, %s7265_s30 }
  0x84   : > { %p240_p12 = scmp.eq.s32.totalorder %s7365_s15, 3  ;;  %p7816_p0 = scmp.eq.s32.totalorder %s7365_s15, 0 }
  0x85   : > { %s7512_s25 = scalar_select %p33_p11, %s7273_s11, %s35_s17  }
  0x86   : > { %p44_p13 = por %p43_p1, %p42_p7  ;;  %p7516_p2 = por %p7816_p0, %p48_p3 }
  0x87   : > { %p7520_p5 = por %p240_p12, %p42_p7  ;;  %p246_p4 = scmp.eq.s32.totalorder %s5416_s27, 3 }
  0x88   : > { %p6325_p6 = scmp.lt.s32.totalorder %s7277_s12, 4  ;;  %s338_s20 = sand.u32 1, %s7273_s11  }
  0x89   : > { %s7818_s18 = scalar_select %p7520_p5, 1, 0 }
  0x8a   : > { %p7526_p8 = por %p246_p4, %p48_p3  ;;  %s5424_s29 = sshll.u32 %s338_s20, 6 }
  0x8b   : > { %s6056_s13 = sshll.u32 %s7277_s12, 10  ;;  %s342_s22 = scalar_lea.vmem [#allocation2], %s5424_s29 }
  0x8c   : > { %s7819_s26 = scalar_select %p7526_p8, 1, 0 }
  0x8d   : > { %s7534_s23 = scalar_lea.hbm %s7796_s0, %s6056_s13  ;;  %s350_s24 = sshll.u32 %s342_s22, 4  ;;  %s7540_s24 = int_to_ptr.vmem [resolvable:$true] %s350_s24 }
  0x8e   : > { %p7536_p9 = pnand %p6325_p6, %p44_p13  ;;  %s7542_s17 = scalar_lea.sflag [#allocation3], %s338_s20 }
  0x8f   : > { %s7169_s9 = scalar_lea.hbm %s7534_s23, 1024  ;;  %s7174_s14 = scalar_lea.hbm %s7796_s0, 4096 }
  0x90   : > { %p7170_p10 = scmp.ne.s32.totalorder %s7534_s23, %s7169_s9  ;;  %p7171_p7 = pneg %p7536_p9 }
  0x91   : > { %p7175_p3 = scmp.lt.u32.totalorder %s7534_s23, %s7796_s0  ;;  %p7176_p12 = scmp.lt.u32.totalorder %s7174_s14, %s7169_s9 }
  0x92   : > { %p7172_p11 = pnand %p7171_p7, %p7170_p10  ;;  %p7178_p0 = scmp.lt.u32.totalorder %s7169_s9, %s7534_s23 }
  0x93   : > { %p7177_p13 = por %p7176_p12, %p7175_p3 }
  0x94   : > { %p7173_p1 = pneg %p7172_p11 }
  0x95   : > { %p7179_p4 = por %p7178_p0, %p7177_p13 }
  0x97   : > { %p7180_p6 = pnand %p7179_p4, %p7173_p1 }
  0x99   : > { %7183 = shalt.err (!%p7180_p6)
}
  0x9a   : > { %s7184_s20 = scalar_lea.vmem %s7540_s24, 1024  ;;  %s7290_s29 = smov [#allocation2]  }
  0x9b   : > { %p7185_p10 = scmp.ne.s32.totalorder %s7540_s24, %s7184_s20  ;;  %s7189_s13 = sshll.u32 %s7290_s29, 4  ;;  %s7190_s13 = int_to_ptr.vmem [resolvable:$false] %s7189_s13 }
  0x9c   : > { %s7191_s21 = scalar_lea.vmem %s7190_s13, 2048  ;;  %p7192_p5 = scmp.lt.s32.totalorder %s7540_s24, %s7190_s13 }
  0x9d   : > { %p7187_p11 = pnand %p7185_p10, %p7171_p7  ;;  %p7193_p3 = scmp.lt.s32.totalorder %s7191_s21, %s7184_s20 }
  0x9f   : > { %p7188_p8 = pneg %p7187_p11  ;;  %p7194_p12 = por %p7193_p3, %p7192_p5 }
  0xa1   : > { %p7195_p13 = pnand %p7194_p12, %p7188_p8 }
  0xa3   : > { %7198 = shalt.err (!%p7195_p13)
}
  0xa4   : > { %s7821_s9 = smov 16   ;;  %s7822_s14 = smov 256  }
  0xa5   : > { %6315 = dma.hbm_to_vmem [thread:$0]  (!%p7536_p9), %s7534_s23, 1024, %s7540_s24, %s7542_s17, %s7822_s14, %s7822_s14, %s7821_s9  }
  0xa6   : > { %p7823_p7 = scmp.ne.s32.totalorder %s7813_s16, 0 }
  0xa7   : > { %s7576_s22 = sand.u32 (!%p7823_p7), 1, %s7269_s10  }
  0xa8   : > { %362 = sbr.rel (%p7823_p7) target bundleno = 1510 (0x5e6), region = 56  ;;  %s5429_s20 = sshll.u32 (!%p7823_p7), %s7576_s22, 6 }
  0xa9   : > { %s365_s29 = scalar_lea.sflag (!%p7823_p7), [#allocation3], %s7576_s22  ;;  %s7580_s13 = scalar_lea.vmem (!%p7823_p7), [#allocation2], %s5429_s20 }
  0xaf   : > { %7244 = dma.done.wait (%p7516_p2), %s365_s29, 1024  }
  0xb0   : > { %7246 = vsyncadd (%p7516_p2), %s365_s29, 4294966272  ;;  %p7824_p5 = scmp.eq.s32.totalorder %s7365_s15, 0 }
  0xb2   : > { %7248 = dma.done.wait (%p7824_p5), [#allocation6], 32896   ;;  %p7825_p8 = pmov %p7824_p5 }
  0xb3   : > { %p7826_p9 = pmov %p7824_p5 }
  0xb4   : > { %7250 = vsyncadd (%p7825_p8), [#allocation6], 4294934400 }
  0xb5   : > { %7252 = dma.done.wait (%p7826_p9), [#allocation9], 36864   ;;  %p7827_p1 = pmov %p7824_p5 }
  0xb7   : > { %7254 = vsyncadd (%p7827_p1), [#allocation9], 4294930432  ;;  %p7828_p0 = pmov %p7827_p1 }
  0xb9   : > { %7256 = dma.done.wait (%p7828_p0), [#allocation12], 1024   ;;  %p7829_p4 = pmov %p7828_p0 }
  0xba   : > { %v434_v0 = vld [vmem:[#allocation5] sm:$0xff]  ;;  %v435_v2 = vld [vmem:[#allocation5 + $0x8] sm:$0xff]  ;;  %s5435_s27 = sshll.u32 %s7576_s22, 5  ;;  %s6057_s20 = sshll.u32 %s7365_s15, 9 }
  0xbb   : > { %7258 = vsyncadd (%p7829_p4), [#allocation12], 4294966272  ;;  %v438_v1 = vld [vmem:[#allocation5 + $0x20] sm:$0xff]  ;;  %v439_v4 = vld [vmem:[#allocation5 + $0x28] sm:$0xff]  ;;  %s422_s9 = scalar_lea.vmem [#allocation13], %s5435_s27  ;;  %s7830_s16 = sld [smem:[#allocation19_spill]] }
  0xbc   : > { %v5445_v3 = vcombine.high %v434_v0, %v438_v1  ;;  %v5444_v5 = vcombine.low %v434_v0, %v438_v1  ;;  %v442_v6 = vld [vmem:[#allocation5 + $0x40] sm:$0xff]  ;;  %v5447_v8 = vcombine.high %v435_v2, %v439_v4  ;;  %v5446_v9 = vcombine.low %v435_v2, %v439_v4  ;;  %v443_v11 = vld [vmem:[#allocation5 + $0x48] sm:$0xff]  ;;  %s5295_s14 = sshll.u32 %s422_s9, 4  ;;  %s5282_s15 = scalar_lea.sflag [#allocation4], %s7576_s22  ;;  %s7748_s14 = int_to_ptr.vmem [resolvable:$true] %s5295_s14 }
  0xbd   : > { %v446_v7 = vld [vmem:[#allocation5 + $0x60] sm:$0xff]  ;;  %v447_v12 = vld [vmem:[#allocation5 + $0x68] sm:$0xff]  ;;  %s7199_s23 = scalar_lea.vmem %s7748_s14, 512  ;;  %p7831_p6 = scmp.ne.s32.totalorder %s7818_s18, 0 }
  0xbe   : > { %v5453_v10 = vcombine.high %v442_v6, %v446_v7  ;;  %v450_v13 = vld [vmem:[#allocation5 + $0x80] sm:$0xff]  ;;  %2052 = vmatprep.subr.bf16.mxu0 %v5445_v3  ;;  %v5455_v14 = vcombine.high %v443_v11, %v447_v12  ;;  %v451_v16 = vld [vmem:[#allocation5 + $0x88] sm:$0xff]  ;;  %2158 = vmatprep.subr.bf16.mxu1 %v5447_v8  ;;  %v5452_v18 = vcombine.low %v442_v6, %v446_v7  ;;  %p7200_p2 = scmp.ne.s32.totalorder %s7748_s14, %s7199_s23  ;;  %s7291_s24 = smov [#allocation13]  }
  0xbf   : > { %v454_v15 = vld [vmem:[#allocation5 + $0xa0] sm:$0xff]  ;;  %v455_v17 = vld [vmem:[#allocation5 + $0xa8] sm:$0xff]  ;;  %2053 = vmatpush1.bf16.msra.mxu0 %v5444_v5  ;;  %2159 = vmatpush1.bf16.msra.mxu1 %v5446_v9  ;;  %v5454_v19 = vcombine.low %v443_v11, %v447_v12  ;;  %s7203_s27 = sshll.u32 %s7291_s24, 4  ;;  %s7204_s27 = int_to_ptr.vmem [resolvable:$false] %s7203_s27 }
  0xc0   : > { %2054 = vmatprep.subr.bf16.mxu0 %v5453_v10  ;;  %v5461_v20 = vcombine.high %v450_v13, %v454_v15  ;;  %2160 = vmatprep.subr.bf16.mxu1 %v5455_v14  ;;  %v5463_v21 = vcombine.high %v451_v16, %v455_v17  ;;  %v458_v22 = vld [vmem:[#allocation5 + $0xc0] sm:$0xff]  ;;  %v459_v24 = vld [vmem:[#allocation5 + $0xc8] sm:$0xff]  ;;  %v5460_v26 = vcombine.low %v450_v13, %v454_v15  ;;  %p7201_p10 = pnand %p7200_p2, %p7831_p6  ;;  %s7205_s17 = scalar_lea.vmem %s7204_s27, 1024 }
  0xc1   : > { %v462_v23 = vld [vmem:[#allocation5 + $0xe0] sm:$0xff]  ;;  %v463_v25 = vld [vmem:[#allocation5 + $0xe8] sm:$0xff]  ;;  %v5462_v27 = vcombine.low %v451_v16, %v455_v17  ;;  %s7753_s28 = scalar_lea.hbm %s7830_s16, %s6057_s20  ;;  %p7206_p3 = scmp.lt.s32.totalorder %s7748_s14, %s7204_s27 }
  0xc2   : > { %v5469_v28 = vcombine.high %v458_v22, %v462_v23  ;;  %v5471_v29 = vcombine.high %v459_v24, %v463_v25  ;;  %v466_v30 = vld [vmem:[#allocation5 + $0x100] sm:$0xff]  ;;  %v467_v32 = vld [vmem:[#allocation5 + $0x108] sm:$0xff]  ;;  %v5468_v34 = vcombine.low %v458_v22, %v462_v23  ;;  %v5470_v35 = vcombine.low %v459_v24, %v463_v25  ;;  %p7202_p11 = pneg %p7201_p10  ;;  %p7207_p12 = scmp.lt.s32.totalorder %s7205_s17, %s7199_s23 }
  0xc3   : > { %2055 = vmatpush1.bf16.msra.mxu0 %v5452_v18  ;;  %2161 = vmatpush1.bf16.msra.mxu1 %v5454_v19  ;;  %v470_v31 = vld [vmem:[#allocation5 + $0x120] sm:$0xff]  ;;  %v471_v33 = vld [vmem:[#allocation5 + $0x128] sm:$0xff] }
  0xc4   : > { %2056 = vmatprep.subr.bf16.mxu0 %v5461_v20  ;;  %2162 = vmatprep.subr.bf16.mxu1 %v5463_v21  ;;  %v5477_v36 = vcombine.high %v466_v30, %v470_v31  ;;  %v5479_v37 = vcombine.high %v467_v32, %v471_v33  ;;  %v474_v38 = vld [vmem:[#allocation5 + $0x140] sm:$0xff]  ;;  %v475_v40 = vld [vmem:[#allocation5 + $0x148] sm:$0xff]  ;;  %v5476_v42 = vcombine.low %v466_v30, %v470_v31  ;;  %p7208_p13 = por %p7207_p12, %p7206_p3 }
  0xc5   : > { %v478_v39 = vld [vmem:[#allocation5 + $0x160] sm:$0xff]  ;;  %v479_v41 = vld [vmem:[#allocation5 + $0x168] sm:$0xff]  ;;  %v5478_v43 = vcombine.low %v467_v32, %v471_v33 }
  0xc6   : > { %v5485_v44 = vcombine.high %v474_v38, %v478_v39  ;;  %v5487_v45 = vcombine.high %v475_v40, %v479_v41  ;;  %v482_v46 = vld [vmem:[#allocation5 + $0x180] sm:$0xff]  ;;  %v483_v48 = vld [vmem:[#allocation5 + $0x188] sm:$0xff]  ;;  %v5484_v50 = vcombine.low %v474_v38, %v478_v39  ;;  %v5486_v51 = vcombine.low %v475_v40, %v479_v41  ;;  %p7209_p7 = pnand %p7208_p13, %p7202_p11 }
  0xc7   : > { %2057 = vmatpush1.bf16.msra.mxu0 %v5460_v26  ;;  %2163 = vmatpush1.bf16.msra.mxu1 %v5462_v27  ;;  %v486_v47 = vld [vmem:[#allocation5 + $0x1a0] sm:$0xff]  ;;  %v487_v49 = vld [vmem:[#allocation5 + $0x1a8] sm:$0xff] }
  0xc8   : > { %2058 = vmatprep.subr.bf16.mxu0 %v5469_v28  ;;  %2164 = vmatprep.subr.bf16.mxu1 %v5471_v29  ;;  %v5493_v52 = vcombine.high %v482_v46, %v486_v47  ;;  %v5495_v53 = vcombine.high %v483_v48, %v487_v49  ;;  %v490_v54 = vld [vmem:[#allocation5 + $0x1c0] sm:$0xff]  ;;  %v491_v57 = vld [vmem:[#allocation5 + $0x1c8] sm:$0xff]  ;;  %v5492_v59 = vcombine.low %v482_v46, %v486_v47 }
  0xc9   : > { %v494_v55 = vld [vmem:[#allocation5 + $0x1e0] sm:$0xff]  ;;  %v495_v58 = vld [vmem:[#allocation5 + $0x1e8] sm:$0xff]  ;;  %v5494_v60 = vcombine.low %v483_v48, %v487_v49 }
  0xca   : > { %v6377_v56 = vld [vmem:[%s7580_s13 + $0x4] ss:$16 sps:$4 sm:$0xff]   ;;  %v5501_v61 = vcombine.high %v490_v54, %v494_v55  ;;  %v5503_v62 = vcombine.high %v491_v57, %v495_v58  ;;  %v499_v1 = vld [vmem:[#allocation5 + $0x208] sm:$0xff]  ;;  %v5500_v3 = vcombine.low %v490_v54, %v494_v55  ;;  %v5502_v4 = vcombine.low %v491_v57, %v495_v58 }
  0xcb   : > { %2059 = vmatpush1.bf16.msra.mxu0 %v5468_v34  ;;  %2165 = vmatpush1.bf16.msra.mxu1 %v5470_v35  ;;  %v498_v63 = vld [vmem:[#allocation5 + $0x200] sm:$0xff]  ;;  %v503_v2 = vld [vmem:[#allocation5 + $0x228] sm:$0xff] }
  0xcc   : > { %2060 = vmatprep.subr.bf16.mxu0 %v5477_v36  ;;  %2166 = vmatprep.subr.bf16.mxu1 %v5479_v37  ;;  %v502_v0 = vld [vmem:[#allocation5 + $0x220] sm:$0xff]  ;;  %v5511_v6 = vcombine.high %v499_v1, %v503_v2  ;;  %v507_v9 = vld [vmem:[#allocation5 + $0x248] sm:$0xff]  ;;  %v5510_v12 = vcombine.low %v499_v1, %v503_v2 }
  0xcd   : > { %2084 = vmatprep.mubr.bf16.mxu0 %v6377_v56  ;;  %2190 = vmatprep.mubr.bf16.mxu1 %v6377_v56  ;;  %v5509_v5 = vcombine.high %v498_v63, %v502_v0  ;;  %v506_v7 = vld [vmem:[#allocation5 + $0x240] sm:$0xff]  ;;  %v511_v10 = vld [vmem:[#allocation5 + $0x268] sm:$0xff]  ;;  %v5508_v11 = vcombine.low %v498_v63, %v502_v0 }
  0xce   : > { %v510_v8 = vld [vmem:[#allocation5 + $0x260] sm:$0xff]  ;;  %v5519_v14 = vcombine.high %v507_v9, %v511_v10  ;;  %v515_v17 = vld [vmem:[#allocation5 + $0x288] sm:$0xff]  ;;  %v5518_v20 = vcombine.low %v507_v9, %v511_v10 }
  0xcf   : > { %2061 = vmatpush1.bf16.msra.mxu0 %v5476_v42  ;;  %2167 = vmatpush1.bf16.msra.mxu1 %v5478_v43  ;;  %v5517_v13 = vcombine.high %v506_v7, %v510_v8  ;;  %v514_v15 = vld [vmem:[#allocation5 + $0x280] sm:$0xff]  ;;  %v519_v18 = vld [vmem:[#allocation5 + $0x2a8] sm:$0xff]  ;;  %v5516_v19 = vcombine.low %v506_v7, %v510_v8 }
  0xd0   : > { %2062 = vmatprep.subr.bf16.mxu0 %v5485_v44  ;;  %2168 = vmatprep.subr.bf16.mxu1 %v5487_v45  ;;  %v518_v16 = vld [vmem:[#allocation5 + $0x2a0] sm:$0xff]  ;;  %v5527_v22 = vcombine.high %v515_v17, %v519_v18  ;;  %v523_v25 = vld [vmem:[#allocation5 + $0x2c8] sm:$0xff]  ;;  %v5526_v28 = vcombine.low %v515_v17, %v519_v18 }
  0xd1   : > { %v5525_v21 = vcombine.high %v514_v15, %v518_v16  ;;  %v522_v23 = vld [vmem:[#allocation5 + $0x2c0] sm:$0xff]  ;;  %v527_v26 = vld [vmem:[#allocation5 + $0x2e8] sm:$0xff]  ;;  %v5524_v27 = vcombine.low %v514_v15, %v518_v16 }
  0xd2   : > { %v526_v24 = vld [vmem:[#allocation5 + $0x2e0] sm:$0xff]  ;;  %v5535_v30 = vcombine.high %v523_v25, %v527_v26  ;;  %v531_v33 = vld [vmem:[#allocation5 + $0x308] sm:$0xff]  ;;  %v5534_v36 = vcombine.low %v523_v25, %v527_v26 }
  0xd3   : > { %2063 = vmatpush1.bf16.msra.mxu0 %v5484_v50  ;;  %2169 = vmatpush1.bf16.msra.mxu1 %v5486_v51  ;;  %v5533_v29 = vcombine.high %v522_v23, %v526_v24  ;;  %v530_v31 = vld [vmem:[#allocation5 + $0x300] sm:$0xff]  ;;  %v535_v34 = vld [vmem:[#allocation5 + $0x328] sm:$0xff]  ;;  %v5532_v35 = vcombine.low %v522_v23, %v526_v24 }
  0xd4   : > { %2064 = vmatprep.subr.bf16.mxu0 %v5493_v52  ;;  %2170 = vmatprep.subr.bf16.mxu1 %v5495_v53  ;;  %v534_v32 = vld [vmem:[#allocation5 + $0x320] sm:$0xff]  ;;  %v5543_v38 = vcombine.high %v531_v33, %v535_v34  ;;  %v539_v41 = vld [vmem:[#allocation5 + $0x348] sm:$0xff]  ;;  %v5542_v44 = vcombine.low %v531_v33, %v535_v34 }
  0xd5   : > { %v5541_v37 = vcombine.high %v530_v31, %v534_v32  ;;  %v538_v39 = vld [vmem:[#allocation5 + $0x340] sm:$0xff]  ;;  %v543_v42 = vld [vmem:[#allocation5 + $0x368] sm:$0xff]  ;;  %v5540_v43 = vcombine.low %v530_v31, %v534_v32 }
  0xd6   : > { %v542_v40 = vld [vmem:[#allocation5 + $0x360] sm:$0xff]  ;;  %v5551_v46 = vcombine.high %v539_v41, %v543_v42  ;;  %v547_v49 = vld [vmem:[#allocation5 + $0x388] sm:$0xff]  ;;  %v5550_v52 = vcombine.low %v539_v41, %v543_v42 }
  0xd7   : > { %2065 = vmatpush1.bf16.msra.mxu0 %v5492_v59  ;;  %2171 = vmatpush1.bf16.msra.mxu1 %v5494_v60  ;;  %v5549_v45 = vcombine.high %v538_v39, %v542_v40  ;;  %v546_v47 = vld [vmem:[#allocation5 + $0x380] sm:$0xff]  ;;  %v551_v50 = vld [vmem:[#allocation5 + $0x3a8] sm:$0xff]  ;;  %v5548_v51 = vcombine.low %v538_v39, %v542_v40 }
  0xd8   : > { %2066 = vmatprep.subr.bf16.mxu0 %v5501_v61  ;;  %2172 = vmatprep.subr.bf16.mxu1 %v5503_v62  ;;  %v550_v48 = vld [vmem:[#allocation5 + $0x3a0] sm:$0xff]  ;;  %v5559_v54 = vcombine.high %v547_v49, %v551_v50  ;;  %v555_v57 = vld [vmem:[#allocation5 + $0x3c8] sm:$0xff]  ;;  %v5558_v60 = vcombine.low %v547_v49, %v551_v50 }
  0xd9   : > { %v5557_v53 = vcombine.high %v546_v47, %v550_v48  ;;  %v554_v55 = vld [vmem:[#allocation5 + $0x3c0] sm:$0xff]  ;;  %v559_v58 = vld [vmem:[#allocation5 + $0x3e8] sm:$0xff]  ;;  %v5556_v59 = vcombine.low %v546_v47, %v550_v48 }
  0xda   : > { %v558_v56 = vld [vmem:[#allocation5 + $0x3e0] sm:$0xff]  ;;  %v5567_v62 = vcombine.high %v555_v57, %v559_v58  ;;  %v563_v1 = vld [vmem:[#allocation5 + $0x408] sm:$0xff] }
  0xdb   : > { %2067 = vmatpush1.bf16.msra.mxu0 %v5500_v3  ;;  %2173 = vmatpush1.bf16.msra.mxu1 %v5502_v4  ;;  %v5565_v61 = vcombine.high %v554_v55, %v558_v56  ;;  %v562_v63 = vld [vmem:[#allocation5 + $0x400] sm:$0xff]  ;;  %v567_v2 = vld [vmem:[#allocation5 + $0x428] sm:$0xff]  ;;  %v5564_v3 = vcombine.low %v554_v55, %v558_v56  ;;  %v5566_v4 = vcombine.low %v555_v57, %v559_v58 }
  0xdc   : > { %2068 = vmatprep.subr.bf16.mxu0 %v5509_v5  ;;  %2174 = vmatprep.subr.bf16.mxu1 %v5511_v6  ;;  %v566_v0 = vld [vmem:[#allocation5 + $0x420] sm:$0xff]  ;;  %v5575_v6 = vcombine.high %v563_v1, %v567_v2  ;;  %v571_v10 = vld [vmem:[#allocation5 + $0x448] sm:$0xff] }
  0xdd   : > { %v5573_v5 = vcombine.high %v562_v63, %v566_v0  ;;  %v570_v7 = vld [vmem:[#allocation5 + $0x440] sm:$0xff] }
  0xde   : > { %v574_v8 = vld [vmem:[#allocation5 + $0x460] sm:$0xff] }
  0xdf   : > { %2069 = vmatpush1.bf16.msra.mxu0 %v5508_v11  ;;  %2175 = vmatpush1.bf16.msra.mxu1 %v5510_v12  ;;  %v6379_v9 = vld [vmem:[%s7580_s13] ss:$16 sps:$4 sm:$0xff]   ;;  %v575_v11 = vld [vmem:[#allocation5 + $0x468] sm:$0xff]  ;;  %v5572_v12 = vcombine.low %v562_v63, %v566_v0  ;;  %v6380_v18 = vld [vmem:[%s7580_s13 + $0x24] ss:$16 sps:$4 sm:$0xff]  }
  0xe0   : > { %2070 = vmatprep.subr.bf16.mxu0 %v5517_v13  ;;  %2176 = vmatprep.subr.bf16.mxu1 %v5519_v14  ;;  %v5574_v13 = vcombine.low %v563_v1, %v567_v2  ;;  %v5581_v14 = vcombine.high %v570_v7, %v574_v8  ;;  %v5583_v15 = vcombine.high %v571_v10, %v575_v11  ;;  %v578_v16 = vld [vmem:[#allocation5 + $0x480] sm:$0xff] }
  0xe1   : > { %v582_v17 = vld [vmem:[#allocation5 + $0x4a0] sm:$0xff] }
  0xe2   : > { %v5589_v23 = vcombine.high %v578_v16, %v582_v17  ;;  %v586_v25 = vld [vmem:[#allocation5 + $0x4c0] sm:$0xff] }
  0xe3   : > { %2071 = vmatpush1.bf16.msra.mxu0 %v5516_v19  ;;  %2177 = vmatpush1.bf16.msra.mxu1 %v5518_v20  ;;  %v579_v19 = vld [vmem:[#allocation5 + $0x488] sm:$0xff]  ;;  %v590_v26 = vld [vmem:[#allocation5 + $0x4e0] sm:$0xff] }
  0xe4   : > { %2072 = vmatprep.subr.bf16.mxu0 %v5525_v21  ;;  %2178 = vmatprep.subr.bf16.mxu1 %v5527_v22  ;;  %v583_v20 = vld [vmem:[#allocation5 + $0x4a8] sm:$0xff]  ;;  %v5580_v21 = vcombine.low %v570_v7, %v574_v8  ;;  %v5582_v22 = vcombine.low %v571_v10, %v575_v11  ;;  %v594_v31 = vld [vmem:[#allocation5 + $0x500] sm:$0xff]  ;;  %v5597_v33 = vcombine.high %v586_v25, %v590_v26 }
  0xe5   : > { %v5591_v24 = vcombine.high %v579_v19, %v583_v20  ;;  %v5590_v32 = vcombine.low %v579_v19, %v583_v20  ;;  %v598_v34 = vld [vmem:[#allocation5 + $0x520] sm:$0xff]  ;;  %v5596_v39 = vcombine.low %v586_v25, %v590_v26  ;;  %v643_v20 = vld [vmem:[#allocation5 + $0x688] sm:$0xff] }
  0xe6   : > { %v5605_v41 = vcombine.high %v594_v31, %v598_v34  ;;  %v602_v42 = vld [vmem:[#allocation5 + $0x540] sm:$0xff]  ;;  %v5604_v47 = vcombine.low %v594_v31, %v598_v34 }
  0xe7   : > { %2073 = vmatpush1.bf16.msra.mxu0 %v5524_v27  ;;  %2179 = vmatpush1.bf16.msra.mxu1 %v5526_v28  ;;  %v587_v27 = vld [vmem:[#allocation5 + $0x4c8] sm:$0xff]  ;;  %v610_v50 = vld [vmem:[#allocation5 + $0x580] sm:$0xff] }
  0xe8   : > { %2074 = vmatprep.subr.bf16.mxu0 %v5533_v29  ;;  %2180 = vmatprep.subr.bf16.mxu1 %v5535_v30  ;;  %v591_v28 = vld [vmem:[#allocation5 + $0x4e8] sm:$0xff]  ;;  %v6382_v29 = vld [vmem:[%s7580_s13 + $0x20] ss:$16 sps:$4 sm:$0xff]   ;;  %v5588_v30 = vcombine.low %v578_v16, %v582_v17 }
  0xe9   : > { %v5598_v40 = vcombine.low %v587_v27, %v591_v28  ;;  %v618_v58 = vld [vmem:[#allocation5 + $0x5c0] sm:$0xff] }
  0xea   : > { %v626_v2 = vld [vmem:[#allocation5 + $0x600] sm:$0xff] }
  0xeb   : > { %2075 = vmatpush1.bf16.msra.mxu0 %v5532_v35  ;;  %2181 = vmatpush1.bf16.msra.mxu1 %v5534_v36  ;;  %v595_v35 = vld [vmem:[#allocation5 + $0x508] sm:$0xff]  ;;  %v634_v10 = vld [vmem:[#allocation5 + $0x640] sm:$0xff] }
  0xec   : > { %2076 = vmatprep.subr.bf16.mxu0 %v5541_v37  ;;  %2182 = vmatprep.subr.bf16.mxu1 %v5543_v38  ;;  %v599_v36 = vld [vmem:[#allocation5 + $0x528] sm:$0xff]  ;;  %v5599_v37 = vcombine.high %v587_v27, %v591_v28  ;;  %v638_v11 = vld [vmem:[#allocation5 + $0x660] sm:$0xff] }
  0xed   : > { %v6385_v38 = vld [vmem:[%s7580_s13 + $0xc] ss:$16 sps:$4 sm:$0xff]   ;;  %v5606_v48 = vcombine.low %v595_v35, %v599_v36  ;;  %v5645_v17 = vcombine.high %v634_v10, %v638_v11  ;;  %v646_v19 = vld [vmem:[#allocation5 + $0x6a0] sm:$0xff] }
  0xee   : > { %v650_v26 = vld [vmem:[#allocation5 + $0x6c0] sm:$0xff]  ;;  %v651_v28 = vld [vmem:[#allocation5 + $0x6c8] sm:$0xff] }
  0xef   : > { %2077 = vmatpush1.bf16.msra.mxu0 %v5540_v43  ;;  %2183 = vmatpush1.bf16.msra.mxu1 %v5542_v44  ;;  %v606_v43 = vld [vmem:[#allocation5 + $0x560] sm:$0xff]  ;;  %v603_v44 = vld [vmem:[#allocation5 + $0x548] sm:$0xff] }
  0xf0   : > { %2078 = vmatprep.subr.bf16.mxu0 %v5549_v45  ;;  %2184 = vmatprep.subr.bf16.mxu1 %v5551_v46  ;;  %v5607_v45 = vcombine.high %v595_v35, %v599_v36  ;;  %v607_v46 = vld [vmem:[#allocation5 + $0x568] sm:$0xff]  ;;  %v5613_v49 = vcombine.high %v602_v42, %v606_v43  ;;  %v5612_v55 = vcombine.low %v602_v42, %v606_v43  ;;  %v654_v27 = vld [vmem:[#allocation5 + $0x6e0] sm:$0xff] }
  0xf1   : > { %v5614_v56 = vcombine.low %v603_v44, %v607_v46  ;;  %v658_v34 = vld [vmem:[#allocation5 + $0x700] sm:$0xff]  ;;  %v659_v36 = vld [vmem:[#allocation5 + $0x708] sm:$0xff] }
  0xf2   : > { %v662_v35 = vld [vmem:[#allocation5 + $0x720] sm:$0xff] }
  0xf3   : > { %2079 = vmatpush1.bf16.msra.mxu0 %v5548_v51  ;;  %2185 = vmatpush1.bf16.msra.mxu1 %v5550_v52  ;;  %v614_v51 = vld [vmem:[#allocation5 + $0x5a0] sm:$0xff]  ;;  %v611_v52 = vld [vmem:[#allocation5 + $0x588] sm:$0xff] }
  0xf4   : > { %2080 = vmatprep.subr.bf16.mxu0 %v5557_v53  ;;  %2186 = vmatprep.subr.bf16.mxu1 %v5559_v54  ;;  %v5615_v53 = vcombine.high %v603_v44, %v607_v46  ;;  %v615_v54 = vld [vmem:[#allocation5 + $0x5a8] sm:$0xff]  ;;  %v5621_v57 = vcombine.high %v610_v50, %v614_v51  ;;  %v5620_v63 = vcombine.low %v610_v50, %v614_v51  ;;  %v666_v42 = vld [vmem:[#allocation5 + $0x740] sm:$0xff] }
  0xf5   : > { %v5622_v0 = vcombine.low %v611_v52, %v615_v54  ;;  %v670_v43 = vld [vmem:[#allocation5 + $0x760] sm:$0xff]  ;;  %v667_v44 = vld [vmem:[#allocation5 + $0x748] sm:$0xff] }
  0xf6   : > { %v671_v46 = vld [vmem:[#allocation5 + $0x768] sm:$0xff]  ;;  %v674_v50 = vld [vmem:[#allocation5 + $0x780] sm:$0xff] }
  0xf7   : > { %2081 = vmatpush1.bf16.msra.mxu0 %v5556_v59  ;;  %2187 = vmatpush1.bf16.msra.mxu1 %v5558_v60  ;;  %v622_v59 = vld [vmem:[#allocation5 + $0x5e0] sm:$0xff]  ;;  %v619_v60 = vld [vmem:[#allocation5 + $0x5c8] sm:$0xff] }
  0xf8   : > { %2082 = vmatprep.subr.bf16.mxu0 %v5565_v61  ;;  %2188 = vmatprep.subr.bf16.mxu1 %v5567_v62  ;;  %v5623_v61 = vcombine.high %v611_v52, %v615_v54  ;;  %v623_v62 = vld [vmem:[#allocation5 + $0x5e8] sm:$0xff]  ;;  %v5629_v1 = vcombine.high %v618_v58, %v622_v59  ;;  %v5628_v7 = vcombine.low %v618_v58, %v622_v59  ;;  %v678_v51 = vld [vmem:[#allocation5 + $0x7a0] sm:$0xff] }
  0xf9   : > { %v5630_v8 = vcombine.low %v619_v60, %v623_v62  ;;  %v675_v52 = vld [vmem:[#allocation5 + $0x788] sm:$0xff]  ;;  %v682_v58 = vld [vmem:[#allocation5 + $0x7c0] sm:$0xff] }
  0xfa   : > { %v679_v54 = vld [vmem:[#allocation5 + $0x7a8] sm:$0xff]  ;;  %v686_v59 = vld [vmem:[#allocation5 + $0x7e0] sm:$0xff] }
  0xfb   : > { %2083 = vmatpush1.bf16.msra.mxu0 %v5564_v3  ;;  %2189 = vmatpush1.bf16.msra.mxu1 %v5566_v4  ;;  %v630_v3 = vld [vmem:[#allocation5 + $0x620] sm:$0xff]  ;;  %v627_v4 = vld [vmem:[#allocation5 + $0x608] sm:$0xff] }
  0xfc   : > { %2105 = vmatprep.subr.bf16.mxu0 %v5573_v5  ;;  %2211 = vmatprep.subr.bf16.mxu1 %v5575_v6  ;;  %v5631_v5 = vcombine.high %v619_v60, %v623_v62  ;;  %v631_v6 = vld [vmem:[#allocation5 + $0x628] sm:$0xff] }
  0xfd   : > { %v5638_v16 = vcombine.low %v627_v4, %v631_v6  ;;  %v683_v60 = vld [vmem:[#allocation5 + $0x7c8] sm:$0xff] }
  0xfe   : > { %2085 = vmatmul.mubr.bf16.vlgmr.msra.gmra.mrb[0].mxu0 %v6379_v9  ;;  %2191 = vmatmul.mubr.bf16.vlgmr.msra.gmra.mrb[0].mxu1 %v6379_v9  ;;  %v5637_v9 = vcombine.high %v626_v2, %v630_v3  ;;  %v687_v62 = vld [vmem:[#allocation5 + $0x7e8] sm:$0xff] }
  0xff   : > { %2106 = vmatpush1.bf16.msra.mxu0 %v5572_v12  ;;  %2212 = vmatpush1.bf16.msra.mxu1 %v5574_v13  ;;  %v635_v12 = vld [vmem:[#allocation5 + $0x648] sm:$0xff]  ;;  %v5639_v13 = vcombine.high %v627_v4, %v631_v6  ;;  %v437_v4 = vld [vmem:[#allocation5 + $0x18] sm:$0xff] }
 0x100   : > { %2107 = vmatprep.subr.bf16.mxu0 %v5581_v14  ;;  %2213 = vmatprep.subr.bf16.mxu1 %v5583_v15  ;;  %v639_v14 = vld [vmem:[#allocation5 + $0x668] sm:$0xff]  ;;  %v5636_v15 = vcombine.low %v626_v2, %v630_v3  ;;  %v436_v2 = vld [vmem:[#allocation5 + $0x10] sm:$0xff]  ;;  %v441_v6 = vld [vmem:[#allocation5 + $0x38] sm:$0xff] }
 0x101   : > { %2094 = vmatprep.mubr.bf16.mxu0 %v6380_v18  ;;  %2200 = vmatprep.mubr.bf16.mxu1 %v6380_v18  ;;  %v642_v18 = vld [vmem:[#allocation5 + $0x680] sm:$0xff]  ;;  %v440_v3 = vld [vmem:[#allocation5 + $0x30] sm:$0xff] }
 0x102   : > { %v5653_v25 = vcombine.high %v642_v18, %v646_v19  ;;  %v5652_v31 = vcombine.low %v642_v18, %v646_v19  ;;  %v452_v18 = vld [vmem:[#allocation5 + $0x90] sm:$0xff] }
 0x103   : > { %2108 = vmatpush1.bf16.msra.mxu0 %v5580_v21  ;;  %2214 = vmatpush1.bf16.msra.mxu1 %v5582_v22  ;;  %v5647_v21 = vcombine.high %v635_v12, %v639_v14  ;;  %v647_v22 = vld [vmem:[#allocation5 + $0x6a8] sm:$0xff]  ;;  %v456_v19 = vld [vmem:[#allocation5 + $0xb0] sm:$0xff] }
 0x104   : > { %2109 = vmatprep.subr.bf16.mxu0 %v5589_v23  ;;  %2215 = vmatprep.subr.bf16.mxu1 %v5591_v24  ;;  %v5644_v23 = vcombine.low %v634_v10, %v638_v11  ;;  %v5646_v24 = vcombine.low %v635_v12, %v639_v14  ;;  %v5449_v10 = vcombine.high %v436_v2, %v440_v3  ;;  %v444_v11 = vld [vmem:[#allocation5 + $0x50] sm:$0xff] }
 0x105   : > { %v448_v12 = vld [vmem:[#allocation5 + $0x70] sm:$0xff]  ;;  %v5451_v14 = vcombine.high %v437_v4, %v441_v6 }
 0x106   : > { %2095 = vmatmul.mubr.bf16.gmra.mrb[4].mxu0 %v6382_v29  ;;  %2201 = vmatmul.mubr.bf16.gmra.mrb[4].mxu1 %v6382_v29  ;;  %v5655_v29 = vcombine.high %v643_v20, %v647_v22 }
 0x107   : > { %2110 = vmatpush1.bf16.msra.mxu0 %v5588_v30  ;;  %2216 = vmatpush1.bf16.msra.mxu1 %v5590_v32  ;;  %v655_v30 = vld [vmem:[#allocation5 + $0x6e8] sm:$0xff]  ;;  %v5654_v32 = vcombine.low %v643_v20, %v647_v22  ;;  %v5450_v20 = vcombine.low %v437_v4, %v441_v6  ;;  %v453_v22 = vld [vmem:[#allocation5 + $0x98] sm:$0xff] }
 0x108   : > { %2111 = vmatprep.subr.bf16.mxu0 %v5597_v33  ;;  %2217 = vmatprep.subr.bf16.mxu1 %v5599_v37  ;;  %v5661_v33 = vcombine.high %v650_v26, %v654_v27  ;;  %v5663_v37 = vcombine.high %v651_v28, %v655_v30 }
 0x109   : > { %2137 = vmatprep.mubr.bf16.mxu0 %v6385_v38  ;;  %2243 = vmatprep.mubr.bf16.mxu1 %v6385_v38  ;;  %v663_v38 = vld [vmem:[#allocation5 + $0x728] sm:$0xff] }
 0x10b   : > { %2112 = vmatpush1.bf16.msra.mxu0 %v5596_v39  ;;  %2218 = vmatpush1.bf16.msra.mxu1 %v5598_v40  ;;  %v5660_v39 = vcombine.low %v650_v26, %v654_v27  ;;  %v5662_v40 = vcombine.low %v651_v28, %v655_v30  ;;  %v460_v26 = vld [vmem:[#allocation5 + $0xd0] sm:$0xff]  ;;  %v5465_v30 = vcombine.high %v452_v18, %v456_v19 }
 0x10c   : > { %2113 = vmatprep.subr.bf16.mxu0 %v5605_v41  ;;  %2219 = vmatprep.subr.bf16.mxu1 %v5607_v45  ;;  %v5669_v41 = vcombine.high %v658_v34, %v662_v35  ;;  %v5671_v45 = vcombine.high %v659_v36, %v663_v38  ;;  %v464_v27 = vld [vmem:[#allocation5 + $0xf0] sm:$0xff] }
 0x10f   : > { %2114 = vmatpush1.bf16.msra.mxu0 %v5604_v47  ;;  %2220 = vmatpush1.bf16.msra.mxu1 %v5606_v48  ;;  %v5668_v47 = vcombine.low %v658_v34, %v662_v35  ;;  %v5670_v48 = vcombine.low %v659_v36, %v663_v38  ;;  %v5464_v34 = vcombine.low %v452_v18, %v456_v19  ;;  %v468_v35 = vld [vmem:[#allocation5 + $0x110] sm:$0xff]  ;;  %v513_v18 = vld [vmem:[#allocation5 + $0x278] sm:$0xff] }
 0x110   : > { %2115 = vmatprep.subr.bf16.mxu0 %v5613_v49  ;;  %2221 = vmatprep.subr.bf16.mxu1 %v5615_v53  ;;  %v5677_v49 = vcombine.high %v666_v42, %v670_v43  ;;  %v5679_v53 = vcombine.high %v667_v44, %v671_v46  ;;  %v472_v36 = vld [vmem:[#allocation5 + $0x130] sm:$0xff]  ;;  %v5473_v38 = vcombine.high %v460_v26, %v464_v27 }
 0x113   : > { %2116 = vmatpush1.bf16.msra.mxu0 %v5612_v55  ;;  %2222 = vmatpush1.bf16.msra.mxu1 %v5614_v56  ;;  %v5676_v55 = vcombine.low %v666_v42, %v670_v43  ;;  %v5678_v56 = vcombine.low %v667_v44, %v671_v46  ;;  %v5472_v42 = vcombine.low %v460_v26, %v464_v27  ;;  %v476_v46 = vld [vmem:[#allocation5 + $0x150] sm:$0xff]  ;;  %v521_v26 = vld [vmem:[#allocation5 + $0x2b8] sm:$0xff] }
 0x114   : > { %2117 = vmatprep.subr.bf16.mxu0 %v5621_v57  ;;  %2223 = vmatprep.subr.bf16.mxu1 %v5623_v61  ;;  %v5685_v57 = vcombine.high %v674_v50, %v678_v51  ;;  %v5687_v61 = vcombine.high %v675_v52, %v679_v54  ;;  %v5481_v44 = vcombine.high %v468_v35, %v472_v36 }
 0x117   : > { %2118 = vmatpush1.bf16.msra.mxu0 %v5620_v63  ;;  %2224 = vmatpush1.bf16.msra.mxu1 %v5622_v0  ;;  %v5684_v63 = vcombine.low %v674_v50, %v678_v51  ;;  %v5686_v0 = vcombine.low %v675_v52, %v679_v54  ;;  %v481_v50 = vld [vmem:[#allocation5 + $0x178] sm:$0xff]  ;;  %v5480_v51 = vcombine.low %v468_v35, %v472_v36  ;;  %v532_v36 = vld [vmem:[#allocation5 + $0x310] sm:$0xff] }
 0x118   : > { %2119 = vmatprep.subr.bf16.mxu0 %v5629_v1  ;;  %2225 = vmatprep.subr.bf16.mxu1 %v5631_v5  ;;  %v5693_v1 = vcombine.high %v682_v58, %v686_v59  ;;  %v5695_v5 = vcombine.high %v683_v60, %v687_v62 }
 0x11b   : > { %2120 = vmatpush1.bf16.msra.mxu0 %v5628_v7  ;;  %2226 = vmatpush1.bf16.msra.mxu1 %v5630_v8  ;;  %v5692_v7 = vcombine.low %v682_v58, %v686_v59  ;;  %v5694_v8 = vcombine.low %v683_v60, %v687_v62  ;;  %v489_v58 = vld [vmem:[#allocation5 + $0x1b8] sm:$0xff] }
 0x11c   : > { %2121 = vmatprep.subr.bf16.mxu0 %v5637_v9  ;;  %2227 = vmatprep.subr.bf16.mxu1 %v5639_v13  ;;  %v6383_v9 = vld [vmem:[%s7580_s13 + $0x8] ss:$16 sps:$4 sm:$0xff]  }
 0x11d   : > { %v445_v13 = vld [vmem:[#allocation5 + $0x58] sm:$0xff] }
 0x11f   : > { %2122 = vmatpush1.bf16.msra.mxu0 %v5636_v15  ;;  %2228 = vmatpush1.bf16.msra.mxu1 %v5638_v16  ;;  %v449_v15 = vld [vmem:[#allocation5 + $0x78] sm:$0xff]  ;;  %v5448_v16 = vcombine.low %v436_v2, %v440_v3 }
 0x120   : > { %2123 = vmatprep.subr.bf16.mxu0 %v5645_v17  ;;  %2229 = vmatprep.subr.bf16.mxu1 %v5647_v21  ;;  %v6386_v17 = vld [vmem:[%s7580_s13 + $0x2c] ss:$16 sps:$4 sm:$0xff]   ;;  %v5457_v21 = vcombine.high %v444_v11, %v448_v12  ;;  %v5458_v28 = vcombine.low %v445_v13, %v449_v15 }
 0x121   : > { %v497_v2 = vld [vmem:[#allocation5 + $0x1f8] sm:$0xff] }
 0x123   : > { %2124 = vmatpush1.bf16.msra.mxu0 %v5644_v23  ;;  %2230 = vmatpush1.bf16.msra.mxu1 %v5646_v24  ;;  %v457_v23 = vld [vmem:[#allocation5 + $0xb8] sm:$0xff]  ;;  %v5459_v24 = vcombine.high %v445_v13, %v449_v15  ;;  %v508_v15 = vld [vmem:[#allocation5 + $0x250] sm:$0xff] }
 0x124   : > { %2125 = vmatprep.subr.bf16.mxu0 %v5653_v25  ;;  %2231 = vmatprep.subr.bf16.mxu1 %v5655_v29  ;;  %v5456_v25 = vcombine.low %v444_v11, %v448_v12  ;;  %v6388_v29 = vld [vmem:[%s7580_s13 + $0x28] ss:$16 sps:$4 sm:$0xff]  }
 0x127   : > { %2126 = vmatpush1.bf16.msra.mxu0 %v5652_v31  ;;  %2232 = vmatpush1.bf16.msra.mxu1 %v5654_v32  ;;  %v461_v31 = vld [vmem:[#allocation5 + $0xd8] sm:$0xff] }
 0x128   : > { %2127 = vmatprep.subr.bf16.mxu0 %v5661_v33  ;;  %2233 = vmatprep.subr.bf16.mxu1 %v5663_v37  ;;  %v465_v32 = vld [vmem:[#allocation5 + $0xf8] sm:$0xff]  ;;  %v5467_v33 = vcombine.high %v453_v22, %v457_v23  ;;  %v5466_v37 = vcombine.low %v453_v22, %v457_v23 }
 0x129   : > { %v5474_v43 = vcombine.low %v461_v31, %v465_v32 }
 0x12b   : > { %2128 = vmatpush1.bf16.msra.mxu0 %v5660_v39  ;;  %2234 = vmatpush1.bf16.msra.mxu1 %v5662_v40  ;;  %v469_v39 = vld [vmem:[#allocation5 + $0x118] sm:$0xff] }
 0x12c   : > { %2129 = vmatprep.subr.bf16.mxu0 %v5669_v41  ;;  %2235 = vmatprep.subr.bf16.mxu1 %v5671_v45  ;;  %v473_v40 = vld [vmem:[#allocation5 + $0x138] sm:$0xff]  ;;  %v5475_v41 = vcombine.high %v461_v31, %v465_v32 }
 0x12d   : > { %v5483_v45 = vcombine.high %v469_v39, %v473_v40  ;;  %v5482_v52 = vcombine.low %v469_v39, %v473_v40  ;;  %v525_v32 = vld [vmem:[#allocation5 + $0x2d8] sm:$0xff] }
 0x12e   : > { %v533_v40 = vld [vmem:[#allocation5 + $0x318] sm:$0xff] }
 0x12f   : > { %2130 = vmatpush1.bf16.msra.mxu0 %v5668_v47  ;;  %2236 = vmatpush1.bf16.msra.mxu1 %v5670_v48  ;;  %v480_v47 = vld [vmem:[#allocation5 + $0x170] sm:$0xff] }
 0x130   : > { %2131 = vmatprep.subr.bf16.mxu0 %v5677_v49  ;;  %2237 = vmatprep.subr.bf16.mxu1 %v5679_v53  ;;  %v7021_v48 = vld [vmem:[%s7580_s13 + $0x4] ss:$16 sps:$4 sm:$0xff]   ;;  %v477_v49 = vld [vmem:[#allocation5 + $0x158] sm:$0xff]  ;;  %v5489_v53 = vcombine.high %v476_v46, %v480_v47  ;;  %v5488_v59 = vcombine.low %v476_v46, %v480_v47 }
 0x131   : > { %v5491_v54 = vcombine.high %v477_v49, %v481_v50  ;;  %v5490_v60 = vcombine.low %v477_v49, %v481_v50  ;;  %v545_v49 = vld [vmem:[#allocation5 + $0x378] sm:$0xff] }
 0x133   : > { %2132 = vmatpush1.bf16.msra.mxu0 %v5676_v55  ;;  %2238 = vmatpush1.bf16.msra.mxu1 %v5678_v56  ;;  %v484_v55 = vld [vmem:[#allocation5 + $0x190] sm:$0xff] }
 0x134   : > { %2133 = vmatprep.subr.bf16.mxu0 %v5685_v57  ;;  %2239 = vmatprep.subr.bf16.mxu1 %v5687_v61  ;;  %v488_v56 = vld [vmem:[#allocation5 + $0x1b0] sm:$0xff]  ;;  %v485_v57 = vld [vmem:[#allocation5 + $0x198] sm:$0xff] }
 0x135   : > { %v5497_v61 = vcombine.high %v484_v55, %v488_v56  ;;  %v5499_v62 = vcombine.high %v485_v57, %v489_v58  ;;  %v5496_v3 = vcombine.low %v484_v55, %v488_v56  ;;  %v5498_v4 = vcombine.low %v485_v57, %v489_v58  ;;  %v549_v56 = vld [vmem:[#allocation5 + $0x398] sm:$0xff] }
 0x136   : > { %v553_v57 = vld [vmem:[#allocation5 + $0x3b8] sm:$0xff] }
 0x137   : > { %2134 = vmatpush1.bf16.msra.mxu0 %v5684_v63  ;;  %2240 = vmatpush1.bf16.msra.mxu1 %v5686_v0  ;;  %v492_v63 = vld [vmem:[#allocation5 + $0x1d0] sm:$0xff] }
 0x138   : > { %2135 = vmatprep.subr.bf16.mxu0 %v5693_v1  ;;  %2241 = vmatprep.subr.bf16.mxu1 %v5695_v5  ;;  %v496_v0 = vld [vmem:[#allocation5 + $0x1f0] sm:$0xff]  ;;  %v493_v1 = vld [vmem:[#allocation5 + $0x1d8] sm:$0xff] }
 0x139   : > { %v5505_v5 = vcombine.high %v492_v63, %v496_v0  ;;  %v5507_v6 = vcombine.high %v493_v1, %v497_v2  ;;  %v5504_v11 = vcombine.low %v492_v63, %v496_v0  ;;  %v5506_v12 = vcombine.low %v493_v1, %v497_v2  ;;  %v557_v0 = vld [vmem:[#allocation5 + $0x3d8] sm:$0xff] }
 0x13a   : > { %v561_v1 = vld [vmem:[#allocation5 + $0x3f8] sm:$0xff]  ;;  %v5563_v2 = vcombine.high %v549_v56, %v553_v57 }
 0x13b   : > { %2136 = vmatpush1.bf16.msra.mxu0 %v5692_v7  ;;  %2242 = vmatpush1.bf16.msra.mxu1 %v5694_v8  ;;  %v500_v7 = vld [vmem:[#allocation5 + $0x210] sm:$0xff] }
 0x13c   : > { %2264 = vmatprep.subr.bf16.mxu0 %v5449_v10  ;;  %2370 = vmatprep.subr.bf16.mxu1 %v5451_v14  ;;  %v504_v8 = vld [vmem:[#allocation5 + $0x230] sm:$0xff]  ;;  %v505_v10 = vld [vmem:[#allocation5 + $0x238] sm:$0xff] }
 0x13d   : > { %v5513_v13 = vcombine.high %v500_v7, %v504_v8  ;;  %v5512_v19 = vcombine.low %v500_v7, %v504_v8  ;;  %v565_v8 = vld [vmem:[#allocation5 + $0x418] sm:$0xff] }
 0x13e   : > { %2138 = vmatmul.mubr.bf16.vlgmr.msra.gmra.mrb[0].mxu0 %v6383_v9  ;;  %2244 = vmatmul.mubr.bf16.vlgmr.msra.gmra.mrb[0].mxu1 %v6383_v9  ;;  %v501_v9 = vld [vmem:[#allocation5 + $0x218] sm:$0xff] }
 0x13f   : > { %2265 = vmatpush1.bf16.msra.mxu0 %v5448_v16  ;;  %2371 = vmatpush1.bf16.msra.mxu1 %v5450_v20  ;;  %v5515_v14 = vcombine.high %v501_v9, %v505_v10  ;;  %v512_v16 = vld [vmem:[#allocation5 + $0x270] sm:$0xff]  ;;  %v5514_v22 = vcombine.low %v501_v9, %v505_v10  ;;  %v569_v9 = vld [vmem:[#allocation5 + $0x438] sm:$0xff]  ;;  %v5571_v10 = vcombine.high %v557_v0, %v561_v1 }
 0x140   : > { %2266 = vmatprep.subr.bf16.mxu0 %v5457_v21  ;;  %2372 = vmatprep.subr.bf16.mxu1 %v5459_v24  ;;  %v516_v20 = vld [vmem:[#allocation5 + $0x290] sm:$0xff]  ;;  %v5521_v23 = vcombine.high %v508_v15, %v512_v16  ;;  %v517_v24 = vld [vmem:[#allocation5 + $0x298] sm:$0xff]  ;;  %v5520_v27 = vcombine.low %v508_v15, %v512_v16 }
 0x141   : > { %2147 = vmatprep.mubr.bf16.mxu0 %v6386_v17  ;;  %2253 = vmatprep.mubr.bf16.mxu1 %v6386_v17  ;;  %v509_v17 = vld [vmem:[#allocation5 + $0x258] sm:$0xff]  ;;  %v520_v21 = vld [vmem:[#allocation5 + $0x2b0] sm:$0xff] }
 0x142   : > { %v5529_v31 = vcombine.high %v516_v20, %v520_v21  ;;  %v5528_v35 = vcombine.low %v516_v20, %v520_v21  ;;  %v573_v16 = vld [vmem:[#allocation5 + $0x458] sm:$0xff]  ;;  %v580_v20 = vld [vmem:[#allocation5 + $0x490] sm:$0xff] }
 0x143   : > { %2267 = vmatpush1.bf16.msra.mxu0 %v5456_v25  ;;  %2373 = vmatpush1.bf16.msra.mxu1 %v5458_v28  ;;  %v5523_v25 = vcombine.high %v509_v17, %v513_v18  ;;  %v524_v28 = vld [vmem:[#allocation5 + $0x2d0] sm:$0xff] }
 0x144   : > { %2268 = vmatprep.subr.bf16.mxu0 %v5465_v30  ;;  %2374 = vmatprep.subr.bf16.mxu1 %v5467_v33  ;;  %v5522_v30 = vcombine.low %v509_v17, %v513_v18  ;;  %v529_v33 = vld [vmem:[#allocation5 + $0x2f8] sm:$0xff]  ;;  %v5579_v18 = vcombine.high %v565_v8, %v569_v9  ;;  %v584_v21 = vld [vmem:[#allocation5 + $0x4b0] sm:$0xff] }
 0x145   : > { %v5538_v46 = vcombine.low %v525_v32, %v529_v33  ;;  %v577_v17 = vld [vmem:[#allocation5 + $0x478] sm:$0xff] }
 0x146   : > { %2148 = vmatmul.mubr.bf16.gmra.mrb[4].mxu0 %v6388_v29  ;;  %2254 = vmatmul.mubr.bf16.gmra.mrb[4].mxu1 %v6388_v29  ;;  %v528_v29 = vld [vmem:[#allocation5 + $0x2f0] sm:$0xff] }
 0x147   : > { %2269 = vmatpush1.bf16.msra.mxu0 %v5464_v34  ;;  %2375 = vmatpush1.bf16.msra.mxu1 %v5466_v37  ;;  %v5531_v34 = vcombine.high %v517_v24, %v521_v26  ;;  %v536_v37 = vld [vmem:[#allocation5 + $0x330] sm:$0xff]  ;;  %v5537_v39 = vcombine.high %v524_v28, %v528_v29 }
 0x148   : > { %2270 = vmatprep.subr.bf16.mxu0 %v5473_v38  ;;  %2376 = vmatprep.subr.bf16.mxu1 %v5475_v41  ;;  %v5530_v38 = vcombine.low %v517_v24, %v521_v26  ;;  %v537_v41 = vld [vmem:[#allocation5 + $0x338] sm:$0xff]  ;;  %v5545_v47 = vcombine.high %v532_v36, %v536_v37  ;;  %v5587_v26 = vcombine.high %v573_v16, %v577_v17 }
 0x149   : > { %2296 = vmatprep.mubr.bf16.mxu0 %v7021_v48  ;;  %2402 = vmatprep.mubr.bf16.mxu1 %v7021_v48  ;;  %v541_v48 = vld [vmem:[#allocation5 + $0x358] sm:$0xff]  ;;  %v5547_v50 = vcombine.high %v533_v40, %v537_v41 }
 0x14a   : > { %v5555_v58 = vcombine.high %v541_v48, %v545_v49  ;;  %v581_v24 = vld [vmem:[#allocation5 + $0x498] sm:$0xff] }
 0x14b   : > { %2271 = vmatpush1.bf16.msra.mxu0 %v5472_v42  ;;  %2377 = vmatpush1.bf16.msra.mxu1 %v5474_v43  ;;  %v5539_v42 = vcombine.high %v525_v32, %v529_v33  ;;  %v5536_v43 = vcombine.low %v524_v28, %v528_v29  ;;  %v588_v29 = vld [vmem:[#allocation5 + $0x4d0] sm:$0xff]  ;;  %v5593_v32 = vcombine.high %v580_v20, %v584_v21  ;;  %v589_v33 = vld [vmem:[#allocation5 + $0x4d8] sm:$0xff] }
 0x14c   : > { %2272 = vmatprep.subr.bf16.mxu0 %v5481_v44  ;;  %2378 = vmatprep.subr.bf16.mxu1 %v5483_v45  ;;  %v540_v44 = vld [vmem:[#allocation5 + $0x350] sm:$0xff] }
 0x14d   : > { %v544_v45 = vld [vmem:[#allocation5 + $0x370] sm:$0xff] }
 0x14e   : > { %v5553_v55 = vcombine.high %v540_v44, %v544_v45 }
 0x14f   : > { %2273 = vmatpush1.bf16.msra.mxu0 %v5480_v51  ;;  %2379 = vmatpush1.bf16.msra.mxu1 %v5482_v52  ;;  %v5544_v51 = vcombine.low %v532_v36, %v536_v37  ;;  %v548_v52 = vld [vmem:[#allocation5 + $0x390] sm:$0xff]  ;;  %v5592_v37 = vcombine.low %v580_v20, %v584_v21  ;;  %v637_v21 = vld [vmem:[#allocation5 + $0x658] sm:$0xff] }
 0x150   : > { %2274 = vmatprep.subr.bf16.mxu0 %v5489_v53  ;;  %2380 = vmatprep.subr.bf16.mxu1 %v5491_v54  ;;  %v552_v53 = vld [vmem:[#allocation5 + $0x3b0] sm:$0xff]  ;;  %v5546_v54 = vcombine.low %v533_v40, %v537_v41 }
 0x151   : > { %v5561_v63 = vcombine.high %v548_v52, %v552_v53  ;;  %v7023_v36 = vld [vmem:[%s7580_s13 + $0x24] ss:$16 sps:$4 sm:$0xff]  }
 0x152   : > { %v640_v20 = vld [vmem:[#allocation5 + $0x670] sm:$0xff] }
 0x153   : > { %2275 = vmatpush1.bf16.msra.mxu0 %v5488_v59  ;;  %2381 = vmatpush1.bf16.msra.mxu1 %v5490_v60  ;;  %v5552_v59 = vcombine.low %v540_v44, %v544_v45  ;;  %v556_v60 = vld [vmem:[#allocation5 + $0x3d0] sm:$0xff] }
 0x154   : > { %2276 = vmatprep.subr.bf16.mxu0 %v5497_v61  ;;  %2382 = vmatprep.subr.bf16.mxu1 %v5499_v62  ;;  %v560_v61 = vld [vmem:[#allocation5 + $0x3f0] sm:$0xff]  ;;  %v5554_v62 = vcombine.low %v541_v48, %v545_v49 }
 0x155   : > { %v5569_v7 = vcombine.high %v556_v60, %v560_v61  ;;  %v7024_v45 = vld [vmem:[%s7580_s13 + $0x20] ss:$16 sps:$4 sm:$0xff]  }
 0x156   : > { %v608_v48 = vld [vmem:[#allocation5 + $0x570] sm:$0xff] }
 0x157   : > { %2277 = vmatpush1.bf16.msra.mxu0 %v5496_v3  ;;  %2383 = vmatpush1.bf16.msra.mxu1 %v5498_v4  ;;  %v5560_v3 = vcombine.low %v548_v52, %v552_v53  ;;  %v564_v4 = vld [vmem:[#allocation5 + $0x410] sm:$0xff]  ;;  %v609_v52 = vld [vmem:[#allocation5 + $0x578] sm:$0xff] }
 0x158   : > { %2278 = vmatprep.subr.bf16.mxu0 %v5505_v5  ;;  %2384 = vmatprep.subr.bf16.mxu1 %v5507_v6  ;;  %v568_v5 = vld [vmem:[#allocation5 + $0x430] sm:$0xff]  ;;  %v5562_v6 = vcombine.low %v549_v56, %v553_v57 }
 0x159   : > { %v5577_v15 = vcombine.high %v564_v4, %v568_v5  ;;  %v612_v56 = vld [vmem:[#allocation5 + $0x590] sm:$0xff] }
 0x15a   : > { %v616_v57 = vld [vmem:[#allocation5 + $0x5b0] sm:$0xff] }
 0x15b   : > { %2279 = vmatpush1.bf16.msra.mxu0 %v5504_v11  ;;  %2385 = vmatpush1.bf16.msra.mxu1 %v5506_v12  ;;  %v5568_v11 = vcombine.low %v556_v60, %v560_v61  ;;  %v572_v12 = vld [vmem:[#allocation5 + $0x450] sm:$0xff]  ;;  %v613_v60 = vld [vmem:[#allocation5 + $0x598] sm:$0xff] }
 0x15c   : > { %2280 = vmatprep.subr.bf16.mxu0 %v5513_v13  ;;  %2386 = vmatprep.subr.bf16.mxu1 %v5515_v14  ;;  %v576_v13 = vld [vmem:[#allocation5 + $0x470] sm:$0xff]  ;;  %v5570_v14 = vcombine.low %v557_v0, %v561_v1  ;;  %v617_v61 = vld [vmem:[#allocation5 + $0x5b8] sm:$0xff]  ;;  %v5625_v1 = vcombine.high %v612_v56, %v616_v57 }
 0x15d   : > { %v5584_v28 = vcombine.low %v572_v12, %v576_v13 }
 0x15f   : > { %2281 = vmatpush1.bf16.msra.mxu0 %v5512_v19  ;;  %2387 = vmatpush1.bf16.msra.mxu1 %v5514_v22  ;;  %v5576_v19 = vcombine.low %v564_v4, %v568_v5  ;;  %v5578_v22 = vcombine.low %v565_v8, %v569_v9  ;;  %v624_v4 = vld [vmem:[#allocation5 + $0x5f0] sm:$0xff]  ;;  %v621_v5 = vld [vmem:[#allocation5 + $0x5d8] sm:$0xff]  ;;  %v5626_v8 = vcombine.low %v613_v60, %v617_v61 }
 0x160   : > { %2282 = vmatprep.subr.bf16.mxu0 %v5521_v23  ;;  %2388 = vmatprep.subr.bf16.mxu1 %v5523_v25  ;;  %v5585_v23 = vcombine.high %v572_v12, %v576_v13  ;;  %v585_v25 = vld [vmem:[#allocation5 + $0x4b8] sm:$0xff]  ;;  %v632_v12 = vld [vmem:[#allocation5 + $0x630] sm:$0xff] }
 0x161   : > { %v5594_v40 = vcombine.low %v581_v24, %v585_v25  ;;  %v629_v13 = vld [vmem:[#allocation5 + $0x618] sm:$0xff] }
 0x163   : > { %2283 = vmatpush1.bf16.msra.mxu0 %v5520_v27  ;;  %2389 = vmatpush1.bf16.msra.mxu1 %v5522_v30  ;;  %v7022_v27 = vld [vmem:[%s7580_s13] ss:$16 sps:$4 sm:$0xff]  }
 0x164   : > { %2284 = vmatprep.subr.bf16.mxu0 %v5529_v31  ;;  %2390 = vmatprep.subr.bf16.mxu1 %v5531_v34  ;;  %v592_v30 = vld [vmem:[#allocation5 + $0x4f0] sm:$0xff]  ;;  %v5586_v31 = vcombine.low %v573_v16, %v577_v17  ;;  %v593_v34 = vld [vmem:[#allocation5 + $0x4f8] sm:$0xff] }
 0x165   : > { %v5601_v41 = vcombine.high %v588_v29, %v592_v30  ;;  %v5603_v44 = vcombine.high %v589_v33, %v593_v34  ;;  %v5602_v49 = vcombine.low %v589_v33, %v593_v34 }
 0x167   : > { %2285 = vmatpush1.bf16.msra.mxu0 %v5528_v35  ;;  %2391 = vmatpush1.bf16.msra.mxu1 %v5530_v38  ;;  %v5595_v35 = vcombine.high %v581_v24, %v585_v25  ;;  %v596_v38 = vld [vmem:[#allocation5 + $0x510] sm:$0xff] }
 0x168   : > { %2286 = vmatprep.subr.bf16.mxu0 %v5537_v39  ;;  %2392 = vmatprep.subr.bf16.mxu1 %v5539_v42  ;;  %v600_v39 = vld [vmem:[#allocation5 + $0x530] sm:$0xff]  ;;  %v597_v42 = vld [vmem:[#allocation5 + $0x518] sm:$0xff] }
 0x16b   : > { %2287 = vmatpush1.bf16.msra.mxu0 %v5536_v43  ;;  %2393 = vmatpush1.bf16.msra.mxu1 %v5538_v46  ;;  %v601_v43 = vld [vmem:[#allocation5 + $0x538] sm:$0xff]  ;;  %v5600_v46 = vcombine.low %v588_v29, %v592_v30 }
 0x16c   : > { %2288 = vmatprep.subr.bf16.mxu0 %v5545_v47  ;;  %2394 = vmatprep.subr.bf16.mxu1 %v5547_v50  ;;  %v604_v47 = vld [vmem:[#allocation5 + $0x550] sm:$0xff]  ;;  %v5609_v50 = vcombine.high %v596_v38, %v600_v39  ;;  %v5611_v53 = vcombine.high %v597_v42, %v601_v43  ;;  %v645_v29 = vld [vmem:[#allocation5 + $0x698] sm:$0xff] }
 0x16d   : > { %v649_v30 = vld [vmem:[#allocation5 + $0x6b8] sm:$0xff] }
 0x16e   : > { %v5659_v34 = vcombine.high %v645_v29, %v649_v30 }
 0x16f   : > { %2289 = vmatpush1.bf16.msra.mxu0 %v5544_v51  ;;  %2395 = vmatpush1.bf16.msra.mxu1 %v5546_v54  ;;  %v605_v51 = vld [vmem:[#allocation5 + $0x558] sm:$0xff] }
 0x170   : > { %2290 = vmatprep.subr.bf16.mxu0 %v5553_v55  ;;  %2396 = vmatprep.subr.bf16.mxu1 %v5555_v58  ;;  %v7025_v54 = vld [vmem:[%s7580_s13 + $0xc] ss:$16 sps:$4 sm:$0xff]   ;;  %v5608_v55 = vcombine.low %v596_v38, %v600_v39  ;;  %v5610_v58 = vcombine.low %v597_v42, %v601_v43  ;;  %v5618_v0 = vcombine.low %v605_v51, %v609_v52  ;;  %v660_v43 = vld [vmem:[#allocation5 + $0x710] sm:$0xff] }
 0x171   : > { %v657_v38 = vld [vmem:[#allocation5 + $0x6f8] sm:$0xff] }
 0x173   : > { %2291 = vmatpush1.bf16.msra.mxu0 %v5552_v59  ;;  %2397 = vmatpush1.bf16.msra.mxu1 %v5554_v62  ;;  %v5617_v59 = vcombine.high %v604_v47, %v608_v48  ;;  %v5619_v62 = vcombine.high %v605_v51, %v609_v52  ;;  %v668_v51 = vld [vmem:[#allocation5 + $0x750] sm:$0xff] }
 0x174   : > { %2292 = vmatprep.subr.bf16.mxu0 %v5561_v63  ;;  %2398 = vmatprep.subr.bf16.mxu1 %v5563_v2  ;;  %v5616_v63 = vcombine.low %v604_v47, %v608_v48  ;;  %v5627_v2 = vcombine.high %v613_v60, %v617_v61  ;;  %v672_v52 = vld [vmem:[#allocation5 + $0x770] sm:$0xff]  ;;  %v677_v61 = vld [vmem:[#allocation5 + $0x798] sm:$0xff] }
 0x175   : > { %v680_v60 = vld [vmem:[#allocation5 + $0x7b0] sm:$0xff] }
 0x177   : > { %2293 = vmatpush1.bf16.msra.mxu0 %v5560_v3  ;;  %2399 = vmatpush1.bf16.msra.mxu1 %v5562_v6  ;;  %v620_v3 = vld [vmem:[#allocation5 + $0x5d0] sm:$0xff]  ;;  %v625_v6 = vld [vmem:[#allocation5 + $0x5f8] sm:$0xff] }
 0x178   : > { %2294 = vmatprep.subr.bf16.mxu0 %v5569_v7  ;;  %2400 = vmatprep.subr.bf16.mxu1 %v5571_v10  ;;  %v5624_v7 = vcombine.low %v612_v56, %v616_v57  ;;  %v5633_v9 = vcombine.high %v620_v3, %v624_v4  ;;  %v5635_v10 = vcombine.high %v621_v5, %v625_v6 }
 0x179   : > { %v5634_v16 = vcombine.low %v621_v5, %v625_v6  ;;  %v5681_v57 = vcombine.high %v668_v51, %v672_v52  ;;  %v685_v5 = vld [vmem:[#allocation5 + $0x7d8] sm:$0xff] }
 0x17a   : > { %v689_v6 = vld [vmem:[#allocation5 + $0x7f8] sm:$0xff] }
 0x17b   : > { %2295 = vmatpush1.bf16.msra.mxu0 %v5568_v11  ;;  %2401 = vmatpush1.bf16.msra.mxu1 %v5570_v14  ;;  %v628_v11 = vld [vmem:[#allocation5 + $0x610] sm:$0xff]  ;;  %v633_v14 = vld [vmem:[#allocation5 + $0x638] sm:$0xff] }
 0x17c   : > { %2317 = vmatprep.subr.bf16.mxu0 %v5577_v15  ;;  %2423 = vmatprep.subr.bf16.mxu1 %v5579_v18  ;;  %v5632_v15 = vcombine.low %v620_v3, %v624_v4  ;;  %v5641_v17 = vcombine.high %v628_v11, %v632_v12  ;;  %v5643_v18 = vcombine.high %v629_v13, %v633_v14  ;;  %v684_v3 = vld [vmem:[#allocation5 + $0x7d0] sm:$0xff] }
 0x17d   : > { %v5642_v24 = vcombine.low %v629_v13, %v633_v14  ;;  %v688_v4 = vld [vmem:[#allocation5 + $0x7f0] sm:$0xff]  ;;  %v6391_v13 = vld [vmem:[#allocation8 + $0x4] ss:$16 sps:$4 sm:$0xff]  }
 0x17e   : > { %2297 = vmatmul.mubr.bf16.vlgmr.msra.gmra.mrb[8].mxu0 %v7022_v27  ;;  %2403 = vmatmul.mubr.bf16.vlgmr.msra.gmra.mrb[8].mxu1 %v7022_v27  ;;  %v644_v27 = vld [vmem:[#allocation5 + $0x690] sm:$0xff] }
 0x17f   : > { %2318 = vmatpush1.bf16.msra.mxu0 %v5576_v19  ;;  %2424 = vmatpush1.bf16.msra.mxu1 %v5578_v22  ;;  %v636_v19 = vld [vmem:[#allocation5 + $0x650] sm:$0xff]  ;;  %v641_v22 = vld [vmem:[#allocation5 + $0x678] sm:$0xff] }
 0x180   : > { %2319 = vmatprep.subr.bf16.mxu0 %v5585_v23  ;;  %2425 = vmatprep.subr.bf16.mxu1 %v5587_v26  ;;  %v5640_v23 = vcombine.low %v628_v11, %v632_v12  ;;  %v5649_v25 = vcombine.high %v636_v19, %v640_v20  ;;  %v5651_v26 = vcombine.high %v637_v21, %v641_v22  ;;  %v6394_v14 = vld [vmem:[#allocation8 + $0xc] ss:$16 sps:$4 sm:$0xff]  }
 0x181   : > { %2306 = vmatprep.mubr.bf16.mxu0 %v7023_v36  ;;  %2412 = vmatprep.mubr.bf16.mxu1 %v7023_v36  ;;  %v656_v36 = vld [vmem:[#allocation5 + $0x6f0] sm:$0xff]  ;;  %v5696_v11 = vcombine.low %v684_v3, %v688_v4  ;;  %v5698_v12 = vcombine.low %v685_v5, %v689_v6 }
 0x183   : > { %2320 = vmatpush1.bf16.msra.mxu0 %v5584_v28  ;;  %2426 = vmatpush1.bf16.msra.mxu1 %v5586_v31  ;;  %v648_v28 = vld [vmem:[#allocation5 + $0x6b0] sm:$0xff]  ;;  %v5648_v31 = vcombine.low %v636_v19, %v640_v20  ;;  %v7027_v20 = vld [vmem:[%s7580_s13 + $0x2c] ss:$16 sps:$4 sm:$0xff]  }
 0x184   : > { %2321 = vmatprep.subr.bf16.mxu0 %v5593_v32  ;;  %2427 = vmatprep.subr.bf16.mxu1 %v5595_v35  ;;  %v5650_v32 = vcombine.low %v637_v21, %v641_v22  ;;  %v5657_v33 = vcombine.high %v644_v27, %v648_v28  ;;  %v652_v35 = vld [vmem:[#allocation5 + $0x6d0] sm:$0xff]  ;;  %v5656_v39 = vcombine.low %v644_v27, %v648_v28  ;;  %v6395_v21 = vld [vmem:[#allocation8 + $0x20] ss:$16 sps:$4 sm:$0xff]   ;;  %v6409_v27 = vld [vmem:[#allocation8 + $0x64] ss:$16 sps:$4 sm:$0xff]  }
 0x185   : > { %v5664_v47 = vcombine.low %v652_v35, %v656_v36  ;;  %v6400_v19 = vld [vmem:[#allocation8 + $0x2c] ss:$16 sps:$4 sm:$0xff]   ;;  %v6398_v22 = vld [vmem:[#allocation8 + $0x28] ss:$16 sps:$4 sm:$0xff]   ;;  %v7028_v28 = vld [vmem:[%s7580_s13 + $0x28] ss:$16 sps:$4 sm:$0xff]  }
 0x186   : > { %2307 = vmatmul.mubr.bf16.gmra.mrb[12].mxu0 %v7024_v45  ;;  %2413 = vmatmul.mubr.bf16.gmra.mrb[12].mxu1 %v7024_v45  ;;  %v661_v45 = vld [vmem:[#allocation5 + $0x718] sm:$0xff] }
 0x187   : > { %2322 = vmatpush1.bf16.msra.mxu0 %v5592_v37  ;;  %2428 = vmatpush1.bf16.msra.mxu1 %v5594_v40  ;;  %v653_v37 = vld [vmem:[#allocation5 + $0x6d8] sm:$0xff]  ;;  %v5658_v40 = vcombine.low %v645_v29, %v649_v30  ;;  %v6412_v29 = vld [vmem:[#allocation8 + $0x6c] ss:$16 sps:$4 sm:$0xff]  }
 0x188   : > { %2323 = vmatprep.subr.bf16.mxu0 %v5601_v41  ;;  %2429 = vmatprep.subr.bf16.mxu1 %v5603_v44  ;;  %v5665_v41 = vcombine.high %v652_v35, %v656_v36  ;;  %v5667_v42 = vcombine.high %v653_v37, %v657_v38  ;;  %v664_v44 = vld [vmem:[#allocation5 + $0x730] sm:$0xff]  ;;  %v5666_v48 = vcombine.low %v653_v37, %v657_v38  ;;  %v6407_v30 = vld [vmem:[#allocation8 + $0x60] ss:$16 sps:$4 sm:$0xff]   ;;  %v6421_v36 = vld [vmem:[#allocation8 + $0xa4] ss:$16 sps:$4 sm:$0xff]  }
 0x189   : > { %2349 = vmatprep.mubr.bf16.mxu0 %v7025_v54  ;;  %2455 = vmatprep.mubr.bf16.mxu1 %v7025_v54  ;;  %v673_v54 = vld [vmem:[#allocation5 + $0x778] sm:$0xff]  ;;  %v6416_v35 = vld [vmem:[#allocation8 + $0x88] ss:$16 sps:$4 sm:$0xff]   ;;  %v6424_v37 = vld [vmem:[#allocation8 + $0xac] ss:$16 sps:$4 sm:$0xff]  }
 0x18a   : > { %v6419_v38 = vld [vmem:[#allocation8 + $0xa0] ss:$16 sps:$4 sm:$0xff]  }
 0x18b   : > { %2324 = vmatpush1.bf16.msra.mxu0 %v5600_v46  ;;  %2430 = vmatpush1.bf16.msra.mxu1 %v5602_v49  ;;  %v665_v46 = vld [vmem:[#allocation5 + $0x738] sm:$0xff]  ;;  %v5673_v49 = vcombine.high %v660_v43, %v664_v44 }
 0x18c   : > { %2325 = vmatprep.subr.bf16.mxu0 %v5609_v50  ;;  %2431 = vmatprep.subr.bf16.mxu1 %v5611_v53  ;;  %v5675_v50 = vcombine.high %v661_v45, %v665_v46  ;;  %v669_v53 = vld [vmem:[#allocation5 + $0x758] sm:$0xff]  ;;  %v5674_v56 = vcombine.low %v661_v45, %v665_v46  ;;  %v6436_v45 = vld [vmem:[#allocation8 + $0xec] ss:$16 sps:$4 sm:$0xff]  }
 0x18d   : > { %v6431_v46 = vld [vmem:[#allocation8 + $0xe0] ss:$16 sps:$4 sm:$0xff]  }
 0x18f   : > { %2326 = vmatpush1.bf16.msra.mxu0 %v5608_v55  ;;  %2432 = vmatpush1.bf16.msra.mxu1 %v5610_v58  ;;  %v5672_v55 = vcombine.low %v660_v43, %v664_v44  ;;  %v5683_v58 = vcombine.high %v669_v53, %v673_v54  ;;  %v6428_v43 = vld [vmem:[#allocation8 + $0xc8] ss:$16 sps:$4 sm:$0xff]   ;;  %v6433_v44 = vld [vmem:[#allocation8 + $0xe4] ss:$16 sps:$4 sm:$0xff]  }
 0x190   : > { %2327 = vmatprep.subr.bf16.mxu0 %v5617_v59  ;;  %2433 = vmatprep.subr.bf16.mxu1 %v5619_v62  ;;  %v676_v59 = vld [vmem:[#allocation5 + $0x790] sm:$0xff]  ;;  %v681_v62 = vld [vmem:[#allocation5 + $0x7b8] sm:$0xff] }
 0x193   : > { %2328 = vmatpush1.bf16.msra.mxu0 %v5616_v63  ;;  %2434 = vmatpush1.bf16.msra.mxu1 %v5618_v0  ;;  %v5680_v63 = vcombine.low %v668_v51, %v672_v52  ;;  %v5682_v0 = vcombine.low %v669_v53, %v673_v54  ;;  %v6440_v51 = vld [vmem:[#allocation8 + $0x108] ss:$16 sps:$4 sm:$0xff]   ;;  %v6445_v52 = vld [vmem:[#allocation8 + $0x124] ss:$16 sps:$4 sm:$0xff]   ;;  %v6448_v53 = vld [vmem:[#allocation8 + $0x12c] ss:$16 sps:$4 sm:$0xff]  }
 0x194   : > { %2329 = vmatprep.subr.bf16.mxu0 %v5625_v1  ;;  %2435 = vmatprep.subr.bf16.mxu1 %v5627_v2  ;;  %v5689_v1 = vcombine.high %v676_v59, %v680_v60  ;;  %v5691_v2 = vcombine.high %v677_v61, %v681_v62  ;;  %v6443_v54 = vld [vmem:[#allocation8 + $0x120] ss:$16 sps:$4 sm:$0xff]  }
 0x197   : > { %2330 = vmatpush1.bf16.msra.mxu0 %v5624_v7  ;;  %2436 = vmatpush1.bf16.msra.mxu1 %v5626_v8  ;;  %v5688_v7 = vcombine.low %v676_v59, %v680_v60  ;;  %v5690_v8 = vcombine.low %v677_v61, %v681_v62  ;;  %v6452_v59 = vld [vmem:[#allocation8 + $0x148] ss:$16 sps:$4 sm:$0xff]   ;;  %v6457_v60 = vld [vmem:[#allocation8 + $0x164] ss:$16 sps:$4 sm:$0xff]   ;;  %v6460_v61 = vld [vmem:[#allocation8 + $0x16c] ss:$16 sps:$4 sm:$0xff]  }
 0x198   : > { %2331 = vmatprep.subr.bf16.mxu0 %v5633_v9  ;;  %2437 = vmatprep.subr.bf16.mxu1 %v5635_v10  ;;  %v5697_v9 = vcombine.high %v684_v3, %v688_v4  ;;  %v5699_v10 = vcombine.high %v685_v5, %v689_v6  ;;  %v6455_v62 = vld [vmem:[#allocation8 + $0x160] ss:$16 sps:$4 sm:$0xff]   ;;  %v6464_v3 = vld [vmem:[#allocation8 + $0x188] ss:$16 sps:$4 sm:$0xff]   ;;  %v6469_v4 = vld [vmem:[#allocation8 + $0x1a4] ss:$16 sps:$4 sm:$0xff]  }
 0x199   : > { %v6472_v5 = vld [vmem:[#allocation8 + $0x1ac] ss:$16 sps:$4 sm:$0xff]   ;;  %v6467_v6 = vld [vmem:[#allocation8 + $0x1a0] ss:$16 sps:$4 sm:$0xff]  }
 0x19b   : > { %2332 = vmatpush1.bf16.msra.mxu0 %v5632_v15  ;;  %2438 = vmatpush1.bf16.msra.mxu1 %v5634_v16  ;;  %v6389_v15 = vld [vmem:[#allocation8] ss:$16 sps:$4 sm:$0xff]   ;;  %v6392_v16 = vld [vmem:[#allocation8 + $0x8] ss:$16 sps:$4 sm:$0xff]  }
 0x19c   : > { %2333 = vmatprep.subr.bf16.mxu0 %v5641_v17  ;;  %2439 = vmatprep.subr.bf16.mxu1 %v5643_v18  ;;  %v6397_v17 = vld [vmem:[#allocation8 + $0x24] ss:$16 sps:$4 sm:$0xff]   ;;  %v7026_v18 = vld [vmem:[%s7580_s13 + $0x8] ss:$16 sps:$4 sm:$0xff]  }
 0x19f   : > { %2334 = vmatpush1.bf16.msra.mxu0 %v5640_v23  ;;  %2440 = vmatpush1.bf16.msra.mxu1 %v5642_v24  ;;  %v6403_v23 = vld [vmem:[#allocation8 + $0x44] ss:$16 sps:$4 sm:$0xff]   ;;  %v6406_v24 = vld [vmem:[#allocation8 + $0x4c] ss:$16 sps:$4 sm:$0xff]  }
 0x1a0   : > { %2335 = vmatprep.subr.bf16.mxu0 %v5649_v25  ;;  %2441 = vmatprep.subr.bf16.mxu1 %v5651_v26  ;;  %v6401_v25 = vld [vmem:[#allocation8 + $0x40] ss:$16 sps:$4 sm:$0xff]   ;;  %v6404_v26 = vld [vmem:[#allocation8 + $0x48] ss:$16 sps:$4 sm:$0xff]  }
 0x1a3   : > { %2336 = vmatpush1.bf16.msra.mxu0 %v5648_v31  ;;  %2442 = vmatpush1.bf16.msra.mxu1 %v5650_v32  ;;  %v6410_v31 = vld [vmem:[#allocation8 + $0x68] ss:$16 sps:$4 sm:$0xff]   ;;  %v6415_v32 = vld [vmem:[#allocation8 + $0x84] ss:$16 sps:$4 sm:$0xff]  }
 0x1a4   : > { %2337 = vmatprep.subr.bf16.mxu0 %v5657_v33  ;;  %2443 = vmatprep.subr.bf16.mxu1 %v5659_v34  ;;  %v6418_v33 = vld [vmem:[#allocation8 + $0x8c] ss:$16 sps:$4 sm:$0xff]   ;;  %v6413_v34 = vld [vmem:[#allocation8 + $0x80] ss:$16 sps:$4 sm:$0xff]  }
 0x1a7   : > { %2338 = vmatpush1.bf16.msra.mxu0 %v5656_v39  ;;  %2444 = vmatpush1.bf16.msra.mxu1 %v5658_v40  ;;  %v6422_v39 = vld [vmem:[#allocation8 + $0xa8] ss:$16 sps:$4 sm:$0xff]   ;;  %v6427_v40 = vld [vmem:[#allocation8 + $0xc4] ss:$16 sps:$4 sm:$0xff]  }
 0x1a8   : > { %2339 = vmatprep.subr.bf16.mxu0 %v5665_v41  ;;  %2445 = vmatprep.subr.bf16.mxu1 %v5667_v42  ;;  %v6430_v41 = vld [vmem:[#allocation8 + $0xcc] ss:$16 sps:$4 sm:$0xff]   ;;  %v6425_v42 = vld [vmem:[#allocation8 + $0xc0] ss:$16 sps:$4 sm:$0xff]  }
 0x1ab   : > { %2340 = vmatpush1.bf16.msra.mxu0 %v5664_v47  ;;  %2446 = vmatpush1.bf16.msra.mxu1 %v5666_v48  ;;  %v6434_v47 = vld [vmem:[#allocation8 + $0xe8] ss:$16 sps:$4 sm:$0xff]   ;;  %v6439_v48 = vld [vmem:[#allocation8 + $0x104] ss:$16 sps:$4 sm:$0xff]  }
 0x1ac   : > { %2341 = vmatprep.subr.bf16.mxu0 %v5673_v49  ;;  %2447 = vmatprep.subr.bf16.mxu1 %v5675_v50  ;;  %v6442_v49 = vld [vmem:[#allocation8 + $0x10c] ss:$16 sps:$4 sm:$0xff]   ;;  %v6437_v50 = vld [vmem:[#allocation8 + $0x100] ss:$16 sps:$4 sm:$0xff]  }
 0x1af   : > { %2342 = vmatpush1.bf16.msra.mxu0 %v5672_v55  ;;  %2448 = vmatpush1.bf16.msra.mxu1 %v5674_v56  ;;  %v6446_v55 = vld [vmem:[#allocation8 + $0x128] ss:$16 sps:$4 sm:$0xff]   ;;  %v6451_v56 = vld [vmem:[#allocation8 + $0x144] ss:$16 sps:$4 sm:$0xff]  }
 0x1b0   : > { %2343 = vmatprep.subr.bf16.mxu0 %v5681_v57  ;;  %2449 = vmatprep.subr.bf16.mxu1 %v5683_v58  ;;  %v6454_v57 = vld [vmem:[#allocation8 + $0x14c] ss:$16 sps:$4 sm:$0xff]   ;;  %v6449_v58 = vld [vmem:[#allocation8 + $0x140] ss:$16 sps:$4 sm:$0xff]  }
 0x1b3   : > { %2344 = vmatpush1.bf16.msra.mxu0 %v5680_v63  ;;  %2450 = vmatpush1.bf16.msra.mxu1 %v5682_v0  ;;  %v6458_v63 = vld [vmem:[#allocation8 + $0x168] ss:$16 sps:$4 sm:$0xff]   ;;  %v6463_v0 = vld [vmem:[#allocation8 + $0x184] ss:$16 sps:$4 sm:$0xff]  }
 0x1b4   : > { %2345 = vmatprep.subr.bf16.mxu0 %v5689_v1  ;;  %2451 = vmatprep.subr.bf16.mxu1 %v5691_v2  ;;  %v6466_v1 = vld [vmem:[#allocation8 + $0x18c] ss:$16 sps:$4 sm:$0xff]   ;;  %v6461_v2 = vld [vmem:[#allocation8 + $0x180] ss:$16 sps:$4 sm:$0xff]  }
 0x1b7   : > { %2346 = vmatpush1.bf16.msra.mxu0 %v5688_v7  ;;  %2452 = vmatpush1.bf16.msra.mxu1 %v5690_v8  ;;  %v6470_v7 = vld [vmem:[#allocation8 + $0x1a8] ss:$16 sps:$4 sm:$0xff]   ;;  %v6475_v8 = vld [vmem:[#allocation8 + $0x1c4] ss:$16 sps:$4 sm:$0xff]  }
 0x1b8   : > { %2347 = vmatprep.subr.bf16.mxu0 %v5697_v9  ;;  %2453 = vmatprep.subr.bf16.mxu1 %v5699_v10  ;;  %v6478_v9 = vld [vmem:[#allocation8 + $0x1cc] ss:$16 sps:$4 sm:$0xff]   ;;  %v6473_v10 = vld [vmem:[#allocation8 + $0x1c0] ss:$16 sps:$4 sm:$0xff]  }
 0x1bb   : > { %2348 = vmatpush1.bf16.msra.mxu0 %v5696_v11  ;;  %2454 = vmatpush1.bf16.msra.mxu1 %v5698_v12  ;;  %v6476_v11 = vld [vmem:[#allocation8 + $0x1c8] ss:$16 sps:$4 sm:$0xff]   ;;  %v6481_v12 = vld [vmem:[#allocation8 + $0x1e4] ss:$16 sps:$4 sm:$0xff]  }
 0x1bc   : > { %4242 = vmatprep.subr.bf16.mxu0 %v6391_v13  ;;  %4454 = vmatprep.subr.bf16.mxu1 %v6394_v14  ;;  %v6484_v13 = vld [vmem:[#allocation8 + $0x1ec] ss:$16 sps:$4 sm:$0xff]   ;;  %v6479_v14 = vld [vmem:[#allocation8 + $0x1e0] ss:$16 sps:$4 sm:$0xff]  }
 0x1be   : > { %2350 = vmatmul.mubr.bf16.vlgmr.msra.gmra.mrb[8].mxu0 %v7026_v18  ;;  %2456 = vmatmul.mubr.bf16.vlgmr.msra.gmra.mrb[8].mxu1 %v7026_v18  ;;  %v692_v18 = vlaneseq }
 0x1bf   : > { %2359 = vmatprep.mubr.bf16.mxu0 %v7027_v20  ;;  %2465 = vmatprep.mubr.bf16.mxu1 %v7027_v20 }
 0x1c0   : > { %4243 = vmatpush1.bf16.msra.mxu0 %v6389_v15  ;;  %4455 = vmatpush1.bf16.msra.mxu1 %v6392_v16  ;;  %v6482_v15 = vld [vmem:[#allocation8 + $0x1e8] ss:$16 sps:$4 sm:$0xff]   ;;  %v6487_v16 = vld [vmem:[#allocation8 + $0x204] ss:$16 sps:$4 sm:$0xff]  }
 0x1c1   : > { %4244 = vmatprep.subr.bf16.mxu0 %v6397_v17  ;;  %4456 = vmatprep.subr.bf16.mxu1 %v6400_v19  ;;  %v6490_v17 = vld [vmem:[#allocation8 + $0x20c] ss:$16 sps:$4 sm:$0xff]   ;;  %v7614_v19 = vshrl.u32 %v692_v18, 7 }
 0x1c3   : > { %v694_v20 = vsub.s32 0, %v7614_v19 }
 0x1c4   : > { %4245 = vmatpush1.bf16.msra.mxu0 %v6395_v21  ;;  %4457 = vmatpush1.bf16.msra.mxu1 %v6398_v22  ;;  %v7617_v21 = vld [vmem:[#allocation7] sm:$0xff]  ;;  %v702_v22 = vsub.s32 2, %v7614_v19 }
 0x1c5   : > { %4246 = vmatprep.subr.bf16.mxu0 %v6403_v23  ;;  %4458 = vmatprep.subr.bf16.mxu1 %v6406_v24  ;;  %v698_v23 = vsub.s32 1, %v7614_v19  ;;  %v706_v24 = vsub.s32 3, %v7614_v19 }
 0x1c6   : > { %2360 = vmatmul.mubr.bf16.gmra.mrb[12].mxu0 %v7028_v28  ;;  %2466 = vmatmul.mubr.bf16.gmra.mrb[12].mxu1 %v7028_v28 }
 0x1c7   : > { %v7636_v28 = vrot.slane %v7617_v21, %v706_v24 }
 0x1c8   : > { %4247 = vmatpush1.bf16.msra.mxu0 %v6401_v25  ;;  %4459 = vmatpush1.bf16.msra.mxu1 %v6404_v26  ;;  %v695_v25 = vrot.slane %v7617_v21, %v694_v20  ;;  %v7628_v26 = vrot.slane %v7617_v21, %v702_v22 }
 0x1c9   : > { %4248 = vmatprep.subr.bf16.mxu0 %v6409_v27  ;;  %4460 = vmatprep.subr.bf16.mxu1 %v6412_v29  ;;  %v699_v27 = vrot.slane %v7617_v21, %v698_v23 }
 0x1cc   : > { %4249 = vmatpush1.bf16.msra.mxu0 %v6407_v30  ;;  %4461 = vmatpush1.bf16.msra.mxu1 %v6410_v31 }
 0x1cd   : > { %4250 = vmatprep.subr.bf16.mxu0 %v6415_v32  ;;  %4462 = vmatprep.subr.bf16.mxu1 %v6418_v33 }
 0x1d0   : > { %4251 = vmatpush1.bf16.msra.mxu0 %v6413_v34  ;;  %4463 = vmatpush1.bf16.msra.mxu1 %v6416_v35 }
 0x1d1   : > { %4252 = vmatprep.subr.bf16.mxu0 %v6421_v36  ;;  %4464 = vmatprep.subr.bf16.mxu1 %v6424_v37 }
 0x1d4   : > { %4253 = vmatpush1.bf16.msra.mxu0 %v6419_v38  ;;  %4465 = vmatpush1.bf16.msra.mxu1 %v6422_v39 }
 0x1d5   : > { %4254 = vmatprep.subr.bf16.mxu0 %v6427_v40  ;;  %4466 = vmatprep.subr.bf16.mxu1 %v6430_v41 }
 0x1d8   : > { %4255 = vmatpush1.bf16.msra.mxu0 %v6425_v42  ;;  %4467 = vmatpush1.bf16.msra.mxu1 %v6428_v43 }
 0x1d9   : > { %4256 = vmatprep.subr.bf16.mxu0 %v6433_v44  ;;  %4468 = vmatprep.subr.bf16.mxu1 %v6436_v45 }
 0x1dc   : > { %4257 = vmatpush1.bf16.msra.mxu0 %v6431_v46  ;;  %4469 = vmatpush1.bf16.msra.mxu1 %v6434_v47 }
 0x1dd   : > { %4258 = vmatprep.subr.bf16.mxu0 %v6439_v48  ;;  %4470 = vmatprep.subr.bf16.mxu1 %v6442_v49 }
 0x1e0   : > { %4259 = vmatpush1.bf16.msra.mxu0 %v6437_v50  ;;  %4471 = vmatpush1.bf16.msra.mxu1 %v6440_v51 }
 0x1e1   : > { %4260 = vmatprep.subr.bf16.mxu0 %v6445_v52  ;;  %4472 = vmatprep.subr.bf16.mxu1 %v6448_v53 }
 0x1e4   : > { %4261 = vmatpush1.bf16.msra.mxu0 %v6443_v54  ;;  %4473 = vmatpush1.bf16.msra.mxu1 %v6446_v55 }
 0x1e5   : > { %4262 = vmatprep.subr.bf16.mxu0 %v6451_v56  ;;  %4474 = vmatprep.subr.bf16.mxu1 %v6454_v57 }
 0x1e8   : > { %4263 = vmatpush1.bf16.msra.mxu0 %v6449_v58  ;;  %4475 = vmatpush1.bf16.msra.mxu1 %v6452_v59 }
 0x1e9   : > { %4264 = vmatprep.subr.bf16.mxu0 %v6457_v60  ;;  %4476 = vmatprep.subr.bf16.mxu1 %v6460_v61 }
 0x1ec   : > { %4265 = vmatpush1.bf16.msra.mxu0 %v6455_v62  ;;  %4477 = vmatpush1.bf16.msra.mxu1 %v6458_v63 }
 0x1ed   : > { %4266 = vmatprep.subr.bf16.mxu0 %v6463_v0  ;;  %4478 = vmatprep.subr.bf16.mxu1 %v6466_v1 }
 0x1f0   : > { %4267 = vmatpush1.bf16.msra.mxu0 %v6461_v2  ;;  %4479 = vmatpush1.bf16.msra.mxu1 %v6464_v3 }
 0x1f1   : > { %4268 = vmatprep.subr.bf16.mxu0 %v6469_v4  ;;  %4480 = vmatprep.subr.bf16.mxu1 %v6472_v5 }
 0x1f4   : > { %4269 = vmatpush1.bf16.msra.mxu0 %v6467_v6  ;;  %4481 = vmatpush1.bf16.msra.mxu1 %v6470_v7 }
 0x1f5   : > { %4270 = vmatprep.subr.bf16.mxu0 %v6475_v8  ;;  %4482 = vmatprep.subr.bf16.mxu1 %v6478_v9 }
 0x1f8   : > { %4271 = vmatpush1.bf16.msra.mxu0 %v6473_v10  ;;  %4483 = vmatpush1.bf16.msra.mxu1 %v6476_v11 }
 0x1f9   : > { %4272 = vmatprep.subr.bf16.mxu0 %v6481_v12  ;;  %4484 = vmatprep.subr.bf16.mxu1 %v6484_v13 }
 0x1fc   : > { %4273 = vmatpush1.bf16.msra.mxu0 %v6479_v14  ;;  %4485 = vmatpush1.bf16.msra.mxu1 %v6482_v15 }
 0x1fd   : > { %4295 = vmatprep.subr.bf16.mxu0 %v6487_v16  ;;  %4507 = vmatprep.subr.bf16.mxu1 %v6490_v17 }
 0x211   : > { %v2139_v29 = vpop.f32.mrb[0].mxu0  ;;  %v2245_v31 = vpop.f32.mrb[0].mxu1 }
 0x212   : > { %v6144_v30 = vadd.f32 %v2139_v29, %v695_v25  ;;  %v2141_v32 = vpop.f32.mrb[1].mxu0  ;;  %v6152_v33 = vadd.f32 %v2245_v31, %v7628_v26  ;;  %v2247_v35 = vpop.f32.mrb[1].mxu1 }
 0x213   : > { %v6145_v34 = vadd.f32 %v2141_v32, %v699_v27  ;;  %v2143_v36 = vpop.f32.mrb[2].mxu0  ;;  %v6153_v38 = vadd.f32 %v2247_v35, %v7636_v28  ;;  %v2249_v40 = vpop.f32.mrb[2].mxu1 }
 0x214   : > { %v5700_v37 = vmul.f32 -1.442695, %v6144_v30  ;;  %v6146_v39 = vadd.f32 %v2143_v36, %v695_v25  ;;  %v2145_v41 = vpop.f32.mrb[3].mxu0  ;;  %v5702_v42 = vmul.f32 -1.442695, %v6152_v33  ;;  %v6154_v44 = vadd.f32 %v2249_v40, %v7628_v26  ;;  %v2251_v46 = vpop.f32.mrb[3].mxu1 }
 0x215   : > { %v5701_v43 = vmul.f32 -1.442695, %v6145_v34  ;;  %v6147_v45 = vadd.f32 %v2145_v41, %v699_v27  ;;  %v5703_v47 = vmul.f32 -1.442695, %v6153_v38  ;;  %v6155_v49 = vadd.f32 %v2251_v46, %v7636_v28 }
 0x216   : > { %6813 = vpow2.f32 %v5700_v37  ;;  %v5708_v48 = vmul.f32 -1.442695, %v6146_v39  ;;  %v5710_v50 = vmul.f32 -1.442695, %v6154_v44 }
 0x217   : > { %6815 = vpow2.f32 %v5702_v42  ;;  %v5709_v51 = vmul.f32 -1.442695, %v6147_v45  ;;  %v5711_v52 = vmul.f32 -1.442695, %v6155_v49 }
 0x218   : > { %6817 = vpow2.f32 %v5701_v43 }
 0x219   : > { %6819 = vpow2.f32 %v5703_v47  ;;  %v2149_v53 = vpop.f32.mrb[4].mxu0  ;;  %v2255_v56 = vpop.f32.mrb[4].mxu1 }
 0x21a   : > { %6821 = vpow2.f32 %v5708_v48  ;;  %v6148_v54 = vadd.f32 %v2149_v53, %v695_v25  ;;  %v2151_v55 = vpop.f32.mrb[5].mxu0  ;;  %v6156_v59 = vadd.f32 %v2255_v56, %v7628_v26  ;;  %v2257_v60 = vpop.f32.mrb[5].mxu1  ;;  %v6488_v56 = vld [vmem:[#allocation8 + $0x208] ss:$16 sps:$4 sm:$0xff]  }
 0x21b   : > { %6823 = vpow2.f32 %v5710_v50  ;;  %v6149_v57 = vadd.f32 %v2151_v55, %v699_v27  ;;  %v2153_v58 = vpop.f32.mrb[6].mxu0  ;;  %v2259_v0 = vpop.f32.mrb[6].mxu1  ;;  %v6157_v32 = vadd.f32 %v2257_v60, %v7636_v28  ;;  %v6485_v55 = vld [vmem:[#allocation8 + $0x200] ss:$16 sps:$4 sm:$0xff]  }
 0x21c   : > { %6825 = vpow2.f32 %v5709_v51  ;;  %v5716_v61 = vmul.f32 -1.442695, %v6148_v54  ;;  %v6150_v62 = vadd.f32 %v2153_v58, %v695_v25  ;;  %v2155_v63 = vpop.f32.mrb[7].mxu0  ;;  %v2261_v3 = vpop.f32.mrb[7].mxu1  ;;  %v5718_v5 = vmul.f32 -1.442695, %v6156_v59 }
 0x21d   : > { %6827 = vpow2.f32 %v5711_v52  ;;  %v5717_v1 = vmul.f32 -1.442695, %v6149_v57  ;;  %v6151_v2 = vadd.f32 %v2155_v63, %v699_v27  ;;  %v6158_v35 = vadd.f32 %v2259_v0, %v7628_v26  ;;  %v6493_v58 = vld [vmem:[#allocation8 + $0x224] ss:$16 sps:$4 sm:$0xff]   ;;  %v6496_v59 = vld [vmem:[#allocation8 + $0x22c] ss:$16 sps:$4 sm:$0xff]  }
 0x21e   : > { %6829 = vpow2.f32 %v5716_v61  ;;  %v5724_v4 = vmul.f32 -1.442695, %v6150_v62  ;;  %v6159_v38 = vadd.f32 %v2261_v3, %v7636_v28  ;;  %v5719_v43 = vmul.f32 -1.442695, %v6157_v32  ;;  %v6491_v0 = vld [vmem:[#allocation8 + $0x220] ss:$16 sps:$4 sm:$0xff]  }
 0x21f   : > { %6831 = vpow2.f32 %v5717_v1  ;;  %v5725_v6 = vmul.f32 -1.442695, %v6151_v2  ;;  %v5726_v45 = vmul.f32 -1.442695, %v6158_v35  ;;  %v6494_v1 = vld [vmem:[#allocation8 + $0x228] ss:$16 sps:$4 sm:$0xff]  }
 0x220   : > { %v6814_v7 = vpop.eup %6813  ;;  %6833 = vpow2.f32 %v5724_v4  ;;  %v5727_v47 = vmul.f32 -1.442695, %v6159_v38  ;;  %v6520_v32 = vld [vmem:[#allocation8 + $0x2ac] ss:$16 sps:$4 sm:$0xff]  }
 0x221   : > { %v6816_v8 = vpop.eup %6815  ;;  %v2572_v9 = vadd.f32 1.0, %v6814_v7  ;;  %6835 = vpow2.f32 %v5725_v6  ;;  %v6502_v6 = vld [vmem:[#allocation8 + $0x24c] ss:$16 sps:$4 sm:$0xff]  }
 0x222   : > { %v6818_v10 = vpop.eup %6817  ;;  %v2574_v11 = vadd.f32 1.0, %v6816_v8  ;;  %6837 = vpow2.f32 %v5718_v5  ;;  %v6499_v5 = vld [vmem:[#allocation8 + $0x244] ss:$16 sps:$4 sm:$0xff]  }
 0x223   : > { %v6820_v12 = vpop.eup %6819  ;;  %6839 = vrcp.f32 %v2572_v9  ;;  %v2573_v13 = vadd.f32 1.0, %v6818_v10 }
 0x224   : > { %v6822_v14 = vpop.eup %6821  ;;  %6841 = vrcp.f32 %v2574_v11  ;;  %v2575_v15 = vadd.f32 1.0, %v6820_v12  ;;  %v6497_v11 = vld [vmem:[#allocation8 + $0x240] ss:$16 sps:$4 sm:$0xff]   ;;  %v6500_v12 = vld [vmem:[#allocation8 + $0x248] ss:$16 sps:$4 sm:$0xff]  }
 0x225   : > { %v6824_v16 = vpop.eup %6823  ;;  %6843 = vrcp.f32 %v2573_v13  ;;  %v2580_v17 = vadd.f32 1.0, %v6822_v14 }
 0x226   : > { %v6826_v18 = vpop.eup %6825  ;;  %6845 = vrcp.f32 %v2575_v15  ;;  %v2582_v25 = vadd.f32 1.0, %v6824_v16  ;;  %v6505_v15 = vld [vmem:[#allocation8 + $0x264] ss:$16 sps:$4 sm:$0xff]   ;;  %v6508_v16 = vld [vmem:[#allocation8 + $0x26c] ss:$16 sps:$4 sm:$0xff]  }
 0x227   : > { %v6828_v27 = vpop.eup %6827  ;;  %6847 = vrcp.f32 %v2580_v17  ;;  %v2581_v29 = vadd.f32 1.0, %v6826_v18  ;;  %v6503_v17 = vld [vmem:[#allocation8 + $0x260] ss:$16 sps:$4 sm:$0xff]   ;;  %v6506_v18 = vld [vmem:[#allocation8 + $0x268] ss:$16 sps:$4 sm:$0xff]  }
 0x228   : > { %v6830_v30 = vpop.eup %6829  ;;  %6849 = vrcp.f32 %v2582_v25  ;;  %v2583_v31 = vadd.f32 1.0, %v6828_v27  ;;  %v6511_v25 = vld [vmem:[#allocation8 + $0x284] ss:$16 sps:$4 sm:$0xff]   ;;  %v6514_v27 = vld [vmem:[#allocation8 + $0x28c] ss:$16 sps:$4 sm:$0xff]  }
 0x229   : > { %v6832_v33 = vpop.eup %6831  ;;  %6851 = vrcp.f32 %v2581_v29  ;;  %v2588_v34 = vadd.f32 1.0, %v6830_v30  ;;  %v6509_v29 = vld [vmem:[#allocation8 + $0x280] ss:$16 sps:$4 sm:$0xff]   ;;  %v6512_v30 = vld [vmem:[#allocation8 + $0x288] ss:$16 sps:$4 sm:$0xff]  }
 0x22a   : > { %v6834_v36 = vpop.eup %6833  ;;  %6853 = vrcp.f32 %v2583_v31  ;;  %v2589_v37 = vadd.f32 1.0, %v6832_v33  ;;  %v6517_v31 = vld [vmem:[#allocation8 + $0x2a4] ss:$16 sps:$4 sm:$0xff]  }
 0x22b   : > { %v6836_v39 = vpop.eup %6835  ;;  %6855 = vrcp.f32 %v2588_v34  ;;  %v2596_v40 = vadd.f32 1.0, %v6834_v36  ;;  %v6515_v36 = vld [vmem:[#allocation8 + $0x2a0] ss:$16 sps:$4 sm:$0xff]  }
 0x22c   : > { %v6838_v41 = vpop.eup %6837  ;;  %6857 = vrcp.f32 %v2589_v37  ;;  %v2597_v42 = vadd.f32 1.0, %v6836_v39  ;;  %v6518_v37 = vld [vmem:[#allocation8 + $0x2a8] ss:$16 sps:$4 sm:$0xff]   ;;  %v6523_v39 = vld [vmem:[#allocation8 + $0x2c4] ss:$16 sps:$4 sm:$0xff]  }
 0x22d   : > { %v6840_v44 = vpop.eup %6839  ;;  %6859 = vrcp.f32 %v2596_v40  ;;  %v2590_v3 = vadd.f32 1.0, %v6838_v41  ;;  %v6526_v40 = vld [vmem:[#allocation8 + $0x2cc] ss:$16 sps:$4 sm:$0xff]  }
 0x22e   : > { %v6842_v46 = vpop.eup %6841  ;;  %6861 = vrcp.f32 %v2597_v42 }
 0x22f   : > { %v6844_v48 = vpop.eup %6843  ;;  %6863 = vpow2.f32 %v5719_v43  ;;  %v6521_v43 = vld [vmem:[#allocation8 + $0x2c0] ss:$16 sps:$4 sm:$0xff]  }
 0x230   : > { %v6846_v26 = vpop.eup %6845  ;;  %6865 = vpow2.f32 %v5726_v45  ;;  %v6529_v45 = vld [vmem:[#allocation8 + $0x2e4] ss:$16 sps:$4 sm:$0xff]  }
 0x231   : > { %v6848_v49 = vpop.eup %6847  ;;  %6867 = vpow2.f32 %v5727_v47  ;;  %v6527_v47 = vld [vmem:[#allocation8 + $0x2e0] ss:$16 sps:$4 sm:$0xff]  }
 0x232   : > { %v6850_v50 = vpop.eup %6849  ;;  %v2668_v28 = vpack.c.bf16 %v6848_v49, %v6840_v44  ;;  %6869 = vrcp.f32 %v2590_v3  ;;  %v6524_v44 = vld [vmem:[#allocation8 + $0x2c8] ss:$16 sps:$4 sm:$0xff]   ;;  %v6538_v49 = vld [vmem:[#allocation8 + $0x30c] ss:$16 sps:$4 sm:$0xff]  }
 0x233   : > { %v6852_v51 = vpop.eup %6851  ;;  %v7646_v52 = vpack.c.bf16 %v6850_v50, %v6842_v46  ;;  %v6532_v46 = vld [vmem:[#allocation8 + $0x2ec] ss:$16 sps:$4 sm:$0xff]   ;;  %v6533_v50 = vld [vmem:[#allocation8 + $0x300] ss:$16 sps:$4 sm:$0xff]   ;;  %v6560_v3 = vld [vmem:[#allocation8 + $0x388] ss:$16 sps:$4 sm:$0xff]  }
 0x234   : > { %v6854_v53 = vpop.eup %6853  ;;  %v2669_v54 = vpack.c.bf16 %v6852_v51, %v6844_v48  ;;  %v6530_v48 = vld [vmem:[#allocation8 + $0x2e8] ss:$16 sps:$4 sm:$0xff]   ;;  %v6541_v51 = vld [vmem:[#allocation8 + $0x324] ss:$16 sps:$4 sm:$0xff]  }
 0x235   : > { %v6856_v57 = vpop.eup %6855  ;;  %v2671_v60 = vpack.c.bf16 %v6854_v53, %v6846_v26  ;;  %v6535_v26 = vld [vmem:[#allocation8 + $0x304] ss:$16 sps:$4 sm:$0xff]   ;;  %v6544_v53 = vld [vmem:[#allocation8 + $0x32c] ss:$16 sps:$4 sm:$0xff]  }
 0x236   : > { %v6858_v61 = vpop.eup %6857  ;;  %4274 = vmatprep.mubr.bf16.mxu0 %v2669_v54  ;;  %4486 = vmatprep.mubr.bf16.mxu1 %v2669_v54  ;;  %v6539_v54 = vld [vmem:[#allocation8 + $0x320] ss:$16 sps:$4 sm:$0xff]  }
 0x237   : > { %v6860_v62 = vpop.eup %6859  ;;  %4275 = vmatmul.mubr.bf16.vlgmr.msra.gmra.mrb[16].mxu0 %v2668_v28  ;;  %4487 = vmatmul.mubr.bf16.vlgmr.msra.gmra.mrb[16].mxu1 %v2668_v28  ;;  %v6536_v28 = vld [vmem:[#allocation8 + $0x308] ss:$16 sps:$4 sm:$0xff]  }
 0x238   : > { %v6862_v63 = vpop.eup %6861  ;;  %4296 = vmatpush1.bf16.msra.mxu0 %v6485_v55  ;;  %4508 = vmatpush1.bf16.msra.mxu1 %v6488_v56  ;;  %v2676_v2 = vpack.c.bf16 %v6860_v62, %v6856_v57  ;;  %v6542_v55 = vld [vmem:[#allocation8 + $0x328] ss:$16 sps:$4 sm:$0xff]   ;;  %v6547_v56 = vld [vmem:[#allocation8 + $0x344] ss:$16 sps:$4 sm:$0xff]   ;;  %v6550_v57 = vld [vmem:[#allocation8 + $0x34c] ss:$16 sps:$4 sm:$0xff]  }
 0x239   : > { %4297 = vmatprep.subr.bf16.mxu0 %v6493_v58  ;;  %4509 = vmatprep.subr.bf16.mxu1 %v6496_v59  ;;  %v2677_v4 = vpack.c.bf16 %v6862_v63, %v6858_v61  ;;  %v6864_v7 = vpop.eup %6863  ;;  %v6545_v58 = vld [vmem:[#allocation8 + $0x340] ss:$16 sps:$4 sm:$0xff]   ;;  %v6548_v59 = vld [vmem:[#allocation8 + $0x348] ss:$16 sps:$4 sm:$0xff]   ;;  %v6556_v61 = vld [vmem:[#allocation8 + $0x36c] ss:$16 sps:$4 sm:$0xff]  }
 0x23a   : > { %v6866_v8 = vpop.eup %6865  ;;  %v2591_v9 = vadd.f32 1.0, %v6864_v7  ;;  %v6551_v62 = vld [vmem:[#allocation8 + $0x360] ss:$16 sps:$4 sm:$0xff]   ;;  %v6554_v63 = vld [vmem:[#allocation8 + $0x368] ss:$16 sps:$4 sm:$0xff]  }
 0x23b   : > { %4284 = vmatprep.mubr.bf16.mxu0 %v2677_v4  ;;  %4496 = vmatprep.mubr.bf16.mxu1 %v2677_v4  ;;  %v6868_v10 = vpop.eup %6867  ;;  %v2598_v13 = vadd.f32 1.0, %v6866_v8  ;;  %v6565_v4 = vld [vmem:[#allocation8 + $0x3a4] ss:$16 sps:$4 sm:$0xff]   ;;  %v6566_v7 = vld [vmem:[#allocation8 + $0x3a8] ss:$16 sps:$4 sm:$0xff]  }
 0x23c   : > { %4298 = vmatpush1.bf16.msra.mxu0 %v6491_v0  ;;  %4510 = vmatpush1.bf16.msra.mxu1 %v6494_v1  ;;  %6871 = vrcp.f32 %v2591_v9  ;;  %v2599_v14 = vadd.f32 1.0, %v6868_v10  ;;  %v6870_v33 = vpop.eup %6869  ;;  %v6559_v0 = vld [vmem:[#allocation8 + $0x384] ss:$16 sps:$4 sm:$0xff]   ;;  %v6562_v1 = vld [vmem:[#allocation8 + $0x38c] ss:$16 sps:$4 sm:$0xff]  }
 0x23d   : > { %4299 = vmatprep.subr.bf16.mxu0 %v6499_v5  ;;  %4511 = vmatprep.subr.bf16.mxu1 %v6502_v6  ;;  %6873 = vrcp.f32 %v2598_v13  ;;  %v6568_v5 = vld [vmem:[#allocation8 + $0x3ac] ss:$16 sps:$4 sm:$0xff]   ;;  %v6563_v6 = vld [vmem:[#allocation8 + $0x3a0] ss:$16 sps:$4 sm:$0xff]   ;;  %v6571_v8 = vld [vmem:[#allocation8 + $0x3c4] ss:$16 sps:$4 sm:$0xff]  }
 0x23e   : > { %6875 = vrcp.f32 %v2599_v14  ;;  %v6574_v9 = vld [vmem:[#allocation8 + $0x3cc] ss:$16 sps:$4 sm:$0xff]   ;;  %v6569_v10 = vld [vmem:[#allocation8 + $0x3c0] ss:$16 sps:$4 sm:$0xff]  }
 0x23f   : > { %4285 = vmatmul.mubr.bf16.gmra.mrb[20].mxu0 %v2676_v2  ;;  %4497 = vmatmul.mubr.bf16.gmra.mrb[20].mxu1 %v2676_v2  ;;  %v6557_v2 = vld [vmem:[#allocation8 + $0x380] ss:$16 sps:$4 sm:$0xff]   ;;  %v6580_v13 = vld [vmem:[#allocation8 + $0x3ec] ss:$16 sps:$4 sm:$0xff]  }
 0x240   : > { %4300 = vmatpush1.bf16.msra.mxu0 %v6497_v11  ;;  %4512 = vmatpush1.bf16.msra.mxu1 %v6500_v12  ;;  %v6572_v11 = vld [vmem:[#allocation8 + $0x3c8] ss:$16 sps:$4 sm:$0xff]   ;;  %v6577_v12 = vld [vmem:[#allocation8 + $0x3e4] ss:$16 sps:$4 sm:$0xff]   ;;  %v6575_v14 = vld [vmem:[#allocation8 + $0x3e0] ss:$16 sps:$4 sm:$0xff]  }
 0x241   : > { %4327 = vmatprep.mubr.bf16.mxu0 %v2671_v60  ;;  %4539 = vmatprep.mubr.bf16.mxu1 %v2671_v60  ;;  %v6553_v60 = vld [vmem:[#allocation8 + $0x364] ss:$16 sps:$4 sm:$0xff]  }
 0x242   : > { %4301 = vmatprep.subr.bf16.mxu0 %v6505_v15  ;;  %4513 = vmatprep.subr.bf16.mxu1 %v6508_v16  ;;  %v6578_v15 = vld [vmem:[#allocation8 + $0x3e8] ss:$16 sps:$4 sm:$0xff]   ;;  %v6583_v16 = vld [vmem:[#allocation8 + $0x404] ss:$16 sps:$4 sm:$0xff]  }
 0x244   : > { %4302 = vmatpush1.bf16.msra.mxu0 %v6503_v17  ;;  %4514 = vmatpush1.bf16.msra.mxu1 %v6506_v18  ;;  %v6586_v17 = vld [vmem:[#allocation8 + $0x40c] ss:$16 sps:$4 sm:$0xff]   ;;  %v6581_v18 = vld [vmem:[#allocation8 + $0x400] ss:$16 sps:$4 sm:$0xff]  }
 0x245   : > { %4303 = vmatprep.subr.bf16.mxu0 %v6511_v25  ;;  %4515 = vmatprep.subr.bf16.mxu1 %v6514_v27  ;;  %v6584_v25 = vld [vmem:[#allocation8 + $0x408] ss:$16 sps:$4 sm:$0xff]   ;;  %v6589_v27 = vld [vmem:[#allocation8 + $0x424] ss:$16 sps:$4 sm:$0xff]  }
 0x246   : > { %v6872_v34 = vpop.eup %6871 }
 0x247   : > { %v6874_v35 = vpop.eup %6873 }
 0x248   : > { %4304 = vmatpush1.bf16.msra.mxu0 %v6509_v29  ;;  %4516 = vmatpush1.bf16.msra.mxu1 %v6512_v30  ;;  %v6876_v38 = vpop.eup %6875  ;;  %v7648_v41 = vpack.c.bf16 %v6874_v35, %v6870_v33  ;;  %v6592_v29 = vld [vmem:[#allocation8 + $0x42c] ss:$16 sps:$4 sm:$0xff]   ;;  %v6587_v30 = vld [vmem:[#allocation8 + $0x420] ss:$16 sps:$4 sm:$0xff]   ;;  %v6596_v35 = vld [vmem:[#allocation8 + $0x448] ss:$16 sps:$4 sm:$0xff]  }
 0x249   : > { %4305 = vmatprep.subr.bf16.mxu0 %v6517_v31  ;;  %4517 = vmatprep.subr.bf16.mxu1 %v6520_v32  ;;  %v7650_v42 = vpack.c.bf16 %v6876_v38, %v6872_v34  ;;  %v6590_v31 = vld [vmem:[#allocation8 + $0x428] ss:$16 sps:$4 sm:$0xff]   ;;  %v6595_v32 = vld [vmem:[#allocation8 + $0x444] ss:$16 sps:$4 sm:$0xff]   ;;  %v6598_v33 = vld [vmem:[#allocation8 + $0x44c] ss:$16 sps:$4 sm:$0xff]  }
 0x24a   : > { %v6593_v34 = vld [vmem:[#allocation8 + $0x440] ss:$16 sps:$4 sm:$0xff]   ;;  %v6602_v38 = vld [vmem:[#allocation8 + $0x468] ss:$16 sps:$4 sm:$0xff]  }
 0x24c   : > { %4306 = vmatpush1.bf16.msra.mxu0 %v6515_v36  ;;  %4518 = vmatpush1.bf16.msra.mxu1 %v6518_v37  ;;  %v6601_v36 = vld [vmem:[#allocation8 + $0x464] ss:$16 sps:$4 sm:$0xff]   ;;  %v6599_v37 = vld [vmem:[#allocation8 + $0x460] ss:$16 sps:$4 sm:$0xff]  }
 0x24d   : > { %4307 = vmatprep.subr.bf16.mxu0 %v6523_v39  ;;  %4519 = vmatprep.subr.bf16.mxu1 %v6526_v40  ;;  %v6607_v39 = vld [vmem:[#allocation8 + $0x484] ss:$16 sps:$4 sm:$0xff]   ;;  %v6610_v40 = vld [vmem:[#allocation8 + $0x48c] ss:$16 sps:$4 sm:$0xff]  }
 0x250   : > { %4308 = vmatpush1.bf16.msra.mxu0 %v6521_v43  ;;  %4520 = vmatpush1.bf16.msra.mxu1 %v6524_v44  ;;  %v6608_v43 = vld [vmem:[#allocation8 + $0x488] ss:$16 sps:$4 sm:$0xff]   ;;  %v6613_v44 = vld [vmem:[#allocation8 + $0x4a4] ss:$16 sps:$4 sm:$0xff]  }
 0x251   : > { %4309 = vmatprep.subr.bf16.mxu0 %v6529_v45  ;;  %4521 = vmatprep.subr.bf16.mxu1 %v6532_v46  ;;  %v6616_v45 = vld [vmem:[#allocation8 + $0x4ac] ss:$16 sps:$4 sm:$0xff]   ;;  %v6611_v46 = vld [vmem:[#allocation8 + $0x4a0] ss:$16 sps:$4 sm:$0xff]  }
 0x254   : > { %4310 = vmatpush1.bf16.msra.mxu0 %v6527_v47  ;;  %4522 = vmatpush1.bf16.msra.mxu1 %v6530_v48  ;;  %v6619_v47 = vld [vmem:[#allocation8 + $0x4c4] ss:$16 sps:$4 sm:$0xff]   ;;  %v6622_v48 = vld [vmem:[#allocation8 + $0x4cc] ss:$16 sps:$4 sm:$0xff]  }
 0x255   : > { %4311 = vmatprep.subr.bf16.mxu0 %v6535_v26  ;;  %4523 = vmatprep.subr.bf16.mxu1 %v6538_v49  ;;  %v710_v26 = vsub.s32 4, %v7614_v19  ;;  %v718_v49 = vsub.s32 6, %v7614_v19 }
 0x258   : > { %4312 = vmatpush1.bf16.msra.mxu0 %v6533_v50  ;;  %4524 = vmatpush1.bf16.msra.mxu1 %v6536_v28  ;;  %v714_v50 = vsub.s32 5, %v7614_v19  ;;  %v6617_v28 = vld [vmem:[#allocation8 + $0x4c0] ss:$16 sps:$4 sm:$0xff]  }
 0x259   : > { %4313 = vmatprep.subr.bf16.mxu0 %v6541_v51  ;;  %4525 = vmatprep.subr.bf16.mxu1 %v6544_v53  ;;  %v722_v51 = vsub.s32 7, %v7614_v19  ;;  %v6620_v53 = vld [vmem:[#allocation8 + $0x4c8] ss:$16 sps:$4 sm:$0xff]  }
 0x25c   : > { %4314 = vmatpush1.bf16.msra.mxu0 %v6539_v54  ;;  %4526 = vmatpush1.bf16.msra.mxu1 %v6542_v55  ;;  %v6625_v54 = vld [vmem:[#allocation8 + $0x4e4] ss:$16 sps:$4 sm:$0xff]   ;;  %v6628_v55 = vld [vmem:[#allocation8 + $0x4ec] ss:$16 sps:$4 sm:$0xff]  }
 0x25d   : > { %4315 = vmatprep.subr.bf16.mxu0 %v6547_v56  ;;  %4527 = vmatprep.subr.bf16.mxu1 %v6550_v57  ;;  %v7663_v56 = vrot.slane %v7617_v21, %v710_v26  ;;  %v7666_v57 = vrot.slane %v7617_v21, %v718_v49  ;;  %v6644_v26 = vld [vmem:[#allocation8 + $0x548] ss:$16 sps:$4 sm:$0xff]  }
 0x260   : > { %4316 = vmatpush1.bf16.msra.mxu0 %v6545_v58  ;;  %4528 = vmatpush1.bf16.msra.mxu1 %v6548_v59  ;;  %v7669_v58 = vrot.slane %v7617_v21, %v714_v50  ;;  %v6623_v59 = vld [vmem:[#allocation8 + $0x4e0] ss:$16 sps:$4 sm:$0xff]  }
 0x261   : > { %4317 = vmatprep.subr.bf16.mxu0 %v6553_v60  ;;  %4529 = vmatprep.subr.bf16.mxu1 %v6556_v61  ;;  %v7672_v60 = vrot.slane %v7617_v21, %v722_v51  ;;  %v6626_v61 = vld [vmem:[#allocation8 + $0x4e8] ss:$16 sps:$4 sm:$0xff]  }
 0x262   : > { %v6632_v21 = vld [vmem:[#allocation8 + $0x508] ss:$16 sps:$4 sm:$0xff]  }
 0x264   : > { %4318 = vmatpush1.bf16.msra.mxu0 %v6551_v62  ;;  %4530 = vmatpush1.bf16.msra.mxu1 %v6554_v63  ;;  %v6631_v63 = vld [vmem:[#allocation8 + $0x504] ss:$16 sps:$4 sm:$0xff]  }
 0x265   : > { %4319 = vmatprep.subr.bf16.mxu0 %v6559_v0  ;;  %4531 = vmatprep.subr.bf16.mxu1 %v6562_v1 }
 0x268   : > { %4320 = vmatpush1.bf16.msra.mxu0 %v6557_v2  ;;  %4532 = vmatpush1.bf16.msra.mxu1 %v6560_v3  ;;  %v6634_v3 = vld [vmem:[#allocation8 + $0x50c] ss:$16 sps:$4 sm:$0xff]  }
 0x269   : > { %4321 = vmatprep.subr.bf16.mxu0 %v6565_v4  ;;  %4533 = vmatprep.subr.bf16.mxu1 %v6568_v5 }
 0x26c   : > { %4322 = vmatpush1.bf16.msra.mxu0 %v6563_v6  ;;  %4534 = vmatpush1.bf16.msra.mxu1 %v6566_v7 }
 0x26d   : > { %4323 = vmatprep.subr.bf16.mxu0 %v6571_v8  ;;  %4535 = vmatprep.subr.bf16.mxu1 %v6574_v9  ;;  %v6629_v8 = vld [vmem:[#allocation8 + $0x500] ss:$16 sps:$4 sm:$0xff]  }
 0x270   : > { %4324 = vmatpush1.bf16.msra.mxu0 %v6569_v10  ;;  %4536 = vmatpush1.bf16.msra.mxu1 %v6572_v11 }
 0x271   : > { %4325 = vmatprep.subr.bf16.mxu0 %v6577_v12  ;;  %4537 = vmatprep.subr.bf16.mxu1 %v6580_v13 }
 0x274   : > { %4326 = vmatpush1.bf16.msra.mxu0 %v6575_v14  ;;  %4538 = vmatpush1.bf16.msra.mxu1 %v6578_v15  ;;  %v6637_v14 = vld [vmem:[#allocation8 + $0x524] ss:$16 sps:$4 sm:$0xff]  }
 0x275   : > { %4348 = vmatprep.subr.bf16.mxu0 %v6583_v16  ;;  %4560 = vmatprep.subr.bf16.mxu1 %v6586_v17 }
 0x277   : > { %4328 = vmatmul.mubr.bf16.vlgmr.msra.gmra.mrb[16].mxu0 %v7646_v52  ;;  %4540 = vmatmul.mubr.bf16.vlgmr.msra.gmra.mrb[16].mxu1 %v7646_v52  ;;  %v6604_v52 = vld [vmem:[#allocation8 + $0x46c] ss:$16 sps:$4 sm:$0xff]  }
 0x278   : > { %4337 = vmatprep.mubr.bf16.mxu0 %v7650_v42  ;;  %4349 = vmatpush1.bf16.msra.mxu0 %v6581_v18 }
 0x279   : > { %4549 = vmatprep.mubr.bf16.mxu1 %v7650_v42  ;;  %4561 = vmatpush1.bf16.msra.mxu1 %v6584_v25  ;;  %v6605_v42 = vld [vmem:[#allocation8 + $0x480] ss:$16 sps:$4 sm:$0xff]  }
 0x27a   : > { %4350 = vmatprep.subr.bf16.mxu0 %v6589_v27  ;;  %4562 = vmatprep.subr.bf16.mxu1 %v6592_v29 }
 0x27c   : > { %4351 = vmatpush1.bf16.msra.mxu0 %v6587_v30 }
 0x27d   : > { %4563 = vmatpush1.bf16.msra.mxu1 %v6590_v31  ;;  %4352 = vmatprep.subr.bf16.mxu0 %v6595_v32  ;;  %v6640_v31 = vld [vmem:[#allocation8 + $0x52c] ss:$16 sps:$4 sm:$0xff]  }
 0x27e   : > { %4564 = vmatprep.subr.bf16.mxu1 %v6598_v33 }
 0x27f   : > { %4338 = vmatmul.mubr.bf16.gmra.mrb[20].mxu0 %v7648_v41  ;;  %4550 = vmatmul.mubr.bf16.gmra.mrb[20].mxu1 %v7648_v41  ;;  %v6614_v41 = vld [vmem:[#allocation8 + $0x4a8] ss:$16 sps:$4 sm:$0xff]  }
 0x280   : > { %4353 = vmatpush1.bf16.msra.mxu0 %v6593_v34  ;;  %v6635_v34 = vld [vmem:[#allocation8 + $0x520] ss:$16 sps:$4 sm:$0xff]  }
 0x281   : > { %4565 = vmatpush1.bf16.msra.mxu1 %v6596_v35  ;;  %4354 = vmatprep.subr.bf16.mxu0 %v6601_v36  ;;  %v6638_v35 = vld [vmem:[#allocation8 + $0x528] ss:$16 sps:$4 sm:$0xff]  }
 0x282   : > { %4566 = vmatprep.subr.bf16.mxu1 %v6604_v52 }
 0x284   : > { %4355 = vmatpush1.bf16.msra.mxu0 %v6599_v37  ;;  %v6643_v37 = vld [vmem:[#allocation8 + $0x544] ss:$16 sps:$4 sm:$0xff]  }
 0x285   : > { %4567 = vmatpush1.bf16.msra.mxu1 %v6602_v38  ;;  %4356 = vmatprep.subr.bf16.mxu0 %v6607_v39 }
 0x286   : > { %4568 = vmatprep.subr.bf16.mxu1 %v6610_v40  ;;  %v6646_v40 = vld [vmem:[#allocation8 + $0x54c] ss:$16 sps:$4 sm:$0xff]  }
 0x288   : > { %4357 = vmatpush1.bf16.msra.mxu0 %v6605_v42 }
 0x289   : > { %4569 = vmatpush1.bf16.msra.mxu1 %v6608_v43  ;;  %4358 = vmatprep.subr.bf16.mxu0 %v6613_v44 }
 0x28a   : > { %4570 = vmatprep.subr.bf16.mxu1 %v6616_v45  ;;  %v6641_v45 = vld [vmem:[#allocation8 + $0x540] ss:$16 sps:$4 sm:$0xff]  }
 0x28c   : > { %4359 = vmatpush1.bf16.msra.mxu0 %v6611_v46 }
 0x28d   : > { %4571 = vmatpush1.bf16.msra.mxu1 %v6614_v41  ;;  %4360 = vmatprep.subr.bf16.mxu0 %v6619_v47 }
 0x28e   : > { %4572 = vmatprep.subr.bf16.mxu1 %v6622_v48 }
 0x290   : > { %4361 = vmatpush1.bf16.msra.mxu0 %v6617_v28 }
 0x291   : > { %4573 = vmatpush1.bf16.msra.mxu1 %v6620_v53  ;;  %4362 = vmatprep.subr.bf16.mxu0 %v6625_v54  ;;  %v2351_v62 = vpop.f32.mrb[8].mxu0  ;;  %v2457_v1 = vpop.f32.mrb[8].mxu1  ;;  %v6649_v53 = vld [vmem:[#allocation8 + $0x564] ss:$16 sps:$4 sm:$0xff]  }
 0x292   : > { %4574 = vmatprep.subr.bf16.mxu1 %v6628_v55  ;;  %v6160_v0 = vadd.f32 %v2351_v62, %v7663_v56  ;;  %v2353_v2 = vpop.f32.mrb[9].mxu0  ;;  %v6168_v4 = vadd.f32 %v2457_v1, %v7666_v57  ;;  %v2459_v6 = vpop.f32.mrb[9].mxu1 }
 0x293   : > { %v6161_v5 = vadd.f32 %v2353_v2, %v7669_v58  ;;  %v2355_v7 = vpop.f32.mrb[10].mxu0  ;;  %v6169_v10 = vadd.f32 %v2459_v6, %v7672_v60  ;;  %v2461_v12 = vpop.f32.mrb[10].mxu1  ;;  %v6655_v2 = vld [vmem:[#allocation8 + $0x584] ss:$16 sps:$4 sm:$0xff]  }
 0x294   : > { %4363 = vmatpush1.bf16.msra.mxu0 %v6623_v59  ;;  %v5704_v9 = vmul.f32 -1.442695, %v6160_v0  ;;  %v6162_v11 = vadd.f32 %v2355_v7, %v7663_v56  ;;  %v2357_v13 = vpop.f32.mrb[11].mxu0  ;;  %v5706_v15 = vmul.f32 -1.442695, %v6168_v4  ;;  %v6170_v17 = vadd.f32 %v2461_v12, %v7666_v57  ;;  %v2463_v25 = vpop.f32.mrb[11].mxu1 }
 0x295   : > { %4575 = vmatpush1.bf16.msra.mxu1 %v6626_v61  ;;  %v5705_v16 = vmul.f32 -1.442695, %v6161_v5  ;;  %4364 = vmatprep.subr.bf16.mxu0 %v6631_v63  ;;  %v6163_v18 = vadd.f32 %v2357_v13, %v7669_v58  ;;  %v5707_v27 = vmul.f32 -1.442695, %v6169_v10  ;;  %v6171_v30 = vadd.f32 %v2463_v25, %v7672_v60  ;;  %v6652_v59 = vld [vmem:[#allocation8 + $0x56c] ss:$16 sps:$4 sm:$0xff]  }
 0x296   : > { %6877 = vpow2.f32 %v5704_v9  ;;  %v5712_v29 = vmul.f32 -1.442695, %v6162_v11  ;;  %4576 = vmatprep.subr.bf16.mxu1 %v6634_v3  ;;  %v5714_v32 = vmul.f32 -1.442695, %v6170_v17  ;;  %v6647_v63 = vld [vmem:[#allocation8 + $0x560] ss:$16 sps:$4 sm:$0xff]  }
 0x297   : > { %6879 = vpow2.f32 %v5706_v15  ;;  %v5713_v33 = vmul.f32 -1.442695, %v6163_v18  ;;  %v5715_v36 = vmul.f32 -1.442695, %v6171_v30  ;;  %v6658_v5 = vld [vmem:[#allocation8 + $0x58c] ss:$16 sps:$4 sm:$0xff]  }
 0x298   : > { %6881 = vpow2.f32 %v5705_v16  ;;  %4365 = vmatpush1.bf16.msra.mxu0 %v6629_v8  ;;  %v6653_v9 = vld [vmem:[#allocation8 + $0x580] ss:$16 sps:$4 sm:$0xff]   ;;  %v6656_v12 = vld [vmem:[#allocation8 + $0x588] ss:$16 sps:$4 sm:$0xff]   ;;  %v6661_v13 = vld [vmem:[#allocation8 + $0x5a4] ss:$16 sps:$4 sm:$0xff]  }
 0x299   : > { %6883 = vpow2.f32 %v5707_v27  ;;  %4577 = vmatpush1.bf16.msra.mxu1 %v6632_v21  ;;  %4366 = vmatprep.subr.bf16.mxu0 %v6637_v14  ;;  %v2361_v52 = vpop.f32.mrb[12].mxu0  ;;  %v2467_v42 = vpop.f32.mrb[12].mxu1  ;;  %v6664_v16 = vld [vmem:[#allocation8 + $0x5ac] ss:$16 sps:$4 sm:$0xff]  }
 0x29a   : > { %6885 = vpow2.f32 %v5712_v29  ;;  %4578 = vmatprep.subr.bf16.mxu1 %v6640_v31  ;;  %v6164_v38 = vadd.f32 %v2361_v52, %v7663_v56  ;;  %v2363_v39 = vpop.f32.mrb[13].mxu0  ;;  %v6172_v46 = vadd.f32 %v2467_v42, %v7666_v57  ;;  %v7685_v41 = vpop.f32.mrb[13].mxu1  ;;  %v6659_v29 = vld [vmem:[#allocation8 + $0x5a0] ss:$16 sps:$4 sm:$0xff]  }
 0x29b   : > { %6887 = vpow2.f32 %v5714_v32  ;;  %v6165_v43 = vadd.f32 %v2363_v39, %v7669_v58  ;;  %v2365_v44 = vpop.f32.mrb[14].mxu0  ;;  %v7688_v50 = vpop.f32.mrb[14].mxu1  ;;  %v6173_v30 = vadd.f32 %v7685_v41, %v7672_v60  ;;  %v6673_v41 = vld [vmem:[#allocation8 + $0x5e4] ss:$16 sps:$4 sm:$0xff]  }
 0x29c   : > { %6889 = vpow2.f32 %v5713_v33  ;;  %4367 = vmatpush1.bf16.msra.mxu0 %v6635_v34  ;;  %v5720_v47 = vmul.f32 -1.442695, %v6164_v38  ;;  %v6166_v48 = vadd.f32 %v2365_v44, %v7663_v56  ;;  %v2367_v49 = vpop.f32.mrb[15].mxu0  ;;  %v7691_v54 = vpop.f32.mrb[15].mxu1  ;;  %v5722_v61 = vmul.f32 -1.442695, %v6172_v46 }
 0x29d   : > { %6891 = vpow2.f32 %v5715_v36  ;;  %4579 = vmatpush1.bf16.msra.mxu1 %v6638_v35  ;;  %v5721_v28 = vmul.f32 -1.442695, %v6165_v43  ;;  %4368 = vmatprep.subr.bf16.mxu0 %v6643_v37  ;;  %v6167_v51 = vadd.f32 %v2367_v49, %v7669_v58  ;;  %v6650_v58 = vld [vmem:[#allocation8 + $0x568] ss:$16 sps:$4 sm:$0xff]   ;;  %v6667_v34 = vld [vmem:[#allocation8 + $0x5c4] ss:$16 sps:$4 sm:$0xff]   ;;  %v6174_v35 = vadd.f32 %v7688_v50, %v7666_v57 }
 0x29e   : > { %6893 = vpow2.f32 %v5720_v47  ;;  %v5728_v55 = vmul.f32 -1.442695, %v6166_v48  ;;  %4580 = vmatprep.subr.bf16.mxu1 %v6646_v40  ;;  %v6662_v33 = vld [vmem:[#allocation8 + $0x5a8] ss:$16 sps:$4 sm:$0xff]   ;;  %v6670_v37 = vld [vmem:[#allocation8 + $0x5cc] ss:$16 sps:$4 sm:$0xff]   ;;  %v6175_v38 = vadd.f32 %v7691_v54, %v7672_v60 }
 0x29f   : > { %6895 = vpow2.f32 %v5721_v28  ;;  %v5729_v56 = vmul.f32 -1.442695, %v6167_v51  ;;  %v6665_v44 = vld [vmem:[#allocation8 + $0x5c0] ss:$16 sps:$4 sm:$0xff]   ;;  %v6668_v57 = vld [vmem:[#allocation8 + $0x5c8] ss:$16 sps:$4 sm:$0xff]  }
 0x2a0   : > { %v6878_v62 = vpop.eup %6877  ;;  %6897 = vpow2.f32 %v5728_v55  ;;  %4369 = vmatpush1.bf16.msra.mxu0 %v6641_v45  ;;  %v5723_v45 = vmul.f32 -1.442695, %v6173_v30  ;;  %v5730_v47 = vmul.f32 -1.442695, %v6174_v35  ;;  %v6676_v60 = vld [vmem:[#allocation8 + $0x5ec] ss:$16 sps:$4 sm:$0xff]  }
 0x2a1   : > { %v6880_v0 = vpop.eup %6879  ;;  %v2576_v1 = vadd.f32 1.0, %v6878_v62  ;;  %6899 = vpow2.f32 %v5729_v56  ;;  %4581 = vmatpush1.bf16.msra.mxu1 %v6644_v26  ;;  %4370 = vmatprep.subr.bf16.mxu0 %v6649_v53  ;;  %v5731_v26 = vmul.f32 -1.442695, %v6175_v38  ;;  %v6671_v28 = vld [vmem:[#allocation8 + $0x5e0] ss:$16 sps:$4 sm:$0xff]  }
 0x2a2   : > { %v6882_v3 = vpop.eup %6881  ;;  %v2578_v4 = vadd.f32 1.0, %v6880_v0  ;;  %4582 = vmatprep.subr.bf16.mxu1 %v6652_v59  ;;  %6901 = vpow2.f32 %v5722_v61  ;;  %v6674_v53 = vld [vmem:[#allocation8 + $0x5e8] ss:$16 sps:$4 sm:$0xff]   ;;  %v6679_v54 = vld [vmem:[#allocation8 + $0x604] ss:$16 sps:$4 sm:$0xff]  }
 0x2a3   : > { %v6884_v6 = vpop.eup %6883  ;;  %6903 = vrcp.f32 %v2576_v1  ;;  %v2577_v7 = vadd.f32 1.0, %v6882_v3  ;;  %v6682_v56 = vld [vmem:[#allocation8 + $0x60c] ss:$16 sps:$4 sm:$0xff]   ;;  %v6677_v1 = vld [vmem:[#allocation8 + $0x600] ss:$16 sps:$4 sm:$0xff]  }
 0x2a4   : > { %v6886_v8 = vpop.eup %6885  ;;  %6905 = vrcp.f32 %v2578_v4  ;;  %v2579_v21 = vadd.f32 1.0, %v6884_v6  ;;  %4371 = vmatpush1.bf16.msra.mxu0 %v6647_v63  ;;  %v6685_v3 = vld [vmem:[#allocation8 + $0x624] ss:$16 sps:$4 sm:$0xff]   ;;  %v6688_v6 = vld [vmem:[#allocation8 + $0x62c] ss:$16 sps:$4 sm:$0xff]  }
 0x2a5   : > { %v6888_v10 = vpop.eup %6887  ;;  %6907 = vrcp.f32 %v2577_v7  ;;  %v2584_v11 = vadd.f32 1.0, %v6886_v8  ;;  %4583 = vmatpush1.bf16.msra.mxu1 %v6650_v58  ;;  %4372 = vmatprep.subr.bf16.mxu0 %v6655_v2  ;;  %v6680_v2 = vld [vmem:[#allocation8 + $0x608] ss:$16 sps:$4 sm:$0xff]   ;;  %v6703_v35 = vld [vmem:[#allocation8 + $0x684] ss:$16 sps:$4 sm:$0xff]  }
 0x2a6   : > { %v6890_v14 = vpop.eup %6889  ;;  %6909 = vrcp.f32 %v2579_v21  ;;  %v2586_v15 = vadd.f32 1.0, %v6888_v10  ;;  %4584 = vmatprep.subr.bf16.mxu1 %v6658_v5  ;;  %v6683_v21 = vld [vmem:[#allocation8 + $0x620] ss:$16 sps:$4 sm:$0xff]   ;;  %v6709_v38 = vld [vmem:[#allocation8 + $0x6a4] ss:$16 sps:$4 sm:$0xff]  }
 0x2a7   : > { %v6892_v17 = vpop.eup %6891  ;;  %6911 = vrcp.f32 %v2584_v11  ;;  %v2585_v18 = vadd.f32 1.0, %v6890_v14  ;;  %v6686_v11 = vld [vmem:[#allocation8 + $0x628] ss:$16 sps:$4 sm:$0xff]  }
 0x2a8   : > { %v6894_v25 = vpop.eup %6893  ;;  %6913 = vrcp.f32 %v2586_v15  ;;  %v2587_v27 = vadd.f32 1.0, %v6892_v17  ;;  %4373 = vmatpush1.bf16.msra.mxu0 %v6653_v9  ;;  %v6694_v15 = vld [vmem:[#allocation8 + $0x64c] ss:$16 sps:$4 sm:$0xff]  }
 0x2a9   : > { %v6896_v31 = vpop.eup %6895  ;;  %6915 = vrcp.f32 %v2585_v18  ;;  %v2592_v32 = vadd.f32 1.0, %v6894_v25  ;;  %4585 = vmatpush1.bf16.msra.mxu1 %v6656_v12  ;;  %4374 = vmatprep.subr.bf16.mxu0 %v6661_v13  ;;  %v6691_v13 = vld [vmem:[#allocation8 + $0x644] ss:$16 sps:$4 sm:$0xff]   ;;  %v6689_v25 = vld [vmem:[#allocation8 + $0x640] ss:$16 sps:$4 sm:$0xff]  }
 0x2aa   : > { %v6898_v36 = vpop.eup %6897  ;;  %6917 = vrcp.f32 %v2587_v27  ;;  %v2593_v52 = vadd.f32 1.0, %v6896_v31  ;;  %4586 = vmatprep.subr.bf16.mxu1 %v6664_v16  ;;  %v6697_v31 = vld [vmem:[#allocation8 + $0x664] ss:$16 sps:$4 sm:$0xff]  }
 0x2ab   : > { %v6900_v39 = vpop.eup %6899  ;;  %6919 = vrcp.f32 %v2592_v32  ;;  %v2600_v40 = vadd.f32 1.0, %v6898_v36  ;;  %v6700_v32 = vld [vmem:[#allocation8 + $0x66c] ss:$16 sps:$4 sm:$0xff]  }
 0x2ac   : > { %v6902_v42 = vpop.eup %6901  ;;  %6921 = vrcp.f32 %v2593_v52  ;;  %v2601_v43 = vadd.f32 1.0, %v6900_v39  ;;  %4375 = vmatpush1.bf16.msra.mxu0 %v6659_v29  ;;  %v6692_v29 = vld [vmem:[#allocation8 + $0x648] ss:$16 sps:$4 sm:$0xff]   ;;  %v6706_v36 = vld [vmem:[#allocation8 + $0x68c] ss:$16 sps:$4 sm:$0xff]  }
 0x2ad   : > { %v6904_v46 = vpop.eup %6903  ;;  %6923 = vrcp.f32 %v2600_v40  ;;  %4587 = vmatpush1.bf16.msra.mxu1 %v6662_v33  ;;  %4376 = vmatprep.subr.bf16.mxu0 %v6667_v34  ;;  %v2594_v10 = vadd.f32 1.0, %v6902_v42  ;;  %v6695_v33 = vld [vmem:[#allocation8 + $0x660] ss:$16 sps:$4 sm:$0xff]   ;;  %v6698_v34 = vld [vmem:[#allocation8 + $0x668] ss:$16 sps:$4 sm:$0xff]  }
 0x2ae   : > { %v6906_v48 = vpop.eup %6905  ;;  %6925 = vrcp.f32 %v2601_v43  ;;  %4588 = vmatprep.subr.bf16.mxu1 %v6670_v37  ;;  %v6701_v52 = vld [vmem:[#allocation8 + $0x680] ss:$16 sps:$4 sm:$0xff]   ;;  %v6704_v37 = vld [vmem:[#allocation8 + $0x688] ss:$16 sps:$4 sm:$0xff]   ;;  %v6712_v40 = vld [vmem:[#allocation8 + $0x6ac] ss:$16 sps:$4 sm:$0xff]  }
 0x2af   : > { %v6908_v49 = vpop.eup %6907  ;;  %6927 = vpow2.f32 %v5723_v45 }
 0x2b0   : > { %v6910_v50 = vpop.eup %6909  ;;  %4377 = vmatpush1.bf16.msra.mxu0 %v6665_v44  ;;  %6929 = vpow2.f32 %v5730_v47  ;;  %v6707_v44 = vld [vmem:[#allocation8 + $0x6a0] ss:$16 sps:$4 sm:$0xff]   ;;  %v6718_v47 = vld [vmem:[#allocation8 + $0x6cc] ss:$16 sps:$4 sm:$0xff]  }
 0x2b1   : > { %v6912_v51 = vpop.eup %6911  ;;  %4589 = vmatpush1.bf16.msra.mxu1 %v6668_v57  ;;  %4378 = vmatprep.subr.bf16.mxu0 %v6673_v41  ;;  %6931 = vpow2.f32 %v5731_v26  ;;  %v6715_v57 = vld [vmem:[#allocation8 + $0x6c4] ss:$16 sps:$4 sm:$0xff]   ;;  %v6716_v26 = vld [vmem:[#allocation8 + $0x6c8] ss:$16 sps:$4 sm:$0xff]  }
 0x2b2   : > { %v6914_v55 = vpop.eup %6913  ;;  %4590 = vmatprep.subr.bf16.mxu1 %v6676_v60  ;;  %v2672_v59 = vpack.c.bf16 %v6912_v51, %v6904_v46  ;;  %6933 = vrcp.f32 %v2594_v10  ;;  %v6710_v46 = vld [vmem:[#allocation8 + $0x6a8] ss:$16 sps:$4 sm:$0xff]   ;;  %v6713_v60 = vld [vmem:[#allocation8 + $0x6c0] ss:$16 sps:$4 sm:$0xff]  }
 0x2b3   : > { %v6916_v61 = vpop.eup %6915  ;;  %v7699_v62 = vpack.c.bf16 %v6914_v55, %v6906_v48  ;;  %v6722_v51 = vld [vmem:[#allocation8 + $0x6e8] ss:$16 sps:$4 sm:$0xff]   ;;  %v6725_v55 = vld [vmem:[#allocation8 + $0x700] ss:$16 sps:$4 sm:$0xff]  }
 0x2b4   : > { %v6918_v63 = vpop.eup %6917  ;;  %4379 = vmatpush1.bf16.msra.mxu0 %v6671_v28  ;;  %v2673_v0 = vpack.c.bf16 %v6916_v61, %v6908_v49  ;;  %v6721_v49 = vld [vmem:[#allocation8 + $0x6e4] ss:$16 sps:$4 sm:$0xff]   ;;  %v6719_v28 = vld [vmem:[#allocation8 + $0x6e0] ss:$16 sps:$4 sm:$0xff]   ;;  %v6752_v10 = vld [vmem:[#allocation8 + $0x788] ss:$16 sps:$4 sm:$0xff]  }
 0x2b5   : > { %v6920_v58 = vpop.eup %6919  ;;  %4591 = vmatpush1.bf16.msra.mxu1 %v6674_v53  ;;  %4401 = vmatprep.subr.bf16.mxu0 %v6679_v54  ;;  %v2675_v4 = vpack.c.bf16 %v6918_v63, %v6910_v50  ;;  %v6724_v50 = vld [vmem:[#allocation8 + $0x6ec] ss:$16 sps:$4 sm:$0xff]   ;;  %v6727_v53 = vld [vmem:[#allocation8 + $0x704] ss:$16 sps:$4 sm:$0xff]   ;;  %v6731_v63 = vld [vmem:[#allocation8 + $0x720] ss:$16 sps:$4 sm:$0xff]  }
 0x2b6   : > { %v6922_v5 = vpop.eup %6921  ;;  %4380 = vmatprep.mubr.bf16.mxu0 %v2673_v0  ;;  %4592 = vmatprep.mubr.bf16.mxu1 %v2673_v0  ;;  %v6730_v54 = vld [vmem:[#allocation8 + $0x70c] ss:$16 sps:$4 sm:$0xff]   ;;  %v6733_v61 = vld [vmem:[#allocation8 + $0x724] ss:$16 sps:$4 sm:$0xff]   ;;  %v6734_v0 = vld [vmem:[#allocation8 + $0x728] ss:$16 sps:$4 sm:$0xff]  }
 0x2b7   : > { %v6924_v7 = vpop.eup %6923  ;;  %4613 = vmatprep.subr.bf16.mxu1 %v6682_v56  ;;  %4381 = vmatmul.mubr.bf16.vlgmr.msra.gmra.mrb[16].mxu0 %v2672_v59  ;;  %v6736_v56 = vld [vmem:[#allocation8 + $0x72c] ss:$16 sps:$4 sm:$0xff]  }
 0x2b8   : > { %v6926_v8 = vpop.eup %6925  ;;  %4402 = vmatpush1.bf16.msra.mxu0 %v6677_v1  ;;  %4593 = vmatmul.mubr.bf16.vlgmr.msra.gmra.mrb[16].mxu1 %v2672_v59  ;;  %v2680_v9 = vpack.c.bf16 %v6924_v7, %v6920_v58  ;;  %v6728_v59 = vld [vmem:[#allocation8 + $0x708] ss:$16 sps:$4 sm:$0xff]   ;;  %v6739_v1 = vld [vmem:[#allocation8 + $0x744] ss:$16 sps:$4 sm:$0xff]   ;;  %v6742_v58 = vld [vmem:[#allocation8 + $0x74c] ss:$16 sps:$4 sm:$0xff]  }
 0x2b9   : > { %4614 = vmatpush1.bf16.msra.mxu1 %v6680_v2  ;;  %4403 = vmatprep.subr.bf16.mxu0 %v6685_v3  ;;  %v2681_v12 = vpack.c.bf16 %v6926_v8, %v6922_v5  ;;  %v6928_v14 = vpop.eup %6927  ;;  %v6737_v2 = vld [vmem:[#allocation8 + $0x740] ss:$16 sps:$4 sm:$0xff]   ;;  %v6740_v3 = vld [vmem:[#allocation8 + $0x748] ss:$16 sps:$4 sm:$0xff]   ;;  %v6748_v5 = vld [vmem:[#allocation8 + $0x76c] ss:$16 sps:$4 sm:$0xff]  }
 0x2ba   : > { %4615 = vmatprep.subr.bf16.mxu1 %v6688_v6  ;;  %v6930_v16 = vpop.eup %6929  ;;  %v2595_v17 = vadd.f32 1.0, %v6928_v14  ;;  %v6743_v6 = vld [vmem:[#allocation8 + $0x760] ss:$16 sps:$4 sm:$0xff]   ;;  %v6746_v7 = vld [vmem:[#allocation8 + $0x768] ss:$16 sps:$4 sm:$0xff]  }
 0x2bb   : > { %4390 = vmatprep.mubr.bf16.mxu0 %v2681_v12  ;;  %4602 = vmatprep.mubr.bf16.mxu1 %v2681_v12  ;;  %v6932_v18 = vpop.eup %6931  ;;  %v2602_v27 = vadd.f32 1.0, %v6930_v16  ;;  %v6751_v8 = vld [vmem:[#allocation8 + $0x784] ss:$16 sps:$4 sm:$0xff]   ;;  %v6760_v12 = vld [vmem:[#allocation8 + $0x7ac] ss:$16 sps:$4 sm:$0xff]  }
 0x2bc   : > { %4404 = vmatpush1.bf16.msra.mxu0 %v6683_v21  ;;  %6935 = vrcp.f32 %v2595_v17  ;;  %v2603_v30 = vadd.f32 1.0, %v6932_v18  ;;  %v6934_v39 = vpop.eup %6933  ;;  %v6754_v21 = vld [vmem:[#allocation8 + $0x78c] ss:$16 sps:$4 sm:$0xff]   ;;  %v6758_v14 = vld [vmem:[#allocation8 + $0x7a8] ss:$16 sps:$4 sm:$0xff]  }
 0x2bd   : > { %4616 = vmatpush1.bf16.msra.mxu1 %v6686_v11  ;;  %4405 = vmatprep.subr.bf16.mxu0 %v6691_v13  ;;  %6937 = vrcp.f32 %v2602_v27  ;;  %v6757_v11 = vld [vmem:[#allocation8 + $0x7a4] ss:$16 sps:$4 sm:$0xff]   ;;  %v6755_v13 = vld [vmem:[#allocation8 + $0x7a0] ss:$16 sps:$4 sm:$0xff]   ;;  %v6766_v16 = vld [vmem:[#allocation8 + $0x7cc] ss:$16 sps:$4 sm:$0xff]  }
 0x2be   : > { %4617 = vmatprep.subr.bf16.mxu1 %v6694_v15  ;;  %6939 = vrcp.f32 %v2603_v30  ;;  %v6763_v15 = vld [vmem:[#allocation8 + $0x7c4] ss:$16 sps:$4 sm:$0xff]   ;;  %v6761_v17 = vld [vmem:[#allocation8 + $0x7c0] ss:$16 sps:$4 sm:$0xff]   ;;  %v6764_v18 = vld [vmem:[#allocation8 + $0x7c8] ss:$16 sps:$4 sm:$0xff]  }
 0x2bf   : > { %4391 = vmatmul.mubr.bf16.gmra.mrb[20].mxu0 %v2680_v9  ;;  %v6772_v27 = vld [vmem:[#allocation8 + $0x7ec] ss:$16 sps:$4 sm:$0xff]   ;;  %v6770_v30 = vld [vmem:[#allocation8 + $0x7e8] ss:$16 sps:$4 sm:$0xff]  }
 0x2c0   : > { %4406 = vmatpush1.bf16.msra.mxu0 %v6689_v25  ;;  %4603 = vmatmul.mubr.bf16.gmra.mrb[20].mxu1 %v2680_v9  ;;  %v6749_v9 = vld [vmem:[#allocation8 + $0x780] ss:$16 sps:$4 sm:$0xff]   ;;  %v6769_v25 = vld [vmem:[#allocation8 + $0x7e4] ss:$16 sps:$4 sm:$0xff]  }
 0x2c1   : > { %4618 = vmatpush1.bf16.msra.mxu1 %v6692_v29  ;;  %4433 = vmatprep.mubr.bf16.mxu0 %v2675_v4  ;;  %v6767_v29 = vld [vmem:[#allocation8 + $0x7e0] ss:$16 sps:$4 sm:$0xff]  }
 0x2c2   : > { %4645 = vmatprep.mubr.bf16.mxu1 %v2675_v4  ;;  %4407 = vmatprep.subr.bf16.mxu0 %v6697_v31  ;;  %v6745_v4 = vld [vmem:[#allocation8 + $0x764] ss:$16 sps:$4 sm:$0xff]  }
 0x2c3   : > { %4619 = vmatprep.subr.bf16.mxu1 %v6700_v32  ;;  %v6773_v31 = vld [vmem:[#allocation10 + $0x40] sm:$0xff]  }
 0x2c4   : > { %4408 = vmatpush1.bf16.msra.mxu0 %v6695_v33  ;;  %v6774_v32 = vld [vmem:[#allocation10 + $0xc0] sm:$0xff]  }
 0x2c5   : > { %4620 = vmatpush1.bf16.msra.mxu1 %v6698_v34  ;;  %4409 = vmatprep.subr.bf16.mxu0 %v6703_v35  ;;  %v6775_v33 = vld [vmem:[#allocation10] sm:$0xff]   ;;  %v6777_v35 = vld [vmem:[#allocation10 + $0x48] sm:$0xff]  }
 0x2c6   : > { %4621 = vmatprep.subr.bf16.mxu1 %v6706_v36  ;;  %v6936_v42 = vpop.eup %6935  ;;  %v6776_v34 = vld [vmem:[#allocation10 + $0x80] sm:$0xff]   ;;  %v6778_v36 = vld [vmem:[#allocation10 + $0xc8] sm:$0xff]  }
 0x2c7   : > { %v6938_v43 = vpop.eup %6937 }
 0x2c8   : > { %4410 = vmatpush1.bf16.msra.mxu0 %v6701_v52  ;;  %v6940_v45 = vpop.eup %6939  ;;  %v7701_v41 = vpack.c.bf16 %v6938_v43, %v6934_v39  ;;  %v6779_v52 = vld [vmem:[#allocation10 + $0x8] sm:$0xff]   ;;  %v6783_v39 = vld [vmem:[#allocation10 + $0x10] sm:$0xff]   ;;  %v6786_v43 = vld [vmem:[#allocation10 + $0xd8] sm:$0xff]  }
 0x2c9   : > { %4622 = vmatpush1.bf16.msra.mxu1 %v6704_v37  ;;  %4411 = vmatprep.subr.bf16.mxu0 %v6709_v38  ;;  %v7703_v48 = vpack.c.bf16 %v6940_v45, %v6936_v42  ;;  %v6781_v37 = vld [vmem:[#allocation10 + $0x50] sm:$0xff]   ;;  %v6785_v42 = vld [vmem:[#allocation10 + $0x58] sm:$0xff]  }
 0x2ca   : > { %4623 = vmatprep.subr.bf16.mxu1 %v6712_v40  ;;  %v6782_v38 = vld [vmem:[#allocation10 + $0xd0] sm:$0xff]   ;;  %v6788_v45 = vld [vmem:[#allocation10 + $0x98] sm:$0xff]  }
 0x2cb   : > { %v6784_v40 = vld [vmem:[#allocation10 + $0x90] sm:$0xff]  }
 0x2cc   : > { %4412 = vmatpush1.bf16.msra.mxu0 %v6707_v44  ;;  %v6787_v44 = vld [vmem:[#allocation10 + $0x18] sm:$0xff]  }
 0x2cd   : > { %4624 = vmatpush1.bf16.msra.mxu1 %v6710_v46  ;;  %4413 = vmatprep.subr.bf16.mxu0 %v6715_v57  ;;  %v6789_v46 = vld [vmem:[#allocation10 + $0x60] sm:$0xff]  }
 0x2ce   : > { %4625 = vmatprep.subr.bf16.mxu1 %v6718_v47  ;;  %v6790_v57 = vld [vmem:[#allocation10 + $0xe0] sm:$0xff]  }
 0x2cf   : > { %v6792_v47 = vld [vmem:[#allocation10 + $0xa0] sm:$0xff]  }
 0x2d0   : > { %4414 = vmatpush1.bf16.msra.mxu0 %v6713_v60  ;;  %v6794_v60 = vld [vmem:[#allocation10 + $0xe8] sm:$0xff]  }
 0x2d1   : > { %4626 = vmatpush1.bf16.msra.mxu1 %v6716_v26  ;;  %4415 = vmatprep.subr.bf16.mxu0 %v6721_v49  ;;  %v6795_v26 = vld [vmem:[#allocation10 + $0x28] sm:$0xff]  }
 0x2d2   : > { %4627 = vmatprep.subr.bf16.mxu1 %v6724_v50  ;;  %v6796_v49 = vld [vmem:[#allocation10 + $0xa8] sm:$0xff]   ;;  %v6797_v50 = vld [vmem:[#allocation10 + $0x70] sm:$0xff]  }
 0x2d4   : > { %4416 = vmatpush1.bf16.msra.mxu0 %v6719_v28  ;;  %v6798_v28 = vld [vmem:[#allocation10 + $0xf0] sm:$0xff]  }
 0x2d5   : > { %4628 = vmatpush1.bf16.msra.mxu1 %v6722_v51  ;;  %4417 = vmatprep.subr.bf16.mxu0 %v6727_v53  ;;  %v6799_v51 = vld [vmem:[#allocation10 + $0x30] sm:$0xff]  }
 0x2d6   : > { %4629 = vmatprep.subr.bf16.mxu1 %v6730_v54  ;;  %v6800_v53 = vld [vmem:[#allocation10 + $0xb0] sm:$0xff]   ;;  %v6801_v54 = vld [vmem:[#allocation10 + $0x78] sm:$0xff]  }
 0x2d8   : > { %4418 = vmatpush1.bf16.msra.mxu0 %v6725_v55  ;;  %v6802_v55 = vld [vmem:[#allocation10 + $0xf8] sm:$0xff]  }
 0x2d9   : > { %4630 = vmatpush1.bf16.msra.mxu1 %v6728_v59  ;;  %4419 = vmatprep.subr.bf16.mxu0 %v6733_v61  ;;  %v6803_v59 = vld [vmem:[#allocation10 + $0x38] sm:$0xff]  }
 0x2da   : > { %4631 = vmatprep.subr.bf16.mxu1 %v6736_v56  ;;  %v6804_v61 = vld [vmem:[#allocation10 + $0xb8] sm:$0xff]  }
 0x2db   : > { %v2940_v56 = vld [vmem:[%s7800_s4] sm:$0xf] }
 0x2dc   : > { %4420 = vmatpush1.bf16.msra.mxu0 %v6731_v63  ;;  %v2945_v63 = vrot.slane %v2940_v56, %v694_v20 }
 0x2dd   : > { %4632 = vmatpush1.bf16.msra.mxu1 %v6734_v0  ;;  %4421 = vmatprep.subr.bf16.mxu0 %v6739_v1  ;;  %v7718_v0 = vrot.slane %v2940_v56, %v702_v22  ;;  %v7722_v1 = vrot.slane %v2940_v56, %v698_v23 }
 0x2de   : > { %4633 = vmatprep.subr.bf16.mxu1 %v6742_v58  ;;  %v7726_v58 = vrot.slane %v2940_v56, %v706_v24 }
 0x2e0   : > { %4422 = vmatpush1.bf16.msra.mxu0 %v6737_v2 }
 0x2e1   : > { %4634 = vmatpush1.bf16.msra.mxu1 %v6740_v3  ;;  %4423 = vmatprep.subr.bf16.mxu0 %v6745_v4 }
 0x2e2   : > { %4635 = vmatprep.subr.bf16.mxu1 %v6748_v5 }
 0x2e4   : > { %4424 = vmatpush1.bf16.msra.mxu0 %v6743_v6 }
 0x2e5   : > { %4636 = vmatpush1.bf16.msra.mxu1 %v6746_v7  ;;  %4425 = vmatprep.subr.bf16.mxu0 %v6751_v8 }
 0x2e6   : > { %4637 = vmatprep.subr.bf16.mxu1 %v6754_v21 }
 0x2e8   : > { %4426 = vmatpush1.bf16.msra.mxu0 %v6749_v9 }
 0x2e9   : > { %4638 = vmatpush1.bf16.msra.mxu1 %v6752_v10  ;;  %4427 = vmatprep.subr.bf16.mxu0 %v6757_v11 }
 0x2ea   : > { %4639 = vmatprep.subr.bf16.mxu1 %v6760_v12 }
 0x2ec   : > { %4428 = vmatpush1.bf16.msra.mxu0 %v6755_v13 }
 0x2ed   : > { %4640 = vmatpush1.bf16.msra.mxu1 %v6758_v14  ;;  %4429 = vmatprep.subr.bf16.mxu0 %v6763_v15 }
 0x2ee   : > { %4641 = vmatprep.subr.bf16.mxu1 %v6766_v16 }
 0x2f0   : > { %4430 = vmatpush1.bf16.msra.mxu0 %v6761_v17 }
 0x2f1   : > { %4642 = vmatpush1.bf16.msra.mxu1 %v6764_v18  ;;  %4431 = vmatprep.subr.bf16.mxu0 %v6769_v25 }
 0x2f2   : > { %4643 = vmatprep.subr.bf16.mxu1 %v6772_v27 }
 0x2f4   : > { %4432 = vmatpush1.bf16.msra.mxu0 %v6767_v29 }
 0x2f5   : > { %4644 = vmatpush1.bf16.msra.mxu1 %v6770_v30  ;;  %6058 = vmatprep.subr.bf16.mxu0 %v6773_v31 }
 0x2f6   : > { %6086 = vmatprep.subr.bf16.mxu1 %v6774_v32 }
 0x2f7   : > { %4434 = vmatmul.mubr.bf16.vlgmr.msra.gmra.mrb[16].mxu0 %v7699_v62 }
 0x2f8   : > { %4646 = vmatmul.mubr.bf16.vlgmr.msra.gmra.mrb[16].mxu1 %v7699_v62  ;;  %4443 = vmatprep.mubr.bf16.mxu0 %v7703_v48  ;;  %v6780_v62 = vld [vmem:[#allocation10 + $0x88] sm:$0xff]  }
 0x2f9   : > { %4655 = vmatprep.mubr.bf16.mxu1 %v7703_v48  ;;  %6059 = vmatpush3.bf16.msra.mxu0 %v6775_v33  ;;  %v6793_v48 = vld [vmem:[#allocation10 + $0x68] sm:$0xff]  }
 0x2fa   : > { %6087 = vmatpush3.bf16.msra.mxu1 %v6776_v34  ;;  %6060 = vmatprep.subr.bf16.mxu0 %v6777_v35 }
 0x2fb   : > { %6088 = vmatprep.subr.bf16.mxu1 %v6778_v36 }
 0x2fd   : > { %6061 = vmatpush3.bf16.msra.mxu0 %v6779_v52 }
 0x2fe   : > { %6089 = vmatpush3.bf16.msra.mxu1 %v6780_v62  ;;  %6062 = vmatprep.subr.bf16.mxu0 %v6781_v37 }
 0x2ff   : > { %4444 = vmatmul.mubr.bf16.gmra.mrb[20].mxu0 %v7701_v41  ;;  %6090 = vmatprep.subr.bf16.mxu1 %v6782_v38 }
 0x300   : > { %4656 = vmatmul.mubr.bf16.gmra.mrb[20].mxu1 %v7701_v41  ;;  %v6791_v41 = vld [vmem:[#allocation10 + $0x20] sm:$0xff]  }
 0x301   : > { %6063 = vmatpush3.bf16.msra.mxu0 %v6783_v39 }
 0x302   : > { %6091 = vmatpush3.bf16.msra.mxu1 %v6784_v40  ;;  %6064 = vmatprep.subr.bf16.mxu0 %v6785_v42 }
 0x303   : > { %6092 = vmatprep.subr.bf16.mxu1 %v6786_v43 }
 0x305   : > { %6065 = vmatpush3.bf16.msra.mxu0 %v6787_v44 }
 0x306   : > { %6093 = vmatpush3.bf16.msra.mxu1 %v6788_v45  ;;  %6066 = vmatprep.subr.bf16.mxu0 %v6789_v46 }
 0x307   : > { %6094 = vmatprep.subr.bf16.mxu1 %v6790_v57 }
 0x309   : > { %6067 = vmatpush3.bf16.msra.mxu0 %v6791_v41 }
 0x30a   : > { %6095 = vmatpush3.bf16.msra.mxu1 %v6792_v47  ;;  %6068 = vmatprep.subr.bf16.mxu0 %v6793_v48 }
 0x30b   : > { %6096 = vmatprep.subr.bf16.mxu1 %v6794_v60 }
 0x30d   : > { %6069 = vmatpush3.bf16.msra.mxu0 %v6795_v26 }
 0x30e   : > { %6097 = vmatpush3.bf16.msra.mxu1 %v6796_v49  ;;  %6070 = vmatprep.subr.bf16.mxu0 %v6797_v50 }
 0x30f   : > { %6098 = vmatprep.subr.bf16.mxu1 %v6798_v28 }
 0x311   : > { %6071 = vmatpush3.bf16.msra.mxu0 %v6799_v51 }
 0x312   : > { %6099 = vmatpush3.bf16.msra.mxu1 %v6800_v53  ;;  %6072 = vmatprep.subr.bf16.mxu0 %v6801_v54 }
 0x313   : > { %6100 = vmatprep.subr.bf16.mxu1 %v6802_v55 }
 0x315   : > { %6073 = vmatpush3.bf16.msra.mxu0 %v6803_v59 }
 0x316   : > { %6101 = vmatpush3.bf16.msra.mxu1 %v6804_v61 }
 0x3ca   : > { %v4435_v2 = vpop.f32.mrb[16].mxu0 }
 0x3cb   : > { %v6176_v3 = vadd.f32 %v4435_v2, %v2945_v63  ;;  %v4647_v4 = vpop.f32.mrb[16].mxu1  ;;  %v4437_v5 = vpop.f32.mrb[17].mxu0 }
 0x3cc   : > { %v6184_v6 = vadd.f32 %v4647_v4, %v7718_v0  ;;  %v6177_v20 = vadd.f32 %v4437_v5, %v7722_v1  ;;  %v4649_v7 = vpop.f32.mrb[17].mxu1  ;;  %v4439_v8 = vpop.f32.mrb[18].mxu0 }
 0x3cd   : > { %v5988_v22 = vmul.f32 -1.442695, %v6176_v3  ;;  %v6185_v21 = vadd.f32 %v4649_v7, %v7726_v58  ;;  %v6178_v9 = vadd.f32 %v4439_v8, %v2945_v63  ;;  %v4651_v23 = vpop.f32.mrb[18].mxu1  ;;  %v4441_v10 = vpop.f32.mrb[19].mxu0 }
 0x3ce   : > { %v5990_v11 = vmul.f32 -1.442695, %v6184_v6  ;;  %v5989_v19 = vmul.f32 -1.442695, %v6177_v20  ;;  %v6186_v24 = vadd.f32 %v4651_v23, %v7718_v0  ;;  %v6179_v12 = vadd.f32 %v4441_v10, %v7722_v1  ;;  %v4653_v13 = vpop.f32.mrb[19].mxu1 }
 0x3cf   : > { %6941 = vpow2.f32 %v5988_v22  ;;  %v5991_v14 = vmul.f32 -1.442695, %v6185_v21  ;;  %v5992_v15 = vmul.f32 -1.442695, %v6178_v9  ;;  %v6187_v16 = vadd.f32 %v4653_v13, %v7726_v58 }
 0x3d0   : > { %6943 = vpow2.f32 %v5990_v11  ;;  %v5994_v17 = vmul.f32 -1.442695, %v6186_v24  ;;  %v5993_v18 = vmul.f32 -1.442695, %v6179_v12 }
 0x3d1   : > { %6945 = vpow2.f32 %v5989_v19  ;;  %v5995_v25 = vmul.f32 -1.442695, %v6187_v16 }
 0x3d2   : > { %6947 = vpow2.f32 %v5991_v14  ;;  %v4445_v27 = vpop.f32.mrb[20].mxu0 }
 0x3d3   : > { %6949 = vpow2.f32 %v5992_v15  ;;  %v6180_v29 = vadd.f32 %v4445_v27, %v2945_v63  ;;  %v4657_v30 = vpop.f32.mrb[20].mxu1  ;;  %v4447_v31 = vpop.f32.mrb[21].mxu0 }
 0x3d4   : > { %6951 = vpow2.f32 %v5994_v17  ;;  %v6188_v32 = vadd.f32 %v4657_v30, %v7718_v0  ;;  %v6181_v33 = vadd.f32 %v4447_v31, %v7722_v1  ;;  %v4659_v34 = vpop.f32.mrb[21].mxu1  ;;  %v4449_v35 = vpop.f32.mrb[22].mxu0 }
 0x3d5   : > { %6953 = vpow2.f32 %v5993_v18  ;;  %v5996_v36 = vmul.f32 -1.442695, %v6180_v29  ;;  %v6182_v52 = vadd.f32 %v4449_v35, %v2945_v63  ;;  %v4661_v62 = vpop.f32.mrb[22].mxu1  ;;  %v4451_v37 = vpop.f32.mrb[23].mxu0  ;;  %v6189_v48 = vadd.f32 %v4659_v34, %v7726_v58 }
 0x3d6   : > { %6955 = vpow2.f32 %v5995_v25  ;;  %v5998_v38 = vmul.f32 -1.442695, %v6188_v32  ;;  %v5997_v39 = vmul.f32 -1.442695, %v6181_v33  ;;  %v4663_v40 = vpop.f32.mrb[23].mxu1  ;;  %v6190_v56 = vadd.f32 %v4661_v62, %v7718_v0 }
 0x3d7   : > { %6957 = vpow2.f32 %v5996_v36  ;;  %v6000_v42 = vmul.f32 -1.442695, %v6182_v52  ;;  %v5999_v55 = vmul.f32 -1.442695, %v6189_v48  ;;  %v6183_v63 = vadd.f32 %v4451_v37, %v7722_v1  ;;  %v6812_v48 = vld [vmem:[#allocation11 + $0x38] sm:$0xff]  }
 0x3d8   : > { %6959 = vpow2.f32 %v5998_v38  ;;  %v6191_v4 = vadd.f32 %v4663_v40, %v7726_v58  ;;  %v6002_v20 = vmul.f32 -1.442695, %v6190_v56 }
 0x3d9   : > { %v6942_v43 = vpop.eup %6941  ;;  %6961 = vpow2.f32 %v5997_v39  ;;  %v6001_v22 = vmul.f32 -1.442695, %v6183_v63 }
 0x3da   : > { %v6944_v44 = vpop.eup %6943  ;;  %v4714_v45 = vadd.f32 1.0, %v6942_v43  ;;  %6963 = vpow2.f32 %v6000_v42  ;;  %v6003_v9 = vmul.f32 -1.442695, %v6191_v4  ;;  %v6805_v43 = vld [vmem:[#allocation11] sm:$0xff]  }
 0x3db   : > { %v6946_v46 = vpop.eup %6945  ;;  %v4716_v57 = vadd.f32 1.0, %v6944_v44  ;;  %6124 = vmatprep.subr.bf16.mxu0 %v6805_v43  ;;  %v6806_v44 = vld [vmem:[#allocation11 + $0x8] sm:$0xff]  }
 0x3dc   : > { %v6948_v41 = vpop.eup %6947  ;;  %6965 = vrcp.f32 %v4714_v45  ;;  %v4715_v47 = vadd.f32 1.0, %v6946_v46  ;;  %v6807_v45 = vld [vmem:[#allocation11 + $0x10] sm:$0xff]   ;;  %v6808_v46 = vld [vmem:[#allocation11 + $0x18] sm:$0xff]  }
 0x3dd   : > { %v6950_v60 = vpop.eup %6949  ;;  %6967 = vrcp.f32 %v4716_v57  ;;  %v4717_v26 = vadd.f32 1.0, %v6948_v41  ;;  %v6809_v57 = vld [vmem:[#allocation11 + $0x20] sm:$0xff]   ;;  %v6810_v41 = vld [vmem:[#allocation11 + $0x28] sm:$0xff]  }
 0x3de   : > { %v6952_v49 = vpop.eup %6951  ;;  %6969 = vrcp.f32 %v4715_v47  ;;  %v4718_v50 = vadd.f32 1.0, %v6950_v60  ;;  %v6811_v47 = vld [vmem:[#allocation11 + $0x30] sm:$0xff]  }
 0x3df   : > { %v6954_v28 = vpop.eup %6953  ;;  %6971 = vrcp.f32 %v4717_v26  ;;  %v4720_v51 = vadd.f32 1.0, %v6952_v49  ;;  %v6004_v49 = vld [vmem:[%s7802_s6] ss:$0 sm:$0xff] }
 0x3e0   : > { %v6956_v53 = vpop.eup %6955  ;;  %6973 = vrcp.f32 %v4718_v50  ;;  %v4719_v54 = vadd.f32 1.0, %v6954_v28 }
 0x3e1   : > { %v6958_v59 = vpop.eup %6957  ;;  %6975 = vrcp.f32 %v4720_v51  ;;  %v4721_v61 = vadd.f32 1.0, %v6956_v53 }
 0x3e2   : > { %6977 = vrcp.f32 %v4719_v54  ;;  %v6960_v2 = vpop.eup %6959  ;;  %v4722_v3 = vadd.f32 1.0, %v6958_v59 }
 0x3e3   : > { %6979 = vrcp.f32 %v4721_v61  ;;  %v6962_v5 = vpop.eup %6961  ;;  %v4724_v15 = vadd.f32 1.0, %v6960_v2 }
 0x3e4   : > { %6981 = vpow2.f32 %v5999_v55  ;;  %v6964_v6 = vpop.eup %6963  ;;  %v4723_v16 = vadd.f32 1.0, %v6962_v5 }
 0x3e5   : > { %v4726_v8 = vadd.f32 1.0, %v6964_v6  ;;  %6983 = vrcp.f32 %v4722_v3 }
 0x3e6   : > { %v6966_v7 = vpop.eup %6965 }
 0x3e7   : > { %v6968_v21 = vpop.eup %6967  ;;  %6985 = vrcp.f32 %v4726_v8 }
 0x3e8   : > { %v6970_v23 = vpop.eup %6969  ;;  %6987 = vpow2.f32 %v6002_v20 }
 0x3e9   : > { %v6972_v0 = vpop.eup %6971  ;;  %6989 = vpow2.f32 %v6001_v22 }
 0x3ea   : > { %v6974_v1 = vpop.eup %6973  ;;  %6991 = vpow2.f32 %v6003_v9 }
 0x3eb   : > { %v6976_v10 = vpop.eup %6975  ;;  %v4762_v11 = vpack.c.bf16 %v6974_v1, %v6966_v7  ;;  %6993 = vrcp.f32 %v4724_v15 }
 0x3ec   : > { %v6978_v58 = vpop.eup %6977  ;;  %v4764_v19 = vpack.c.bf16 %v6976_v10, %v6968_v21  ;;  %6995 = vrcp.f32 %v4723_v16 }
 0x3ed   : > { %v6980_v24 = vpop.eup %6979  ;;  %v4763_v12 = vpack.c.bf16 %v6978_v58, %v6970_v23 }
 0x3ee   : > { %v6982_v13 = vpop.eup %6981  ;;  %v4765_v14 = vpack.c.bf16 %v6980_v24, %v6972_v0 }
 0x3ef   : > { %5065 = vmatprep.mubr.bf16.mxu0 %v4763_v12  ;;  %v6984_v17 = vpop.eup %6983  ;;  %v4725_v18 = vadd.f32 1.0, %v6982_v13 }
 0x3f0   : > { %5114 = vmatprep.mubr.bf16.mxu1 %v4765_v14  ;;  %5066 = vmatmul.mubr.bf16.vlgmr.msra.gmra.mrb[24].mxu0 %v4762_v11 }
 0x3f1   : > { %5115 = vmatmul.mubr.bf16.vlgmr.msra.gmra.mrb[24].mxu1 %v4764_v19  ;;  %v6986_v25 = vpop.eup %6985  ;;  %6997 = vrcp.f32 %v4725_v18  ;;  %6125 = vmatpush3.bf16.msra.mxu0 %v6805_v43 }
 0x3f2   : > { %v6988_v27 = vpop.eup %6987  ;;  %v4766_v29 = vpack.c.bf16 %v6986_v25, %v6984_v17  ;;  %6126 = vmatprep.subr.bf16.mxu0 %v6806_v44 }
 0x3f3   : > { %v6990_v30 = vpop.eup %6989  ;;  %v4728_v31 = vadd.f32 1.0, %v6988_v27 }
 0x3f4   : > { %v6992_v32 = vpop.eup %6991  ;;  %v4727_v33 = vadd.f32 1.0, %v6990_v30 }
 0x3f5   : > { %6999 = vrcp.f32 %v4728_v31  ;;  %v4729_v34 = vadd.f32 1.0, %v6992_v32  ;;  %v6994_v35 = vpop.eup %6993  ;;  %6127 = vmatpush3.bf16.msra.mxu0 %v6806_v44 }
 0x3f6   : > { %7001 = vrcp.f32 %v4727_v33  ;;  %v6996_v36 = vpop.eup %6995  ;;  %6128 = vmatprep.subr.bf16.mxu0 %v6807_v45 }
 0x3f7   : > { %7003 = vrcp.f32 %v4729_v34 }
 0x3f9   : > { %6129 = vmatpush3.bf16.msra.mxu0 %v6807_v45 }
 0x3fa   : > { %6130 = vmatprep.subr.bf16.mxu0 %v6808_v46 }
 0x3fb   : > { %v6998_v52 = vpop.eup %6997 }
 0x3fd   : > { %6131 = vmatpush3.bf16.msra.mxu0 %v6808_v46 }
 0x3fe   : > { %6132 = vmatprep.subr.bf16.mxu0 %v6809_v57 }
 0x3ff   : > { %v7000_v62 = vpop.eup %6999 }
 0x400   : > { %v7002_v37 = vpop.eup %7001  ;;  %v4768_v38 = vpack.c.bf16 %v7000_v62, %v6994_v35 }
 0x401   : > { %v7004_v39 = vpop.eup %7003  ;;  %v4767_v40 = vpack.c.bf16 %v7002_v37, %v6996_v36  ;;  %6133 = vmatpush3.bf16.msra.mxu0 %v6809_v57  ;;  %v6041_v37 = vld [vmem:[%s7804_s8] ss:$0 sm:$0xff] }
 0x402   : > { %v4769_v42 = vpack.c.bf16 %v7004_v39, %v6998_v52  ;;  %6134 = vmatprep.subr.bf16.mxu0 %v6810_v41 }
 0x403   : > { %5073 = vmatprep.mubr.bf16.mxu0 %v4767_v40 }
 0x404   : > { %5122 = vmatprep.mubr.bf16.mxu1 %v4769_v42  ;;  %5074 = vmatmul.mubr.bf16.gmra.mrb[28].mxu0 %v4766_v29 }
 0x405   : > { %5123 = vmatmul.mubr.bf16.gmra.mrb[28].mxu1 %v4768_v38  ;;  %6135 = vmatpush3.bf16.msra.mxu0 %v6810_v41 }
 0x406   : > { %6136 = vmatprep.subr.bf16.mxu0 %v6811_v47 }
 0x409   : > { %6137 = vmatpush3.bf16.msra.mxu0 %v6811_v47 }
 0x40a   : > { %6138 = vmatprep.subr.bf16.mxu0 %v6812_v48 }
 0x40d   : > { %6139 = vmatpush3.bf16.msra.mxu0 %v6812_v48 }
 0x4c3   : > { %v6074_v60 = vpop.f32.mrb[24].mxu0 }
 0x4c4   : > { %v6102_v26 = vpop.f32.mrb[24].mxu1  ;;  %v6075_v50 = vpop.f32.mrb[25].mxu0 }
 0x4c5   : > { %v6076_v28 = vadd.f32 %v6075_v50, %v6074_v60  ;;  %v6103_v51 = vpop.f32.mrb[25].mxu1  ;;  %v6077_v53 = vpop.f32.mrb[26].mxu0 }
 0x4c6   : > { %v6104_v54 = vadd.f32 %v6103_v51, %v6102_v26  ;;  %v6105_v55 = vpop.f32.mrb[26].mxu1  ;;  %v6078_v59 = vpop.f32.mrb[27].mxu0 }
 0x4c7   : > { %v5068_v61 = vadd.f32 %v6076_v28, %v6004_v49  ;;  %v6079_v56 = vadd.f32 %v6078_v59, %v6077_v53  ;;  %v6106_v63 = vpop.f32.mrb[27].mxu1 }
 0x4c8   : > { %v6107_v2 = vadd.f32 %v6106_v63, %v6105_v55 }
 0x4c9   : > { %v5117_v3 = vadd.f32 %v6104_v54, %v5068_v61  ;;  %v5071_v4 = vadd.f32 %v6079_v56, %v6004_v49 }
 0x4cb   : > { %v6037_v5 = vmul.f32 -1.442695, %v5117_v3  ;;  %v5120_v6 = vadd.f32 %v6107_v2, %v5071_v4 }
 0x4cd   : > { %7005 = vpow2.f32 %v6037_v5  ;;  %v6038_v20 = vmul.f32 -1.442695, %v5120_v6 }
 0x4cf   : > { %7007 = vpow2.f32 %v6038_v20 }
 0x4d7   : > { %v7006_v7 = vpop.eup %7005  ;;  %v6080_v22 = vpop.f32.mrb[28].mxu0 }
 0x4d8   : > { %v5143_v8 = vadd.f32 1.0, %v7006_v7  ;;  %v6108_v9 = vpop.f32.mrb[28].mxu1  ;;  %v6081_v23 = vpop.f32.mrb[29].mxu0 }
 0x4d9   : > { %v7008_v21 = vpop.eup %7007  ;;  %v6082_v1 = vadd.f32 %v6081_v23, %v6080_v22  ;;  %v6109_v10 = vpop.f32.mrb[29].mxu1 }
 0x4da   : > { %v5144_v0 = vadd.f32 1.0, %v7008_v21  ;;  %v6083_v11 = vpop.f32.mrb[30].mxu0  ;;  %7009 = vrcp.f32 %v5143_v8  ;;  %v6110_v58 = vadd.f32 %v6109_v10, %v6108_v9  ;;  %v6111_v19 = vpop.f32.mrb[30].mxu1 }
 0x4db   : > { %v6084_v24 = vpop.f32.mrb[31].mxu0  ;;  %v5076_v12 = vadd.f32 %v6082_v1, %v6004_v49  ;;  %v6112_v14 = vpop.f32.mrb[31].mxu1 }
 0x4dc   : > { %7011 = vrcp.f32 %v5144_v0  ;;  %v6085_v13 = vadd.f32 %v6084_v24, %v6083_v11  ;;  %v6113_v15 = vadd.f32 %v6112_v14, %v6111_v19 }
 0x4dd   : > { %v5125_v16 = vadd.f32 %v6110_v58, %v5076_v12 }
 0x4de   : > { %v5079_v17 = vadd.f32 %v6085_v13, %v6004_v49 }
 0x4df   : > { %v6039_v18 = vmul.f32 -1.442695, %v5125_v16 }
 0x4e0   : > { %v5128_v25 = vadd.f32 %v6113_v15, %v5079_v17 }
 0x4e1   : > { %7013 = vpow2.f32 %v6039_v18 }
 0x4e2   : > { %v6040_v27 = vmul.f32 -1.442695, %v5128_v25 }
 0x4e4   : > { %7015 = vpow2.f32 %v6040_v27  ;;  %v7010_v29 = vpop.eup %7009 }
 0x4e6   : > { %v7012_v30 = vpop.eup %7011 }
 0x4e7   : > { %v5155_v31 = vpack.c.bf16 %v7012_v30, %v7010_v29 }
 0x4e9   : > { %6140 = vmatprep.mubr.bf16.mxu0 %v5155_v31 }
 0x4eb   : > { %v7014_v32 = vpop.eup %7013 }
 0x4ec   : > { %v5145_v33 = vadd.f32 1.0, %v7014_v32 }
 0x4ee   : > { %v7016_v34 = vpop.eup %7015  ;;  %7017 = vrcp.f32 %v5145_v33 }
 0x4ef   : > { %v5146_v35 = vadd.f32 1.0, %v7016_v34 }
 0x4f1   : > { %7019 = vrcp.f32 %v5146_v35 }
 0x4f8   : > { %v7018_v36 = vpop.eup %7017 }
 0x4fb   : > { %v7020_v52 = vpop.eup %7019 }
 0x4fc   : > { %v5156_v62 = vpack.c.bf16 %v7020_v52, %v7018_v36 }
 0x4fe   : > { %6141 = vmatmul.mubr.bf16.vlgmr.msra.gmra.mrb[32].mxu0 %v5156_v62 }
 0x5d1   : > { %v6142_v38 = vpop.f32.mrb[32].mxu0 }
 0x5d2   : > { %v5271_v39 = vadd.f32 %v6142_v38, %v6041_v37  ;;  %v5262_v40 = vpop.f32.mrb[33].mxu0 }
 0x5d3   : > { %v5263_v42 = vadd.f32 %v6041_v37, %v5262_v40  ;;  %v6143_v43 = vpop.f32.mrb[34].mxu0 }
 0x5d4   : > { %5279 = vst [vmem:[%s422_s9 + $0x10] sm:$0xff] %v5271_v39  ;;  %v5274_v44 = vadd.f32 %v6143_v43, %v6041_v37  ;;  %v5265_v45 = vpop.f32.mrb[35].mxu0 }
 0x5d5   : > { %5277 = vst [vmem:[%s422_s9] sm:$0xff] %v5263_v42  ;;  %v5266_v46 = vadd.f32 %v6041_v37, %v5265_v45 }
 0x5d6   : > { %5280 = vst [vmem:[%s422_s9 + $0x18] sm:$0xff] %v5274_v44 }
 0x5d7   : > { %5278 = vst [vmem:[%s422_s9 + $0x8] sm:$0xff] %v5266_v46 }
 0x5d8   : > { %7212 = shalt.err (!%p7209_p7)
}
 0x5d9   : > { %s7213_s21 = scalar_lea.hbm %s7753_s28, 512  ;;  %s7217_s29 = scalar_lea.hbm %s7830_s16, 2048 }
 0x5da   : > { %p7214_p5 = scmp.ne.s32.totalorder %s7753_s28, %s7213_s21  ;;  %p7218_p1 = scmp.lt.u32.totalorder %s7753_s28, %s7830_s16 }
 0x5db   : > { %p7219_p0 = scmp.lt.u32.totalorder %s7217_s29, %s7213_s21  ;;  %p7221_p2 = scmp.lt.u32.totalorder %s7213_s21, %s7753_s28 }
 0x5dc   : > { %p7215_p8 = pnand %p7214_p5, %p7831_p6 }
 0x5dd   : > { %p7220_p4 = por %p7219_p0, %p7218_p1 }
 0x5de   : > { %p7216_p9 = pneg %p7215_p8 }
 0x5df   : > { %p7222_p10 = por %p7221_p2, %p7220_p4 }
 0x5e1   : > { %p7223_p11 = pnand %p7222_p10, %p7216_p9 }
 0x5e3   : > { %7226 = shalt.err (!%p7223_p11)
}
 0x5e4   : > { %s7292_s23 = smov 128   ;;  %s7293_s27 = smov 8  }
 0x5e5   : > { %6294 = dma.vmem_to_hbm [thread:$0]  (%p7831_p6), %s7748_s14, 512, %s7753_s28, %s5282_s15, %s7292_s23, %s7292_s23, %s7293_s27  }
 0x5e6 PF: > { %p6331_p3 = scmp.ge.s32.totalorder %s7277_s12, 2  ;;  %s5310_s17 = sand.u32 1, %s7265_s30  }
 0x5e7   : > { %p7832_p12 = scmp.ne.s32.totalorder %s7819_s26, 0  ;;  %s5311_s21 = scalar_lea.sflag [#allocation4], %s5310_s17 }
 0x5e9   : > { %p6317_p13 = pnand %p6331_p3, %p7832_p12 }
 0x5eb   : > { %7260 = dma.done.wait (!%p6317_p13), %s5311_s21, 512  }
 0x5ec   : > { %7262 = vsyncadd (!%p6317_p13), %s5311_s21, 4294966784  ;;  %p25_p7 = scmp.ge.s32.totalorder %s7500_s19, 6   ;;  %s7833_s30 = smov %s7269_s10 }
 0x5ed   : > { %s7834_s10 = smov %s7273_s11  ;;  %s7835_s11 = smov %s7512_s25 }
 0x5ee   : > { %s7836_s12 = smov %s7500_s19  ;;  %27 = sbr.rel (!%p25_p7) target bundleno = 10 (0xa), region = 121 }
 0x5f5   :  { %5316 = vsyncpa [#allocation3], 1 }
 0x5f6   :  { %5318 = vsyncpa [#allocation3 + $0x1], 1 }
 0x5f7   :  { %5319 = vsyncpa [#allocation6], 1 }
 0x5f8   :  { %5320 = vsyncpa [#allocation9], 1 }
 0x5f9   :  { %5321 = vsyncpa [#allocation12], 1 }
 0x5fa   :  { %5322 = vsyncpa [#allocation4], 1 }
 0x5fb   :  { %5324 = vsyncpa [#allocation4 + $0x1], 1 }

</bundles_post_ra>
